<compile_context>
chip_gen: v5e
topology: v5e:2x2
jax: 0.10.0
libtpu: 0.0.40
codegen_flags: <defaults>
</compile_context>

<pallas_src>
import jax
import jax.numpy as jnp
from jax.experimental import pallas as pl
from jax.experimental.pallas import tpu as pltpu


_MAX_PAD = 5
_BRANCHES = ((9, 5), (7, 4), (5, 3), (3, 2))   # (kernel_size, padding) per branch


def _round_up(n, m):
    return ((n + m - 1) // m) * m


def _pick_batch_block(B, H_out):
    """Largest divisor of B with >=2 grid steps (if possible) and bb*H_out ~<= 128ish."""
    if B == 1:
        return 1
    cap = B // 2                                   # guarantee >= 2 grid steps
    target = max(1, -(-128 // H_out))              # ceil(128 / H_out): M just over 128
    bb = 1
    for d in range(1, cap + 1):
        if B % d == 0 and d <= target:
            bb = d
    return bb


def _build_toeplitz(w_oihw, pad, Wp, W_out, WC_in, WC_in_pad, N_pad, dtype):
    """Conv weight (C_out, C_in, k, k) -> Toeplitz (k*WC_in_pad, N_pad), lane-padded."""
    C_out, C_in, k, _ = w_oihw.shape
    off = _MAX_PAD - pad
    w = jnp.transpose(w_oihw, (2, 3, 1, 0)).astype(jnp.float32)   # (ky, kx, ci, co)
    kx = jnp.arange(k)[:, None, None]
    win = jnp.arange(Wp)[None, :, None]
    wo = jnp.arange(W_out)[None, None, :]
    sel = (win == wo + kx + off).astype(jnp.float32)              # (kx, win, wo) band
    t = jnp.einsum("xvw,yxio->yviwo", sel, w)                     # (ky, win, ci, wo, co)
    t = t.reshape(k, WC_in, W_out * C_out)
    t = jnp.pad(t, ((0, 0), (0, WC_in_pad - WC_in), (0, N_pad - W_out * C_out)))
    return t.reshape(k * WC_in_pad, N_pad).astype(dtype)


def _make_kernel(bb, H_out, WC, N_pad, branch_k_off, kmax):
    def kernel(x_ref, tw1_ref, tw2_ref, tw3_ref, tw4_ref, aff_ref, o_ref, lhs_ref):
        # x_ref:   (bb, Hp, WC)        bf16
        # twX_ref: (k*WC, N_pad)       bf16 Toeplitz weights (VMEM-resident)
        # aff_ref: (4, 3, N_pad)       f32  [conv bias; BN scale; BN shift] per branch
        # o_ref:   (4, bb, H_out, N_pad) f32
        # lhs_ref: (bb*H_out, kmax*WC) bf16 shared im2row scratch

        # Build the shared im2row slab (ky contraction folded onto the lane/K axis,
        # batch block folded onto M).
        for n in range(bb):
            for j in range(kmax):
                lhs_ref[n * H_out:(n + 1) * H_out, j * WC:(j + 1) * WC] = \
                    x_ref[n, j:j + H_out, :]

        tw_refs = (tw1_ref, tw2_ref, tw3_ref, tw4_ref)
        for br, (k, off) in enumerate(branch_k_off):
            # One large MXU matmul per branch: (bb*H_out, k*WC) @ (k*WC, N_pad).
            lhs = lhs_ref[:, off * WC:(off + k) * WC]
            acc = jnp.dot(lhs, tw_refs[br][...], preferred_element_type=jnp.float32)

            aff = aff_ref[br]                                     # (3, N_pad)
            bias, scale, shift = aff[0:1, :], aff[1:2, :], aff[2:3, :]
            # conv bias -> ReLU -> (eval) BatchNorm folded to scale/shift.
            # TODO(synk): Dropout(p=0.1) train-mode mask and BatchNorm train-mode batch
            # statistics are not implemented (eval semantics only).
            y = jnp.maximum(acc + bias, 0.0) * scale + shift
            o_ref[br] = y.reshape(bb, H_out, N_pad).astype(o_ref.dtype)
    return kernel


def conv2d_block_forward(x, params, *, eps=1e-5, batch_block=None):
    """x: (B, C_in, H, W) f32 NCHW -> (B, 4*C_out, H+2, W+2) f32 NCHW."""
    B, C_in, H, W = x.shape
    C_out = params["w1"].shape[0]
    P = _MAX_PAD
    Hp, Wp = H + 2 * P, W + 2 * P
    H_out, W_out = H + 2, W + 2
    WC_in = Wp * C_in
    WC_out = W_out * C_out
    WC = _round_up(WC_in, 128)        # lane-padded K block (per ky)
    N_pad = _round_up(WC_out, 128)    # lane-padded output width (unmasked stores)

    bb = _pick_batch_block(B, H_out) if batch_block is None else batch_block
    assert B % bb == 0, "batch_block must divide the batch size"

    # Pad once with the max padding; flatten (W, C_in) onto lanes; lane-pad; cast bf16.
    x_nhwc = jnp.transpose(x, (0, 2, 3, 1)).astype(jnp.float32)
    x_flat = jnp.pad(x_nhwc, ((0, 0), (P, P), (P, P), (0, 0))).reshape(B, Hp, WC_in)
    x_flat = jnp.pad(x_flat, ((0, 0), (0, 0), (0, WC - WC_in))).astype(jnp.bfloat16)

    # Toeplitz-expanded conv weights (built once, outside the kernel), bf16.
    tws = [_build_toeplitz(params[f"w{i + 1}"], p, Wp, W_out, WC_in, WC, N_pad,
                           jnp.bfloat16)
           for i, (_, p) in enumerate(_BRANCHES)]

    # Eval-mode BatchNorm folded to per-channel scale/shift; per-branch conv bias.
    bn_scale = params["gamma"] / jnp.sqrt(params["var"] + eps)
    bn_shift = params["beta"] - params["mean"] * bn_scale

    def lanes(v):                                              # (C_out,) -> (N_pad,)
        t = jnp.tile(v.astype(jnp.float32), W_out)
        return jnp.pad(t, (0, N_pad - WC_out))

    aff = jnp.stack([
        jnp.stack([lanes(params[f"b{i + 1}"]), lanes(bn_scale), lanes(bn_shift)])
        for i in range(4)
    ])                                                         # (4, 3, N_pad)

    branch_k_off = tuple((k, P - p) for (k, p) in _BRANCHES)
    kmax = max(k for k, _ in _BRANCHES)
    kernel = _make_kernel(bb, H_out, WC, N_pad, branch_k_off, kmax)

    flops = 2 * B * H_out * N_pad * sum(k * WC for k, _ in _BRANCHES)
    tw_bytes = sum(int(t.size) for t in tws) * 2
    bytes_accessed = (int(x_flat.size) * 2 + tw_bytes + int(aff.size) * 4
                      + 4 * B * H_out * N_pad * 4)

    # Explicit VMEM budget (double-buffered x/out blocks + resident weights + scratch).
    vmem_need = (2 * bb * Hp * WC * 2
                 + 2 * 4 * bb * H_out * N_pad * 4
                 + 2 * tw_bytes
                 + 2 * int(aff.size) * 4
                 + bb * H_out * kmax * WC * 2)
    vmem_limit = int(min(64 * 2**20, max(32 * 2**20, 2 * vmem_need)))

    out_flat = pl.pallas_call(
        kernel,
        out_shape=jax.ShapeDtypeStruct((4, B, H_out, N_pad), jnp.float32),
        grid=(B // bb,),
        in_specs=[
            pl.BlockSpec((bb, Hp, WC), lambda i: (i, 0, 0)),          # image block
            pl.BlockSpec(tws[0].shape, lambda i: (0, 0)),             # Toeplitz weights
            pl.BlockSpec(tws[1].shape, lambda i: (0, 0)),
            pl.BlockSpec(tws[2].shape, lambda i: (0, 0)),
            pl.BlockSpec(tws[3].shape, lambda i: (0, 0)),
            pl.BlockSpec(aff.shape, lambda i: (0, 0, 0)),             # bias / BN scale,shift
        ],
        out_specs=pl.BlockSpec((4, bb, H_out, N_pad), lambda i: (0, i, 0, 0)),
        scratch_shapes=[pltpu.VMEM((bb * H_out, kmax * WC), jnp.bfloat16)],
        compiler_params=pltpu.CompilerParams(
            dimension_semantics=("parallel",),
            vmem_limit_bytes=vmem_limit),
        cost_estimate=pl.CostEstimate(flops=flops, transcendentals=0,
                                      bytes_accessed=bytes_accessed),
    )(x_flat, *tws, aff)

    # (4, B, H_out, N_pad) -> (B, 4*C_out, H_out, W_out), branch-major channels.
    # TODO(synk): skip this transpose when the consumer accepts the branch-major
    # lane-dense layout (it is an extra HBM round trip of the output).
    out = out_flat[:, :, :, :WC_out].reshape(4, B, H_out, W_out, C_out)
    out = jnp.transpose(out, (1, 0, 4, 2, 3))
    return out.reshape(B, 4 * C_out, H_out, W_out)


def conv2d_block_reference(x, params, eps=1e-5):
    bn_scale = params["gamma"] / jnp.sqrt(params["var"] + eps)
    bn_shift = params["beta"] - params["mean"] * bn_scale
    outs = []
    for i, (_, p) in enumerate(_BRANCHES):
        w, b = params[f"w{i + 1}"], params[f"b{i + 1}"]
        y = jax.lax.conv_general_dilated(
            x, w, window_strides=(1, 1), padding=[(p, p), (p, p)],
            dimension_numbers=("NCHW", "OIHW", "NCHW"),
            precision=jax.lax.Precision.HIGHEST)
        y = jnp.maximum(y + b[None, :, None, None], 0.0)
        y = y * bn_scale[None, :, None, None] + bn_shift[None, :, None, None]
        outs.append(y)
    return jnp.concatenate(outs, axis=1)


if __name__ == "__main__":
    B, C_in, H, W = 2, 4, 16, 16
    C_out = 8

    key = jax.random.PRNGKey(0)
    keys = jax.random.split(key, 13)

    def conv_w(kkey, ksize):
        fan_in = C_in * ksize * ksize
        return jax.random.normal(kkey, (C_out, C_in, ksize, ksize),
                                 jnp.float32) / jnp.sqrt(fan_in)

    params = {
        "w1": conv_w(keys[0], 9), "b1": 0.1 * jax.random.normal(keys[1], (C_out,)),
        "w2": conv_w(keys[2], 7), "b2": 0.1 * jax.random.normal(keys[3], (C_out,)),
        "w3": conv_w(keys[4], 5), "b3": 0.1 * jax.random.normal(keys[5], (C_out,)),
        "w4": conv_w(keys[6], 3), "b4": 0.1 * jax.random.normal(keys[7], (C_out,)),
        "gamma": 1.0 + 0.1 * jax.random.normal(keys[8], (C_out,)),
        "beta": 0.1 * jax.random.normal(keys[9], (C_out,)),
        "mean": 0.1 * jax.random.normal(keys[10], (C_out,)),
        "var": 1.0 + 0.1 * jnp.abs(jax.random.normal(keys[11], (C_out,))),
    }
    x = jax.random.normal(keys[12], (B, C_in, H, W), jnp.float32)

    out = conv2d_block_forward(x, params)
    out = jax.block_until_ready(out)
    ref = conv2d_block_reference(x, params)

    assert out.shape == (B, 4 * C_out, H + 2, W + 2), out.shape
    # bf16 inputs / f32 accumulation vs a HIGHEST-precision f32 conv reference.
    assert jnp.allclose(out, ref, atol=5e-2, rtol=5e-2), \
        float(jnp.max(jnp.abs(out - ref)))
    print("KERNEL_OK")
</pallas_src>

<mosaic_0001>
module attributes {stable_mosaic.version = 11 : i64} {
  func.func @kernel(%arg0: i32, %arg1: memref<1x26x128xbf16, #tpu.memory_space<vmem>>, %arg2: memref<1152x256xbf16, #tpu.memory_space<vmem>>, %arg3: memref<896x256xbf16, #tpu.memory_space<vmem>>, %arg4: memref<640x256xbf16, #tpu.memory_space<vmem>>, %arg5: memref<384x256xbf16, #tpu.memory_space<vmem>>, %arg6: memref<4x3x256xf32, #tpu.memory_space<vmem>>, %arg7: memref<4x1x18x256xf32, #tpu.memory_space<vmem>>, %arg8: memref<18x1152xbf16, #tpu.memory_space<vmem>>) attributes {dimension_semantics = [#tpu.dimension_semantics<parallel>], iteration_bounds = array<i64: 2>, scalar_prefetch = 0 : i64, scratch_operands = 1 : i64, tpu.core_type = #tpu.core_type<tc>, window_params = [{transform_indices = @transform_0, window_bounds = array<i64: 1, 26, 128>}, {pipeline_mode = #tpu.pipeline_mode<synchronous>, transform_indices = @transform_1, window_bounds = array<i64: 1152, 256>}, {pipeline_mode = #tpu.pipeline_mode<synchronous>, transform_indices = @transform_2, window_bounds = array<i64: 896, 256>}, {pipeline_mode = #tpu.pipeline_mode<synchronous>, transform_indices = @transform_3, window_bounds = array<i64: 640, 256>}, {pipeline_mode = #tpu.pipeline_mode<synchronous>, transform_indices = @transform_4, window_bounds = array<i64: 384, 256>}, {pipeline_mode = #tpu.pipeline_mode<synchronous>, transform_indices = @transform_5, window_bounds = array<i64: 4, 3, 256>}, {transform_indices = @transform_6, window_bounds = array<i64: 4, 1, 18, 256>}]} {
    %c0 = arith.constant 0 : index
    %c0_0 = arith.constant 0 : index
    %c0_1 = arith.constant 0 : index
    %0 = vector.load %arg1[%c0, %c0_0, %c0_1] : memref<1x26x128xbf16, #tpu.memory_space<vmem>>, vector<1x18x128xbf16>
    %1 = vector.shape_cast %0 : vector<1x18x128xbf16> to vector<18x128xbf16>
    %c0_2 = arith.constant 0 : index
    %c0_3 = arith.constant 0 : index
    %2 = vector.load %arg8[%c0_2, %c0_3] : memref<18x1152xbf16, #tpu.memory_space<vmem>>, vector<18x128xbf16>
    tpu.vector_store %arg8[%c0_2, %c0_3], %1 {strides = array<i32>} : memref<18x1152xbf16, #tpu.memory_space<vmem>>, vector<18x128xbf16>,
    %c0_4 = arith.constant 0 : index
    %c1 = arith.constant 1 : index
    %c0_5 = arith.constant 0 : index
    %3 = vector.load %arg1[%c0_4, %c1, %c0_5] : memref<1x26x128xbf16, #tpu.memory_space<vmem>>, vector<1x18x128xbf16>
    %4 = vector.shape_cast %3 : vector<1x18x128xbf16> to vector<18x128xbf16>
    %c0_6 = arith.constant 0 : index
    %c128 = arith.constant 128 : index
    %5 = vector.load %arg8[%c0_6, %c128] : memref<18x1152xbf16, #tpu.memory_space<vmem>>, vector<18x128xbf16>
    tpu.vector_store %arg8[%c0_6, %c128], %4 {strides = array<i32>} : memref<18x1152xbf16, #tpu.memory_space<vmem>>, vector<18x128xbf16>,
    %c0_7 = arith.constant 0 : index
    %c2 = arith.constant 2 : index
    %c0_8 = arith.constant 0 : index
    %6 = vector.load %arg1[%c0_7, %c2, %c0_8] : memref<1x26x128xbf16, #tpu.memory_space<vmem>>, vector<1x18x128xbf16>
    %7 = vector.shape_cast %6 : vector<1x18x128xbf16> to vector<18x128xbf16>
    %c0_9 = arith.constant 0 : index
    %c256 = arith.constant 256 : index
    %8 = vector.load %arg8[%c0_9, %c256] : memref<18x1152xbf16, #tpu.memory_space<vmem>>, vector<18x128xbf16>
    tpu.vector_store %arg8[%c0_9, %c256], %7 {strides = array<i32>} : memref<18x1152xbf16, #tpu.memory_space<vmem>>, vector<18x128xbf16>,
    %c0_10 = arith.constant 0 : index
    %c3 = arith.constant 3 : index
    %c0_11 = arith.constant 0 : index
    %9 = vector.load %arg1[%c0_10, %c3, %c0_11] : memref<1x26x128xbf16, #tpu.memory_space<vmem>>, vector<1x18x128xbf16>
    %10 = vector.shape_cast %9 : vector<1x18x128xbf16> to vector<18x128xbf16>
    %c0_12 = arith.constant 0 : index
    %c384 = arith.constant 384 : index
    %11 = vector.load %arg8[%c0_12, %c384] : memref<18x1152xbf16, #tpu.memory_space<vmem>>, vector<18x128xbf16>
    tpu.vector_store %arg8[%c0_12, %c384], %10 {strides = array<i32>} : memref<18x1152xbf16, #tpu.memory_space<vmem>>, vector<18x128xbf16>,
    %c0_13 = arith.constant 0 : index
    %c4 = arith.constant 4 : index
    %c0_14 = arith.constant 0 : index
    %12 = vector.load %arg1[%c0_13, %c4, %c0_14] : memref<1x26x128xbf16, #tpu.memory_space<vmem>>, vector<1x18x128xbf16>
    %13 = vector.shape_cast %12 : vector<1x18x128xbf16> to vector<18x128xbf16>
    %c0_15 = arith.constant 0 : index
    %c512 = arith.constant 512 : index
    %14 = vector.load %arg8[%c0_15, %c512] : memref<18x1152xbf16, #tpu.memory_space<vmem>>, vector<18x128xbf16>
    tpu.vector_store %arg8[%c0_15, %c512], %13 {strides = array<i32>} : memref<18x1152xbf16, #tpu.memory_space<vmem>>, vector<18x128xbf16>,
    %c0_16 = arith.constant 0 : index
    %c5 = arith.constant 5 : index
    %c0_17 = arith.constant 0 : index
    %15 = vector.load %arg1[%c0_16, %c5, %c0_17] : memref<1x26x128xbf16, #tpu.memory_space<vmem>>, vector<1x18x128xbf16>
    %16 = vector.shape_cast %15 : vector<1x18x128xbf16> to vector<18x128xbf16>
    %c0_18 = arith.constant 0 : index
    %c640 = arith.constant 640 : index
    %17 = vector.load %arg8[%c0_18, %c640] : memref<18x1152xbf16, #tpu.memory_space<vmem>>, vector<18x128xbf16>
    tpu.vector_store %arg8[%c0_18, %c640], %16 {strides = array<i32>} : memref<18x1152xbf16, #tpu.memory_space<vmem>>, vector<18x128xbf16>,
    %c0_19 = arith.constant 0 : index
    %c6 = arith.constant 6 : index
    %c0_20 = arith.constant 0 : index
    %18 = vector.load %arg1[%c0_19, %c6, %c0_20] : memref<1x26x128xbf16, #tpu.memory_space<vmem>>, vector<1x18x128xbf16>
    %19 = vector.shape_cast %18 : vector<1x18x128xbf16> to vector<18x128xbf16>
    %c0_21 = arith.constant 0 : index
    %c768 = arith.constant 768 : index
    %20 = vector.load %arg8[%c0_21, %c768] : memref<18x1152xbf16, #tpu.memory_space<vmem>>, vector<18x128xbf16>
    tpu.vector_store %arg8[%c0_21, %c768], %19 {strides = array<i32>} : memref<18x1152xbf16, #tpu.memory_space<vmem>>, vector<18x128xbf16>,
    %c0_22 = arith.constant 0 : index
    %c7 = arith.constant 7 : index
    %c0_23 = arith.constant 0 : index
    %21 = vector.load %arg1[%c0_22, %c7, %c0_23] : memref<1x26x128xbf16, #tpu.memory_space<vmem>>, vector<1x18x128xbf16>
    %22 = vector.shape_cast %21 : vector<1x18x128xbf16> to vector<18x128xbf16>
    %c0_24 = arith.constant 0 : index
    %c896 = arith.constant 896 : index
    %23 = vector.load %arg8[%c0_24, %c896] : memref<18x1152xbf16, #tpu.memory_space<vmem>>, vector<18x128xbf16>
    tpu.vector_store %arg8[%c0_24, %c896], %22 {strides = array<i32>} : memref<18x1152xbf16, #tpu.memory_space<vmem>>, vector<18x128xbf16>,
    %c0_25 = arith.constant 0 : index
    %c8 = arith.constant 8 : index
    %c0_26 = arith.constant 0 : index
    %24 = vector.load %arg1[%c0_25, %c8, %c0_26] : memref<1x26x128xbf16, #tpu.memory_space<vmem>>, vector<1x18x128xbf16>
    %25 = vector.shape_cast %24 : vector<1x18x128xbf16> to vector<18x128xbf16>
    %c0_27 = arith.constant 0 : index
    %c1024 = arith.constant 1024 : index
    %26 = vector.load %arg8[%c0_27, %c1024] : memref<18x1152xbf16, #tpu.memory_space<vmem>>, vector<18x128xbf16>
    tpu.vector_store %arg8[%c0_27, %c1024], %25 {strides = array<i32>} : memref<18x1152xbf16, #tpu.memory_space<vmem>>, vector<18x128xbf16>,
    %c0_28 = arith.constant 0 : index
    %c0_29 = arith.constant 0 : index
    %27 = vector.load %arg8[%c0_28, %c0_29] : memref<18x1152xbf16, #tpu.memory_space<vmem>>, vector<18x1152xbf16>
    %c0_30 = arith.constant 0 : index
    %c0_31 = arith.constant 0 : index
    %28 = vector.load %arg2[%c0_30, %c0_31] : memref<1152x256xbf16, #tpu.memory_space<vmem>>, vector<1152x256xbf16>
    %cst = arith.constant dense<0.000000e+00> : vector<18x256xf32>
    %29 = tpu.matmul %27, %28, %cst {dimension_numbers = #tpu.dot_dimension_numbers<[1], [0], [0], [1], [0, 0, 1, 1], [], []>} : vector<18x1152xbf16>, vector<1152x256xbf16>, vector<18x256xf32> -> vector<18x256xf32>
    %c0_32 = arith.constant 0 : index
    %c0_33 = arith.constant 0 : index
    %c0_34 = arith.constant 0 : index
    %30 = vector.load %arg6[%c0_32, %c0_33, %c0_34] : memref<4x3x256xf32, #tpu.memory_space<vmem>>, vector<1x3x256xf32>
    %31 = vector.shape_cast %30 : vector<1x3x256xf32> to vector<3x256xf32>
    %32 = vector.extract_strided_slice %31 {offsets = [0, 0], sizes = [1, 256], strides = [1, 1]} : vector<3x256xf32> to vector<1x256xf32>
    %33 = vector.extract_strided_slice %31 {offsets = [1, 0], sizes = [1, 256], strides = [1, 1]} : vector<3x256xf32> to vector<1x256xf32>
    %34 = vector.extract_strided_slice %31 {offsets = [2, 0], sizes = [1, 256], strides = [1, 1]} : vector<3x256xf32> to vector<1x256xf32>
    %35 = vector.broadcast %32 : vector<1x256xf32> to vector<18x256xf32>
    %36 = arith.addf %29, %35 : vector<18x256xf32>
    %cst_35 = arith.constant 0.000000e+00 : f32
    %37 = vector.broadcast %cst_35 : f32 to vector<18x256xf32>
    %38 = arith.maximumf %36, %37 : vector<18x256xf32>
    %39 = vector.broadcast %33 : vector<1x256xf32> to vector<18x256xf32>
    %40 = arith.mulf %38, %39 : vector<18x256xf32>
    %41 = vector.broadcast %34 : vector<1x256xf32> to vector<18x256xf32>
    %42 = arith.addf %40, %41 : vector<18x256xf32>
    %43 = vector.shape_cast %42 : vector<18x256xf32> to vector<1x18x256xf32>
    %c0_36 = arith.constant 0 : index
    %c0_37 = arith.constant 0 : index
    %c0_38 = arith.constant 0 : index
    %c0_39 = arith.constant 0 : index
    %44 = vector.load %arg7[%c0_36, %c0_37, %c0_38, %c0_39] : memref<4x1x18x256xf32, #tpu.memory_space<vmem>>, vector<1x1x18x256xf32>
    %45 = vector.shape_cast %44 : vector<1x1x18x256xf32> to vector<1x18x256xf32>
    %46 = vector.shape_cast %43 : vector<1x18x256xf32> to vector<1x1x18x256xf32>
    tpu.vector_store %arg7[%c0_36, %c0_37, %c0_38, %c0_39], %46 {strides = array<i32>} : memref<4x1x18x256xf32, #tpu.memory_space<vmem>>, vector<1x1x18x256xf32>,
    %c0_40 = arith.constant 0 : index
    %c128_41 = arith.constant 128 : index
    %47 = vector.load %arg8[%c0_40, %c128_41] : memref<18x1152xbf16, #tpu.memory_space<vmem>>, vector<18x896xbf16>
    %c0_42 = arith.constant 0 : index
    %c0_43 = arith.constant 0 : index
    %48 = vector.load %arg3[%c0_42, %c0_43] : memref<896x256xbf16, #tpu.memory_space<vmem>>, vector<896x256xbf16>
    %cst_44 = arith.constant dense<0.000000e+00> : vector<18x256xf32>
    %49 = tpu.matmul %47, %48, %cst_44 {dimension_numbers = #tpu.dot_dimension_numbers<[1], [0], [0], [1], [0, 0, 1, 1], [], []>} : vector<18x896xbf16>, vector<896x256xbf16>, vector<18x256xf32> -> vector<18x256xf32>
    %c1_45 = arith.constant 1 : index
    %c0_46 = arith.constant 0 : index
    %c0_47 = arith.constant 0 : index
    %50 = vector.load %arg6[%c1_45, %c0_46, %c0_47] : memref<4x3x256xf32, #tpu.memory_space<vmem>>, vector<1x3x256xf32>
    %51 = vector.shape_cast %50 : vector<1x3x256xf32> to vector<3x256xf32>
    %52 = vector.extract_strided_slice %51 {offsets = [0, 0], sizes = [1, 256], strides = [1, 1]} : vector<3x256xf32> to vector<1x256xf32>
    %53 = vector.extract_strided_slice %51 {offsets = [1, 0], sizes = [1, 256], strides = [1, 1]} : vector<3x256xf32> to vector<1x256xf32>
    %54 = vector.extract_strided_slice %51 {offsets = [2, 0], sizes = [1, 256], strides = [1, 1]} : vector<3x256xf32> to vector<1x256xf32>
    %55 = vector.broadcast %52 : vector<1x256xf32> to vector<18x256xf32>
    %56 = arith.addf %49, %55 : vector<18x256xf32>
    %cst_48 = arith.constant 0.000000e+00 : f32
    %57 = vector.broadcast %cst_48 : f32 to vector<18x256xf32>
    %58 = arith.maximumf %56, %57 : vector<18x256xf32>
    %59 = vector.broadcast %53 : vector<1x256xf32> to vector<18x256xf32>
    %60 = arith.mulf %58, %59 : vector<18x256xf32>
    %61 = vector.broadcast %54 : vector<1x256xf32> to vector<18x256xf32>
    %62 = arith.addf %60, %61 : vector<18x256xf32>
    %63 = vector.shape_cast %62 : vector<18x256xf32> to vector<1x18x256xf32>
    %c1_49 = arith.constant 1 : index
    %c0_50 = arith.constant 0 : index
    %c0_51 = arith.constant 0 : index
    %c0_52 = arith.constant 0 : index
    %64 = vector.load %arg7[%c1_49, %c0_50, %c0_51, %c0_52] : memref<4x1x18x256xf32, #tpu.memory_space<vmem>>, vector<1x1x18x256xf32>
    %65 = vector.shape_cast %64 : vector<1x1x18x256xf32> to vector<1x18x256xf32>
    %66 = vector.shape_cast %63 : vector<1x18x256xf32> to vector<1x1x18x256xf32>
    tpu.vector_store %arg7[%c1_49, %c0_50, %c0_51, %c0_52], %66 {strides = array<i32>} : memref<4x1x18x256xf32, #tpu.memory_space<vmem>>, vector<1x1x18x256xf32>,
    %c0_53 = arith.constant 0 : index
    %c256_54 = arith.constant 256 : index
    %67 = vector.load %arg8[%c0_53, %c256_54] : memref<18x1152xbf16, #tpu.memory_space<vmem>>, vector<18x640xbf16>
    %c0_55 = arith.constant 0 : index
    %c0_56 = arith.constant 0 : index
    %68 = vector.load %arg4[%c0_55, %c0_56] : memref<640x256xbf16, #tpu.memory_space<vmem>>, vector<640x256xbf16>
    %cst_57 = arith.constant dense<0.000000e+00> : vector<18x256xf32>
    %69 = tpu.matmul %67, %68, %cst_57 {dimension_numbers = #tpu.dot_dimension_numbers<[1], [0], [0], [1], [0, 0, 1, 1], [], []>} : vector<18x640xbf16>, vector<640x256xbf16>, vector<18x256xf32> -> vector<18x256xf32>
    %c2_58 = arith.constant 2 : index
    %c0_59 = arith.constant 0 : index
    %c0_60 = arith.constant 0 : index
    %70 = vector.load %arg6[%c2_58, %c0_59, %c0_60] : memref<4x3x256xf32, #tpu.memory_space<vmem>>, vector<1x3x256xf32>
    %71 = vector.shape_cast %70 : vector<1x3x256xf32> to vector<3x256xf32>
    %72 = vector.extract_strided_slice %71 {offsets = [0, 0], sizes = [1, 256], strides = [1, 1]} : vector<3x256xf32> to vector<1x256xf32>
    %73 = vector.extract_strided_slice %71 {offsets = [1, 0], sizes = [1, 256], strides = [1, 1]} : vector<3x256xf32> to vector<1x256xf32>
    %74 = vector.extract_strided_slice %71 {offsets = [2, 0], sizes = [1, 256], strides = [1, 1]} : vector<3x256xf32> to vector<1x256xf32>
    %75 = vector.broadcast %72 : vector<1x256xf32> to vector<18x256xf32>
    %76 = arith.addf %69, %75 : vector<18x256xf32>
    %cst_61 = arith.constant 0.000000e+00 : f32
    %77 = vector.broadcast %cst_61 : f32 to vector<18x256xf32>
    %78 = arith.maximumf %76, %77 : vector<18x256xf32>
    %79 = vector.broadcast %73 : vector<1x256xf32> to vector<18x256xf32>
    %80 = arith.mulf %78, %79 : vector<18x256xf32>
    %81 = vector.broadcast %74 : vector<1x256xf32> to vector<18x256xf32>
    %82 = arith.addf %80, %81 : vector<18x256xf32>
    %83 = vector.shape_cast %82 : vector<18x256xf32> to vector<1x18x256xf32>
    %c2_62 = arith.constant 2 : index
    %c0_63 = arith.constant 0 : index
    %c0_64 = arith.constant 0 : index
    %c0_65 = arith.constant 0 : index
    %84 = vector.load %arg7[%c2_62, %c0_63, %c0_64, %c0_65] : memref<4x1x18x256xf32, #tpu.memory_space<vmem>>, vector<1x1x18x256xf32>
    %85 = vector.shape_cast %84 : vector<1x1x18x256xf32> to vector<1x18x256xf32>
    %86 = vector.shape_cast %83 : vector<1x18x256xf32> to vector<1x1x18x256xf32>
    tpu.vector_store %arg7[%c2_62, %c0_63, %c0_64, %c0_65], %86 {strides = array<i32>} : memref<4x1x18x256xf32, #tpu.memory_space<vmem>>, vector<1x1x18x256xf32>,
    %c0_66 = arith.constant 0 : index
    %c384_67 = arith.constant 384 : index
    %87 = vector.load %arg8[%c0_66, %c384_67] : memref<18x1152xbf16, #tpu.memory_space<vmem>>, vector<18x384xbf16>
    %c0_68 = arith.constant 0 : index
    %c0_69 = arith.constant 0 : index
    %88 = vector.load %arg5[%c0_68, %c0_69] : memref<384x256xbf16, #tpu.memory_space<vmem>>, vector<384x256xbf16>
    %cst_70 = arith.constant dense<0.000000e+00> : vector<18x256xf32>
    %89 = tpu.matmul %87, %88, %cst_70 {dimension_numbers = #tpu.dot_dimension_numbers<[1], [0], [0], [1], [0, 0, 1, 1], [], []>} : vector<18x384xbf16>, vector<384x256xbf16>, vector<18x256xf32> -> vector<18x256xf32>
    %c3_71 = arith.constant 3 : index
    %c0_72 = arith.constant 0 : index
    %c0_73 = arith.constant 0 : index
    %90 = vector.load %arg6[%c3_71, %c0_72, %c0_73] : memref<4x3x256xf32, #tpu.memory_space<vmem>>, vector<1x3x256xf32>
    %91 = vector.shape_cast %90 : vector<1x3x256xf32> to vector<3x256xf32>
    %92 = vector.extract_strided_slice %91 {offsets = [0, 0], sizes = [1, 256], strides = [1, 1]} : vector<3x256xf32> to vector<1x256xf32>
    %93 = vector.extract_strided_slice %91 {offsets = [1, 0], sizes = [1, 256], strides = [1, 1]} : vector<3x256xf32> to vector<1x256xf32>
    %94 = vector.extract_strided_slice %91 {offsets = [2, 0], sizes = [1, 256], strides = [1, 1]} : vector<3x256xf32> to vector<1x256xf32>
    %95 = vector.broadcast %92 : vector<1x256xf32> to vector<18x256xf32>
    %96 = arith.addf %89, %95 : vector<18x256xf32>
    %cst_74 = arith.constant 0.000000e+00 : f32
    %97 = vector.broadcast %cst_74 : f32 to vector<18x256xf32>
    %98 = arith.maximumf %96, %97 : vector<18x256xf32>
    %99 = vector.broadcast %93 : vector<1x256xf32> to vector<18x256xf32>
    %100 = arith.mulf %98, %99 : vector<18x256xf32>
    %101 = vector.broadcast %94 : vector<1x256xf32> to vector<18x256xf32>
    %102 = arith.addf %100, %101 : vector<18x256xf32>
    %103 = vector.shape_cast %102 : vector<18x256xf32> to vector<1x18x256xf32>
    %c3_75 = arith.constant 3 : index
    %c0_76 = arith.constant 0 : index
    %c0_77 = arith.constant 0 : index
    %c0_78 = arith.constant 0 : index
    %104 = vector.load %arg7[%c3_75, %c0_76, %c0_77, %c0_78] : memref<4x1x18x256xf32, #tpu.memory_space<vmem>>, vector<1x1x18x256xf32>
    %105 = vector.shape_cast %104 : vector<1x1x18x256xf32> to vector<1x18x256xf32>
    %106 = vector.shape_cast %103 : vector<1x18x256xf32> to vector<1x1x18x256xf32>
    tpu.vector_store %arg7[%c3_75, %c0_76, %c0_77, %c0_78], %106 {strides = array<i32>} : memref<4x1x18x256xf32, #tpu.memory_space<vmem>>, vector<1x1x18x256xf32>,
    return
  }
  func.func @transform_0(%arg0: i32) -> (i32, i32, i32) {
    %c0_i32 = arith.constant 0 : i32
    %c0_i32_0 = arith.constant 0 : i32
    %c0_i32_1 = arith.constant 0 : i32
    return %arg0, %c0_i32, %c0_i32_0 : i32, i32, i32
  }
  func.func @transform_1(%arg0: i32) -> (i32, i32) {
    %c0_i32 = arith.constant 0 : i32
    %c0_i32_0 = arith.constant 0 : i32
    %c0_i32_1 = arith.constant 0 : i32
    return %c0_i32, %c0_i32_0 : i32, i32
  }
  func.func @transform_2(%arg0: i32) -> (i32, i32) {
    %c0_i32 = arith.constant 0 : i32
    %c0_i32_0 = arith.constant 0 : i32
    %c0_i32_1 = arith.constant 0 : i32
    return %c0_i32, %c0_i32_0 : i32, i32
  }
  func.func @transform_3(%arg0: i32) -> (i32, i32) {
    %c0_i32 = arith.constant 0 : i32
    %c0_i32_0 = arith.constant 0 : i32
    %c0_i32_1 = arith.constant 0 : i32
    return %c0_i32, %c0_i32_0 : i32, i32
  }
  func.func @transform_4(%arg0: i32) -> (i32, i32) {
    %c0_i32 = arith.constant 0 : i32
    %c0_i32_0 = arith.constant 0 : i32
    %c0_i32_1 = arith.constant 0 : i32
    return %c0_i32, %c0_i32_0 : i32, i32
  }
  func.func @transform_5(%arg0: i32) -> (i32, i32, i32) {
    %c0_i32 = arith.constant 0 : i32
    %c0_i32_0 = arith.constant 0 : i32
    %c0_i32_1 = arith.constant 0 : i32
    %c0_i32_2 = arith.constant 0 : i32
    return %c0_i32, %c0_i32_0, %c0_i32_1 : i32, i32, i32
  }
  func.func @transform_6(%arg0: i32) -> (i32, i32, i32, i32) {
    %c0_i32 = arith.constant 0 : i32
    %c0_i32_0 = arith.constant 0 : i32
    %c0_i32_1 = arith.constant 0 : i32
    %c0_i32_2 = arith.constant 0 : i32
    return %c0_i32, %arg0, %c0_i32_0, %c0_i32_1 : i32, i32, i32, i32
  }
}

</mosaic_0001>

<bundles_post_ra>
// kernel: tpu_custom_call.1
= control target key start
LH: loop header
LB: loop body
LE: loop exit
PB: predicated region body
PF: predicated region fallthrough
CT: control target
= control target key end

     0   :  { %11 = vsyncpa [#allocation4], 0  ;;  %s7514_s0 = inlined_call_operand.vmem [shape: bf16[2,26,128], index: 0, kind: input, shape index: {}]   ;;  %s7515_s1 = inlined_call_operand.hbm [shape: bf16[1152,256], index: 1, kind: input, shape index: {}]   ;;  %s7516_s2 = inlined_call_operand.hbm [shape: bf16[896,256], index: 2, kind: input, shape index: {}]   ;;  %s7517_s3 = inlined_call_operand.hbm [shape: bf16[640,256], index: 3, kind: input, shape index: {}]   ;;  %s7518_s4 = inlined_call_operand.hbm [shape: bf16[384,256], index: 4, kind: input, shape index: {}]   ;;  %s7519_s5 = inlined_call_operand.vmem [shape: f32[4,3,256], index: 5, kind: input, shape index: {}]   ;;  %s7520_s6 = inlined_call_operand.vmem [shape: f32[4,2,18,256], index: 6, kind: output, shape index: {}]  }
   0x1   :  { %12 = vsyncpa [#allocation6], 0 }
   0x2   :  { %13 = vsyncpa [#allocation9], 0  ;;  %s6674_s21 = smov 0   ;;  %s6676_s22 = smov 0  }
   0x3   :  { %s6678_s23 = smov 0  }
   0x4 LB: > { %s6687_s24 = sadd.s32 4294967295, %s6631_s23   ;;  %s6689_s25 = sadd.s32 1, %s6631_s23   ;;  %s6631_s23 = sphi %s6678_s23, %s7540_s23   ;;  %s6627_s22 = sphi %s6676_s22, %s7539_s22   ;;  %s6623_s21 = sphi %s6674_s21, %s7538_s21  }
   0x5   : > { %s154_s26 = ssub.s32 %s6631_s23, %s6689_s25  ;;  %s157_s27 = sadd.s32 1, %s6627_s22 }
   0x6   : > { %p155_p0 = scmp.eq.s32.totalorder %s154_s26, 0  ;;  %p167_p1 = scmp.ne.s32.totalorder %s6627_s22, %s6623_s21 }
   0x7   : > { %p168_p2 = scmp.eq.s32.totalorder %s6687_s24, 1  ;;  %p4325_p3 = scmp.ge.s32.totalorder %s6631_s23, 1 }
   0x8   : > { %s6697_s28 = scalar_select %p155_p0, %s6627_s22, %s157_s27  }
   0x9   : > { %p6699_p4 = por %p168_p2, %p167_p1  ;;  %p181_p5 = scmp.lt.s32.totalorder %s6631_s23, 3 }
   0xa   : > { %p6438_p6 = scmp.eq.s32.totalorder %s6687_s24, 0  ;;  %s206_s9 = sshll.u32 %s7516_s2, 4  ;;  %s207_s9 = int_to_ptr.hbm [resolvable:$true] %s206_s9 }
   0xb   : > { %p6704_p7 = pnand %p4325_p3, %p181_p5  ;;  %s192_s12 = sshll.u32 %s7515_s1, 4  ;;  %s193_s12 = int_to_ptr.hbm [resolvable:$true] %s192_s12 }
   0xc   : > { %s6633_s14 = smov [#allocation5]   ;;  %s6634_s16 = smov 128  }
   0xd   : > { %p6425_p8 = pneg %p6704_p7  ;;  %s208_s15 = sshll.u32 %s6633_s14, 4  ;;  %s209_s15 = int_to_ptr.vmem [resolvable:$true] %s208_s15 }
   0xe   : > { %s6635_s17 = smov 8   ;;  %s6636_s18 = smov [#allocation3]  }
   0xf   : > { %p6718_p9 = pnand %p6438_p6, %p6425_p8  ;;  %s194_s19 = sshll.u32 %s6636_s18, 4  ;;  %s195_s19 = int_to_ptr.vmem [resolvable:$true] %s194_s19 }
  0x10   : > { %s220_s26 = sshll.u32 %s7517_s3, 4  ;;  %s234_s8 = sshll.u32 %s7518_s4, 4  ;;  %s221_s26 = int_to_ptr.hbm [resolvable:$true] %s220_s26  ;;  %s235_s8 = int_to_ptr.hbm [resolvable:$true] %s234_s8 }
  0x11   : > { %6431 = dma.hbm_to_vmem [thread:$0]  (!%p6718_p9), %s207_s9, 14336, %s209_s15, [#allocation6], %s6634_s16, %s6634_s16, %s6635_s17  }
  0x12   : > { %6428 = dma.hbm_to_vmem [thread:$0]  (!%p6718_p9), %s193_s12, 18432, %s195_s19, [#allocation4], %s6634_s16, %s6634_s16, %s6635_s17  }
  0x13   : > { %s6637_s10 = smov [#allocation7]   ;;  %s6638_s9 = smov [#allocation8]  }
  0x14   : > { %s222_s11 = sshll.u32 %s6637_s10, 4  ;;  %s236_s14 = sshll.u32 %s6638_s9, 4  ;;  %s223_s11 = int_to_ptr.vmem [resolvable:$true] %s222_s11  ;;  %s237_s14 = int_to_ptr.vmem [resolvable:$true] %s236_s14 }
  0x15   : > { %6434 = dma.hbm_to_vmem [thread:$0]  (!%p6718_p9), %s221_s26, 10240, %s223_s11, [#allocation6], %s6634_s16, %s6634_s16, %s6635_s17  }
  0x16   : > { %6437 = dma.hbm_to_vmem [thread:$0]  (!%p6718_p9), %s235_s8, 6144, %s237_s14, [#allocation9], %s6634_s16, %s6634_s16, %s6635_s17  }
  0x17   : > { %263 = sbr.rel (%p6704_p7) target bundleno = 612 (0x264), region = 44 }
  0x1c   : > { %6610 = dma.done.wait (%p6438_p6), [#allocation4], 18432  }
  0x1d   : > { %6612 = vsyncadd (%p6438_p6), [#allocation4], 4294948864 }
  0x1e   : > { %6614 = dma.done.wait (%p6438_p6), [#allocation6], 24576  }
  0x1f   : > { %6616 = vsyncadd (%p6438_p6), [#allocation6], 4294942720 }
  0x20   : > { %6618 = dma.done.wait (%p6438_p6), [#allocation9], 6144  }
  0x21   : > { %6620 = vsyncadd (%p6438_p6), [#allocation9], 4294961152  ;;  %p308_p10 = scmp.lt.s32.totalorder %s6687_s24, 1  ;;  %v4436_v0 = vld [vmem:[#allocation3 + $0x70] sm:$0xf]  ;;  %vm366_vm0 = vcmask 1042432  }
  0x22   : > { %v6023_v1 = vld [vmem:[#allocation3 + $0x74] sm:$0xf0]  ;;  %v4500_v2 = vld [vmem:[#allocation3 + $0xf0] sm:$0xf]  ;;  %v4428_v11 = vld [vmem:[#allocation3 + $0x60] sm:$0xf] }
  0x23   : > { %s6752_s30 = scalar_select %p308_p10, %s6687_s24, 1  ;;  %v4437_v3 = vor.u32 %v6023_v1, %v4436_v0  ;;  %v6039_v4 = vld [vmem:[#allocation3 + $0xf4] sm:$0xf0]  ;;  %v4564_v5 = vld [vmem:[#allocation3 + $0x170] sm:$0xf]  ;;  %vm367_vm1 = vcmask 1046532  }
  0x24   : > { %v6055_v6 = vld [vmem:[#allocation3 + $0x174] sm:$0xf0]  ;;  %v4501_v7 = vor.u32 %v6039_v4, %v4500_v2  ;;  %v4628_v9 = vld [vmem:[#allocation3 + $0x1f0] sm:$0xf]  ;;  %v6021_v13 = vld [vmem:[#allocation3 + $0x64] sm:$0xf0] }
  0x25   : > { %v4565_v8 = vor.u32 %v6055_v6, %v4564_v5  ;;  %v6071_v10 = vld [vmem:[#allocation3 + $0x1f4] sm:$0xf0]  ;;  %1522 = vmatpush.bf16.msra.mxu0 %v4437_v3  ;;  %v4492_v14 = vld [vmem:[#allocation3 + $0xe0] sm:$0xf]  ;;  %v6037_v15 = vld [vmem:[#allocation3 + $0xe4] sm:$0xf0]  ;;  %v4429_v16 = vor.u32 %v6021_v13, %v4428_v11 }
  0x26   : > { %v4629_v12 = vor.u32 %v6071_v10, %v4628_v9  ;;  %1540 = vmatpush.bf16.msra.mxu1 %v4501_v7  ;;  %v4493_v17 = vor.u32 %v6037_v15, %v4492_v14  ;;  %v4556_v18 = vld [vmem:[#allocation3 + $0x160] sm:$0xf]  ;;  %v6053_v19 = vld [vmem:[#allocation3 + $0x164] sm:$0xf0]  ;;  %v4420_v23 = vld [vmem:[#allocation3 + $0x50] sm:$0xf] }
  0x27   : > { %1558 = vmatpush.bf16.msra.mxu2 %v4565_v8  ;;  %v4620_v20 = vld [vmem:[#allocation3 + $0x1e0] sm:$0xf]  ;;  %v4557_v21 = vor.u32 %v6053_v19, %v4556_v18  ;;  %v6069_v22 = vld [vmem:[#allocation3 + $0x1e4] sm:$0xf0]  ;;  %v6019_v24 = vld [vmem:[#allocation3 + $0x54] sm:$0xf0] }
  0x28   : > { %1576 = vmatpush.bf16.msra.mxu3 %v4629_v12  ;;  %v4621_v25 = vor.u32 %v6069_v22, %v4620_v20  ;;  %v4484_v26 = vld [vmem:[#allocation3 + $0xd0] sm:$0xf]  ;;  %v6035_v27 = vld [vmem:[#allocation3 + $0xd4] sm:$0xf0]  ;;  %v4421_v29 = vor.u32 %v6019_v24, %v4420_v23  ;;  %v4412_v35 = vld [vmem:[#allocation3 + $0x40] sm:$0xf] }
  0x29   : > { %v4548_v28 = vld [vmem:[#allocation3 + $0x150] sm:$0xf]  ;;  %1523 = vmatpush.bf16.msra.mxu0 %v4429_v16  ;;  %v6051_v30 = vld [vmem:[#allocation3 + $0x154] sm:$0xf0]  ;;  %v4485_v33 = vor.u32 %v6035_v27, %v4484_v26  ;;  %v6017_v36 = vld [vmem:[#allocation3 + $0x44] sm:$0xf0] }
  0x2a   : > { %v4612_v31 = vld [vmem:[#allocation3 + $0x1d0] sm:$0xf]  ;;  %v6067_v32 = vld [vmem:[#allocation3 + $0x1d4] sm:$0xf0]  ;;  %1541 = vmatpush.bf16.msra.mxu1 %v4493_v17  ;;  %v4549_v34 = vor.u32 %v6051_v30, %v4548_v28  ;;  %v4476_v37 = vld [vmem:[#allocation3 + $0xc0] sm:$0xf]  ;;  %v4413_v44 = vor.u32 %v6017_v36, %v4412_v35 }
  0x2b   : > { %1559 = vmatpush.bf16.msra.mxu2 %v4557_v21  ;;  %v4613_v38 = vor.u32 %v6067_v32, %v4612_v31  ;;  %v6033_v39 = vld [vmem:[#allocation3 + $0xc4] sm:$0xf0]  ;;  %v4540_v40 = vld [vmem:[#allocation3 + $0x140] sm:$0xf]  ;;  %v4404_v45 = vld [vmem:[#allocation3 + $0x30] sm:$0xf] }
  0x2c   : > { %1577 = vmatpush.bf16.msra.mxu3 %v4621_v25  ;;  %v6049_v41 = vld [vmem:[#allocation3 + $0x144] sm:$0xf0]  ;;  %v4604_v42 = vld [vmem:[#allocation3 + $0x1c0] sm:$0xf]  ;;  %s5998_s12 = sshll.u32 %s6752_s30, 4  ;;  %v4477_v46 = vor.u32 %v6033_v39, %v4476_v37  ;;  %vm6818_vm4 = vmor %vm366_vm0, %vm367_vm1  ;;  %vm430_vm9 = vcmask 1041408  }
  0x2d   : > { %v6065_v43 = vld [vmem:[#allocation3 + $0x1c4] sm:$0xf0]  ;;  %1524 = vmatpush.bf16.msra.mxu0 %v4421_v29  ;;  %v4541_v47 = vor.u32 %v6049_v41, %v4540_v40  ;;  %v6015_v48 = vld [vmem:[#allocation3 + $0x34] sm:$0xf0]  ;;  %v4468_v49 = vld [vmem:[#allocation3 + $0xb0] sm:$0xf]  ;;  %s6776_s16 = scalar_lea.vmem %s7514_s0, %s5998_s12 }
  0x2e   : > { %1542 = vmatpush.bf16.msra.mxu1 %v4485_v33  ;;  %v6031_v50 = vld [vmem:[#allocation3 + $0xb4] sm:$0xf0]  ;;  %v4605_v51 = vor.u32 %v6065_v43, %v4604_v42  ;;  %v4532_v52 = vld [vmem:[#allocation3 + $0x130] sm:$0xf]  ;;  %v4396_v56 = vld [vmem:[#allocation3 + $0x20] sm:$0xf]  ;;  %v4405_v58 = vor.u32 %v6015_v48, %v4404_v45 }
  0x2f   : > { %1560 = vmatpush.bf16.msra.mxu2 %v4549_v34  ;;  %v6047_v53 = vld [vmem:[#allocation3 + $0x134] sm:$0xf0]  ;;  %v4596_v54 = vld [vmem:[#allocation3 + $0x1b0] sm:$0xf]  ;;  %v6013_v57 = vld [vmem:[#allocation3 + $0x24] sm:$0xf0]  ;;  %v4469_v62 = vor.u32 %v6031_v50, %v4468_v49 }
  0x30   : > { %1578 = vmatpush.bf16.msra.mxu3 %v4613_v38  ;;  %v6063_v55 = vld [vmem:[#allocation3 + $0x1b4] sm:$0xf0]  ;;  %v4460_v59 = vld [vmem:[#allocation3 + $0xa0] sm:$0xf]  ;;  %v6029_v60 = vld [vmem:[#allocation3 + $0xa4] sm:$0xf0]  ;;  %v4533_v63 = vor.u32 %v6047_v53, %v4532_v52  ;;  %v4397_v11 = vor.u32 %v6013_v57, %v4396_v56 }
  0x31   : > { %1525 = vmatpush.bf16.msra.mxu0 %v4413_v44  ;;  %v4524_v61 = vld [vmem:[#allocation3 + $0x120] sm:$0xf]  ;;  %v6045_v0 = vld [vmem:[#allocation3 + $0x124] sm:$0xf0]  ;;  %v4597_v3 = vor.u32 %v6063_v55, %v4596_v54  ;;  %v4388_v4 = vld [vmem:[#allocation3 + $0x10] sm:$0xf]  ;;  %v4461_v15 = vor.u32 %v6029_v60, %v4460_v59 }
  0x32   : > { %1543 = vmatpush.bf16.msra.mxu1 %v4477_v46  ;;  %v4588_v1 = vld [vmem:[#allocation3 + $0x1a0] sm:$0xf]  ;;  %v6061_v2 = vld [vmem:[#allocation3 + $0x1a4] sm:$0xf0]  ;;  %v6011_v5 = vld [vmem:[#allocation3 + $0x14] sm:$0xf0]  ;;  %v4525_v16 = vor.u32 %v6045_v0, %v4524_v61 }
  0x33   : > { %1561 = vmatpush.bf16.msra.mxu2 %v4541_v47  ;;  %v6755_v6 = vld [vmem:[#allocation3 + $0x90] sm:$0xf]  ;;  %v6757_v7 = vld [vmem:[#allocation3 + $0x94] sm:$0xf0]  ;;  %vm322_vm2 = vsmask.f32 3328  ;;  %v4589_v20 = vor.u32 %v6061_v2, %v4588_v1  ;;  %v4389_v24 = vor.u32 %v6011_v5, %v4388_v4 }
  0x34   : > { %1579 = vmatpush.bf16.msra.mxu3 %v4605_v51  ;;  %vm323_vm3 = vsmask.f32 7440  ;;  %v6759_v8 = vld [vmem:[#allocation3 + $0x110] sm:$0xf]  ;;  %v6761_v9 = vld [vmem:[#allocation3 + $0x114] sm:$0xf0]  ;;  %v4453_v25 = vor.u32 %v6757_v7, %v6755_v6 }
  0x35   : > { %v6763_v10 = vld [vmem:[#allocation3 + $0x190] sm:$0xf]  ;;  %1526 = vmatpush.bf16.msra.mxu0 %v4405_v58  ;;  %v6765_v12 = vld [vmem:[#allocation3 + $0x194] sm:$0xf0]  ;;  %v6767_v13 = vld [vmem:[#allocation3] sm:$0xf]  ;;  %v4517_v26 = vor.u32 %v6761_v9, %v6759_v8 }
  0x36   : > { %v6769_v14 = vld [vmem:[#allocation3 + $0x4] sm:$0xf0]  ;;  %1544 = vmatpush.bf16.msra.mxu1 %v4469_v62  ;;  %v6778_v17 = vld [vmem:[#allocation3 + $0x80] sm:$0xf]  ;;  %v313_v22 = vld [vmem:[%s6776_s16] sm:$0xf]  ;;  %v4581_v31 = vor.u32 %v6765_v12, %v6763_v10 }
  0x37   : > { %1562 = vmatpush.bf16.msra.mxu2 %v4533_v63  ;;  %v6780_v18 = vld [vmem:[#allocation3 + $0x84] sm:$0xf0]  ;;  %v6782_v19 = vld [vmem:[#allocation3 + $0x100] sm:$0xf]  ;;  %v314_v23 = vld [vmem:[%s6776_s16 + $0x4] sm:$0xf]  ;;  %v4381_v32 = vor.u32 %v6769_v14, %v6767_v13 }
  0x38   : > { %1580 = vmatpush.bf16.msra.mxu3 %v4597_v3  ;;  %v6784_v21 = vld [vmem:[#allocation3 + $0x104] sm:$0xf0]  ;;  %v6792_v27 = vld [vmem:[#allocation3 + $0x180] sm:$0xf]  ;;  %316 = vst [vmem:[#allocation2] sm:$0xf] %v313_v22  ;;  %v4445_v41 = vor.u32 %v6780_v18, %v6778_v17  ;;  %vm6829_vm5 = vmor %vm322_vm2, %vm323_vm3 }
  0x39   : > { %v6794_v28 = vld [vmem:[#allocation3 + $0x184] sm:$0xf0]  ;;  %v319_v29 = vld [vmem:[%s6776_s16] sm:$0xf]  ;;  %v320_v30 = vld [vmem:[%s6776_s16 + $0x4] sm:$0xf]  ;;  %1527 = vmatpush.bf16.msra.mxu0 %v4397_v11  ;;  %v4509_v42 = vor.u32 %v6784_v21, %v6782_v19 }
  0x3a   : > { %317 = vst [vmem:[#allocation2 + $0x24] sm:$0xf] %v314_v23  ;;  %v6803_v33 = vld [vmem:[%s6776_s16 + $0x8] sm:$0x3]  ;;  %v326_v34 = vshrl.u32 %v319_v29, 16  ;;  %v329_v35 = vshll.u32 %v319_v29, 16  ;;  %1545 = vmatpush.bf16.msra.mxu1 %v4461_v15  ;;  %v4573_v53 = vor.u32 %v6794_v28, %v6792_v27 }
  0x3b   : > { %1563 = vmatpush.bf16.msra.mxu2 %v4525_v16  ;;  %v335_v36 = vshll.u32 %v320_v30, 16  ;;  %v339_v37 = vshrl.u32 %v320_v30, 16  ;;  %v345_v38 = vshll.u32 %v6803_v33, 16  ;;  %v360_v39 = vld [vmem:[%s6776_s16] sm:$0xe]  ;;  %v349_v40 = vshrl.u32 %v6803_v33, 16 }
  0x3c   : > { %1581 = vmatpush.bf16.msra.mxu3 %v4589_v20  ;;  %v328_v43 = vrot.slane %v326_v34, 4  ;;  %v331_v44 = vrot.slane %v329_v35, 5  ;;  %v361_v45 = vld [vmem:[%s6776_s16 + $0x4] sm:$0xf]  ;;  %v362_v46 = vld [vmem:[%s6776_s16 + $0x8] sm:$0x3] }
  0x3d   : > { %v337_v47 = vrot.slane %v335_v36, 5  ;;  %v341_v48 = vrot.slane %v339_v37, 4  ;;  %v6814_v49 = vrot.slane %v345_v38, 5  ;;  %v4338_v51 = vrot.slane %v360_v39, 9  ;;  %v383_v52 = vld [vmem:[%s6776_s16] sm:$0xe]  ;;  %1528 = vmatpush.bf16.msra.mxu0 %v4389_v24 }
  0x3e   : > { %v332_v54 = vor.u32 %v331_v44, %v328_v43  ;;  %v371_v55 = vrot.slane %v361_v45, 5  ;;  %v374_v56 = vrot.slane %v362_v46, 5  ;;  %v384_v57 = vld [vmem:[%s6776_s16 + $0x4] sm:$0xf]  ;;  %v385_v58 = vld [vmem:[%s6776_s16 + $0x8] sm:$0x7]  ;;  %1546 = vmatpush.bf16.msra.mxu1 %v4453_v25 }
  0x3f   : > { %1564 = vmatpush.bf16.msra.mxu2 %v4517_v26  ;;  %v342_v60 = vor.u32 %v341_v48, %v337_v47  ;;  %vm386_vm6 = vsmask.f32 2304  ;;  %vm387_vm7 = vsmask.f32 6416  ;;  %v390_v61 = vshrl.u32 %v383_v52, 16  ;;  %s305_s19 = sand.u32 1, %s6623_s21  }
  0x40   : > { %1582 = vmatpush.bf16.msra.mxu3 %v4581_v31  ;;  %v4344_v62 = vld [vmem:[#allocation2] sm:$0xf]  ;;  %v333_v63 = vrot.slane %v332_v54, 4  ;;  %v372_v0 = vsel %vm6818_vm4, %v4338_v51, %v371_v55  ;;  %v373_v1 = vrot.slane %v371_v55, 4  ;;  %v393_v2 = vshll.u32 %v383_v52, 16  ;;  %vm6849_vm8 = vmor %vm386_vm6, %vm387_vm7  ;;  %s7138_s21 = smul.u32 192, %s305_s19 }
  0x41   : > { %v6003_v3 = vld [vmem:[#allocation2 + $0x20] sm:$0xf0]  ;;  %v343_v4 = vrot.slane %v342_v60, 4  ;;  %380 = vst [vmem:[#allocation2 + $0x8] sm:$0xf] %v372_v0  ;;  %v392_v5 = vrot.slane %v390_v61, 5  ;;  %1529 = vmatpush.bf16.msra.mxu0 %v4381_v32 }
  0x42   : > { %v6835_v6 = vor.u32 %v6003_v3, %v4344_v62  ;;  %v338_v7 = vsel %vm6829_vm5, %v333_v63, %v337_v47  ;;  %v375_v8 = vsel %vm6818_vm4, %v373_v1, %v374_v56  ;;  %v395_v9 = vrot.slane %v393_v2, 6  ;;  %v4820_v10 = vld [vmem:[#allocation3 + $0x370] sm:$0xf]  ;;  %v6119_v11 = vld [vmem:[#allocation3 + $0x374] sm:$0xf0]  ;;  %1547 = vmatpush.bf16.msra.mxu1 %v4445_v41  ;;  %s7154_s20 = scalar_lea.vmem [#allocation10], %s7138_s21 }
  0x43   : > { %1565 = vmatpush.bf16.msra.mxu2 %v4509_v42  ;;  %v348_v12 = vsel %vm6829_vm5, %v343_v4, %v6814_v49  ;;  %357 = vst [vmem:[#allocation2 + $0x4] sm:$0xf] %v338_v7  ;;  %v399_v13 = vshrl.u32 %v384_v57, 16  ;;  %v402_v14 = vshll.u32 %v384_v57, 16  ;;  %v409_v15 = vshrl.u32 %v385_v58, 16  ;;  %s6408_s14 = smul.u32 (%p6699_p4), 48, %s6687_s24 }
  0x44   : > { %1583 = vmatpush.bf16.msra.mxu3 %v4573_v53  ;;  %358 = vst [vmem:[#allocation2 + $0x28] sm:$0xf] %v348_v12  ;;  %v396_v16 = vor.u32 %v395_v9, %v392_v5  ;;  %v412_v17 = vshll.u32 %v385_v58, 16  ;;  %v4821_v18 = vor.u32 %v6119_v11, %v4820_v10  ;;  %v4692_v19 = vld [vmem:[#allocation3 + $0x270] sm:$0xf]  ;;  %v351_v20 = vrot.slane %v349_v40, 4  ;;  %1530 = vmatmul.bf16.vlgmr.msra.gmra.mxu0 %v6835_v6 }
  0x45   : > { %381 = vst [vmem:[#allocation2 + $0x2c] sm:$0xf] %v375_v8  ;;  %v401_v21 = vrot.slane %v399_v13, 5  ;;  %v404_v22 = vrot.slane %v402_v14, 6  ;;  %v411_v23 = vrot.slane %v409_v15, 5  ;;  %v6845_v24 = vrot.slane %v374_v56, 4  ;;  %s7456_s13 = scalar_lea.vmem (%p6699_p4), %s7520_s6, %s6408_s14 }
  0x46   : > { %v397_v26 = vrot.slane %v396_v16, 4  ;;  %v414_v27 = vrot.slane %v412_v17, 6  ;;  %v6087_v28 = vld [vmem:[#allocation3 + $0x274] sm:$0xf0]  ;;  %v4756_v29 = vld [vmem:[#allocation3 + $0x2f0] sm:$0xf]  ;;  %v352_v30 = vor.u32 %v351_v20, %v6814_v49 }
  0x47   : > { %1630 = vmatpush.bf16.msrb.mxu2 %v4821_v18  ;;  %v405_v31 = vor.u32 %v404_v22, %v401_v21  ;;  %v4693_v32 = vor.u32 %v6087_v28, %v4692_v19  ;;  %v6103_v33 = vld [vmem:[#allocation3 + $0x2f4] sm:$0xf0]  ;;  %v4884_v34 = vld [vmem:[#allocation3 + $0x3f0] sm:$0xf]  ;;  %v4812_v40 = vld [vmem:[#allocation3 + $0x360] sm:$0xf] }
  0x48   : > { %v6135_v35 = vld [vmem:[#allocation3 + $0x3f4] sm:$0xf0]  ;;  %v4352_v36 = vld [vmem:[#allocation2 + $0x8] sm:$0xf]  ;;  %v6854_v37 = vor.u32 %v414_v27, %v411_v23  ;;  %v4757_v38 = vor.u32 %v6103_v33, %v4756_v29  ;;  %v6117_v41 = vld [vmem:[#allocation3 + $0x364] sm:$0xf0] }
  0x49   : > { %v4885_v39 = vor.u32 %v6135_v35, %v4884_v34  ;;  %v406_v42 = vsel %vm6849_vm8, %v397_v26, %v405_v31  ;;  %v407_v43 = vrot.slane %v405_v31, 4  ;;  %1594 = vmatpush.bf16.msrb.mxu0 %v4693_v32  ;;  %v4813_v44 = vor.u32 %v6117_v41, %v4812_v40  ;;  %v4684_v45 = vld [vmem:[#allocation3 + $0x260] sm:$0xf]  ;;  %v6085_v46 = vld [vmem:[#allocation3 + $0x264] sm:$0xf0] }
  0x4a   : > { %v353_v47 = vrot.slane %v352_v30, 4  ;;  %v5999_v48 = vld [vmem:[#allocation2 + $0x4] sm:$0xf]  ;;  %421 = vst [vmem:[#allocation2 + $0xc] sm:$0xf] %v406_v42  ;;  %1612 = vmatpush.bf16.msrb.mxu1 %v4757_v38  ;;  %v4685_v49 = vor.u32 %v6085_v46, %v4684_v45  ;;  %v417_v25 = vrot.slane %v6854_v37, 4 }
  0x4b   : > { %1648 = vmatpush.bf16.msrb.mxu3 %v4885_v39  ;;  %v4748_v50 = vld [vmem:[#allocation3 + $0x2e0] sm:$0xf]  ;;  %v4346_v51 = vld [vmem:[#allocation2 + $0x24] sm:$0xf0]  ;;  %v416_v52 = vsel %vm6849_vm8, %v407_v43, %v6854_v37  ;;  %1631 = vmatpush.bf16.msrb.mxu2 %v4813_v44  ;;  %v6101_v53 = vld [vmem:[#allocation3 + $0x2e4] sm:$0xf0] }
  0x4c   : > { %v4876_v54 = vld [vmem:[#allocation3 + $0x3e0] sm:$0xf]  ;;  %v6861_v55 = vor.u32 %v5999_v48, %v4346_v51  ;;  %422 = vst [vmem:[#allocation2 + $0x30] sm:$0xf] %v416_v52  ;;  %v4749_v57 = vor.u32 %v6101_v53, %v4748_v50  ;;  %v6133_v58 = vld [vmem:[#allocation3 + $0x3e4] sm:$0xf0] }
  0x4d   : > { %v6004_v56 = vld [vmem:[#allocation2 + $0x28] sm:$0xf0]  ;;  %1595 = vmatpush.bf16.msrb.mxu0 %v4685_v49  ;;  %v4877_v60 = vor.u32 %v6133_v58, %v4876_v54  ;;  %v4804_v61 = vld [vmem:[#allocation3 + $0x350] sm:$0xf]  ;;  %v6115_v62 = vld [vmem:[#allocation3 + $0x354] sm:$0xf0] }
  0x4e   : > { %v6863_v59 = vor.u32 %v6004_v56, %v4352_v36  ;;  %v4676_v63 = vld [vmem:[#allocation3 + $0x250] sm:$0xf]  ;;  %1548 = vmatmul.bf16.vlgmr.msra.gmra.mxu1 %v6861_v55  ;;  %v4805_v0 = vor.u32 %v6115_v62, %v4804_v61  ;;  %v6083_v1 = vld [vmem:[#allocation3 + $0x254] sm:$0xf0]  ;;  %v4796_v9 = vld [vmem:[#allocation3 + $0x340] sm:$0xf] }
  0x4f   : > { %v4740_v2 = vld [vmem:[#allocation3 + $0x2d0] sm:$0xf]  ;;  %v6099_v3 = vld [vmem:[#allocation3 + $0x2d4] sm:$0xf0]  ;;  %1613 = vmatpush.bf16.msrb.mxu1 %v4749_v57  ;;  %v4677_v4 = vor.u32 %v6083_v1, %v4676_v63  ;;  %1649 = vmatpush.bf16.msrb.mxu3 %v4877_v60  ;;  %v6113_v11 = vld [vmem:[#allocation3 + $0x344] sm:$0xf0] }
  0x50   : > { %1566 = vmatmul.bf16.vlgmr.msra.gmra.mxu2 %v6863_v59  ;;  %v4741_v5 = vor.u32 %v6099_v3, %v4740_v2  ;;  %v4868_v7 = vld [vmem:[#allocation3 + $0x3d0] sm:$0xf]  ;;  %v6131_v8 = vld [vmem:[#allocation3 + $0x3d4] sm:$0xf0]  ;;  %v4668_v12 = vld [vmem:[#allocation3 + $0x240] sm:$0xf]  ;;  %v4797_v15 = vor.u32 %v6113_v11, %v4796_v9 }
  0x51   : > { %1632 = vmatpush.bf16.msrb.mxu2 %v4805_v0  ;;  %v4869_v10 = vor.u32 %v6131_v8, %v4868_v7  ;;  %v6081_v13 = vld [vmem:[#allocation3 + $0x244] sm:$0xf0]  ;;  %v6000_v14 = vld [vmem:[#allocation2 + $0xc] sm:$0xf]  ;;  %1596 = vmatpush.bf16.msrb.mxu0 %v4677_v4  ;;  %v315_v21 = vld [vmem:[%s6776_s16 + $0x8] sm:$0x1] }
  0x52   : > { %v4669_v16 = vor.u32 %v6081_v13, %v4668_v12  ;;  %v4732_v17 = vld [vmem:[#allocation3 + $0x2c0] sm:$0xf]  ;;  %v6097_v18 = vld [vmem:[#allocation3 + $0x2c4] sm:$0xf0]  ;;  %318 = vst [vmem:[#allocation2 + $0x48] sm:$0x1] %v315_v21 }
  0x53   : > { %v4860_v19 = vld [vmem:[#allocation3 + $0x3c0] sm:$0xf]  ;;  %v6129_v20 = vld [vmem:[#allocation3 + $0x3c4] sm:$0xf0]  ;;  %v4354_v22 = vld [vmem:[#allocation2 + $0x2c] sm:$0xf0]  ;;  %1614 = vmatpush.bf16.msrb.mxu1 %v4741_v5  ;;  %v4733_v23 = vor.u32 %v6097_v18, %v4732_v17  ;;  %1650 = vmatpush.bf16.msrb.mxu3 %v4869_v10 }
  0x54   : > { %v6869_v26 = vor.u32 %v6000_v14, %v4354_v22  ;;  %v4861_v27 = vor.u32 %v6129_v20, %v4860_v19  ;;  %359 = vst [vmem:[#allocation2 + $0x4c] sm:$0x1] %v353_v47  ;;  %v4788_v28 = vld [vmem:[#allocation3 + $0x330] sm:$0xf]  ;;  %v6111_v29 = vld [vmem:[#allocation3 + $0x334] sm:$0xf0] }
  0x55   : > { %1633 = vmatpush.bf16.msrb.mxu2 %v4797_v15  ;;  %1597 = vmatpush.bf16.msrb.mxu0 %v4669_v16  ;;  %382 = vst [vmem:[#allocation2 + $0x50] sm:$0x1] %v6845_v24  ;;  %v4789_v30 = vor.u32 %v6111_v29, %v4788_v28  ;;  %v4660_v31 = vld [vmem:[#allocation3 + $0x230] sm:$0xf]  ;;  %v6079_v32 = vld [vmem:[#allocation3 + $0x234] sm:$0xf0] }
  0x56   : > { %1584 = vmatmul.bf16.vlgmr.msra.gmra.mxu3 %v6869_v26  ;;  %423 = vst [vmem:[#allocation2 + $0x54] sm:$0x1] %v417_v25  ;;  %v4661_v33 = vor.u32 %v6079_v32, %v4660_v31  ;;  %v4724_v34 = vld [vmem:[#allocation3 + $0x2b0] sm:$0xf]  ;;  %v6095_v35 = vld [vmem:[#allocation3 + $0x2b4] sm:$0xf0] }
  0x57   : > { %1615 = vmatpush.bf16.msrb.mxu1 %v4733_v23  ;;  %v4725_v36 = vor.u32 %v6095_v35, %v4724_v34  ;;  %v4852_v37 = vld [vmem:[#allocation3 + $0x3b0] sm:$0xf]  ;;  %v6127_v38 = vld [vmem:[#allocation3 + $0x3b4] sm:$0xf0]  ;;  %v4780_v39 = vld [vmem:[#allocation3 + $0x320] sm:$0xf]  ;;  %1651 = vmatpush.bf16.msrb.mxu3 %v4861_v27 }
  0x58   : > { %v4853_v40 = vor.u32 %v6127_v38, %v4852_v37  ;;  %v6109_v41 = vld [vmem:[#allocation3 + $0x324] sm:$0xf0]  ;;  %v4652_v24 = vld [vmem:[#allocation3 + $0x220] sm:$0xf]  ;;  %v4772_v49 = vld [vmem:[#allocation3 + $0x310] sm:$0xf] }
  0x59   : > { %1634 = vmatpush.bf16.msrb.mxu2 %v4789_v30  ;;  %v6077_v42 = vld [vmem:[#allocation3 + $0x224] sm:$0xf0]  ;;  %1598 = vmatpush.bf16.msrb.mxu0 %v4661_v33  ;;  %v4781_v43 = vor.u32 %v6109_v41, %v4780_v39  ;;  %v4716_v45 = vld [vmem:[#allocation3 + $0x2a0] sm:$0xf]  ;;  %v6107_v50 = vld [vmem:[#allocation3 + $0x314] sm:$0xf0] }
  0x5a   : > { %v4653_v44 = vor.u32 %v6077_v42, %v4652_v24  ;;  %v6093_v46 = vld [vmem:[#allocation3 + $0x2a4] sm:$0xf0]  ;;  %v4844_v47 = vld [vmem:[#allocation3 + $0x3a0] sm:$0xf]  ;;  %v4644_v53 = vld [vmem:[#allocation3 + $0x210] sm:$0xf]  ;;  %v4773_v0 = vor.u32 %v6107_v50, %v4772_v49 }
  0x5b   : > { %v6125_v48 = vld [vmem:[#allocation3 + $0x3a4] sm:$0xf0]  ;;  %v567_v51 = vld [vmem:[#allocation2 + $0x48] sm:$0x11]  ;;  %1616 = vmatpush.bf16.msrb.mxu1 %v4725_v36  ;;  %v4717_v52 = vor.u32 %v6093_v46, %v4716_v45  ;;  %v6075_v54 = vld [vmem:[#allocation3 + $0x214] sm:$0xf0]  ;;  %1652 = vmatpush.bf16.msrb.mxu3 %v4853_v40 }
  0x5c   : > { %v757_v56 = vunpack.c.l.b16 %v567_v51  ;;  %v758_v57 = vunpack.c.h.b16 %v567_v51  ;;  %v4708_v58 = vld [vmem:[#allocation3 + $0x290] sm:$0xf]  ;;  %v6091_v60 = vld [vmem:[#allocation3 + $0x294] sm:$0xf0]  ;;  %v4845_v63 = vor.u32 %v6125_v48, %v4844_v47  ;;  %v4645_v1 = vor.u32 %v6075_v54, %v4644_v53  ;;  %v4764_v3 = vld [vmem:[#allocation3 + $0x300] sm:$0xf] }
  0x5d   : > { %1635 = vmatpush.bf16.msrb.mxu2 %v4781_v43  ;;  %v4836_v61 = vld [vmem:[#allocation3 + $0x390] sm:$0xf]  ;;  %v568_v62 = vld [vmem:[#allocation2 + $0x50] sm:$0x11]  ;;  %1599 = vmatpush.bf16.msrb.mxu0 %v4653_v44  ;;  %v6123_v2 = vld [vmem:[#allocation3 + $0x394] sm:$0xf0]  ;;  %v4709_v12 = vor.u32 %v6091_v60, %v4708_v58 }
  0x5e   : > { %v6873_v4 = vpack.c.b16 %v757_v56, %v757_v56  ;;  %v6875_v5 = vpack.c.b16 %v758_v57, %v758_v57  ;;  %v759_v7 = vunpack.c.l.b16 %v568_v62  ;;  %v760_v8 = vunpack.c.h.b16 %v568_v62  ;;  %v6105_v9 = vld [vmem:[#allocation3 + $0x304] sm:$0xf0]  ;;  %v4636_v10 = vld [vmem:[#allocation3 + $0x200] sm:$0xf]  ;;  %v424_v20 = vld [vmem:[%s6776_s16] sm:$0xc] }
  0x5f   : > { %v6073_v11 = vld [vmem:[#allocation3 + $0x204] sm:$0xf0]  ;;  %1617 = vmatpush.bf16.msrb.mxu1 %v4717_v52  ;;  %v4700_v13 = vld [vmem:[#allocation3 + $0x280] sm:$0xf]  ;;  %v4837_v17 = vor.u32 %v6123_v2, %v4836_v61  ;;  %v4765_v18 = vor.u32 %v6105_v9, %v4764_v3  ;;  %v425_v21 = vld [vmem:[%s6776_s16 + $0x4] sm:$0xf]  ;;  %1653 = vmatpush.bf16.msrb.mxu3 %v4845_v63 }
  0x60   : > { %v6089_v14 = vld [vmem:[#allocation3 + $0x284] sm:$0xf0]  ;;  %v4828_v15 = vld [vmem:[#allocation3 + $0x380] sm:$0xf]  ;;  %1535 = vmatmul.bf16.gmra.mxu0 %v6873_v4  ;;  %1553 = vmatmul.bf16.gmra.mxu1 %v6875_v5  ;;  %v6879_v16 = vpack.c.b16 %v759_v7, %v759_v7  ;;  %v4637_v22 = vor.u32 %v6073_v11, %v4636_v10  ;;  %v6884_v23 = vld [vmem:[%s6776_s16 + $0x8] sm:$0x7]  ;;  %v6887_v28 = vpack.c.b16 %v760_v8, %v760_v8 }
  0x61   : > { %v6121_v19 = vld [vmem:[#allocation3 + $0x384] sm:$0xf0]  ;;  %1636 = vmatpush.bf16.msrb.mxu2 %v4773_v0  ;;  %vm431_vm10 = vcmask 1045508   ;;  %v4339_v25 = vrot.slane %v424_v20, 10  ;;  %v435_v27 = vrot.slane %v425_v21, 6  ;;  %1600 = vmatpush.bf16.msrb.mxu0 %v4645_v1  ;;  %v4701_v29 = vor.u32 %v6089_v14, %v4700_v13 }
  0x62   : > { %1571 = vmatmul.bf16.gmra.mxu2 %v6879_v16  ;;  %vm6890_vm11 = vmor %vm430_vm9, %vm431_vm10  ;;  %v438_v31 = vrot.slane %v6884_v23, 6  ;;  %v447_v32 = vld [vmem:[%s6776_s16] sm:$0xc]  ;;  %v448_v33 = vld [vmem:[%s6776_s16 + $0x4] sm:$0xf]  ;;  %vm494_vm12 = vcmask 1040384   ;;  %v4829_v38 = vor.u32 %v6121_v19, %v4828_v15 }
  0x63   : > { %1618 = vmatpush.bf16.msrb.mxu1 %v4709_v12  ;;  %v436_v34 = vsel %vm6890_vm11, %v4339_v25, %v435_v27  ;;  %v437_v35 = vrot.slane %v435_v27, 4  ;;  %v449_v36 = vld [vmem:[%s6776_s16 + $0x8] sm:$0xf]  ;;  %vm450_vm13 = vsmask.f32 1280  ;;  %v454_v37 = vshrl.u32 %v447_v32, 16  ;;  %1654 = vmatpush.bf16.msrb.mxu3 %v4837_v17 }
  0x64   : > { %444 = vst [vmem:[#allocation2 + $0x10] sm:$0xf] %v436_v34  ;;  %vm451_vm14 = vsmask.f32 5392  ;;  %v457_v39 = vshll.u32 %v447_v32, 16  ;;  %v463_v40 = vshrl.u32 %v448_v33, 16 }
  0x65   : > { %1637 = vmatpush.bf16.msrb.mxu2 %v4765_v18  ;;  %v439_v41 = vsel %vm6890_vm11, %v437_v35, %v438_v31  ;;  %v456_v24 = vrot.slane %v454_v37, 6  ;;  %v466_v42 = vshll.u32 %v448_v33, 16  ;;  %v473_v43 = vshrl.u32 %v449_v36, 16  ;;  %v488_v44 = vld [vmem:[%s6776_s16] sm:$0x8]  ;;  %1601 = vmatpush.bf16.msrb.mxu0 %v4637_v22  ;;  %vm6916_vm1 = vmor %vm450_vm13, %vm451_vm14 }
  0x66   : > { %1589 = vmatmul.bf16.gmra.mxu3 %v6887_v28  ;;  %445 = vst [vmem:[#allocation2 + $0x34] sm:$0xf] %v439_v41  ;;  %v459_v45 = vrot.slane %v457_v39, 7  ;;  %v465_v46 = vrot.slane %v463_v40, 6  ;;  %v476_v47 = vshll.u32 %v449_v36, 16  ;;  %vm495_vm15 = vcmask 1044484  }
  0x67   : > { %1619 = vmatpush.bf16.msrb.mxu1 %v4701_v29  ;;  %v468_v48 = vrot.slane %v466_v42, 7  ;;  %v475_v49 = vrot.slane %v473_v43, 6  ;;  %v489_v50 = vld [vmem:[%s6776_s16 + $0x4] sm:$0xf]  ;;  %v490_v51 = vld [vmem:[%s6776_s16 + $0x8] sm:$0xf]  ;;  %vm6909_vm0 = vmor %vm494_vm12, %vm495_vm15  ;;  %1655 = vmatpush.bf16.msrb.mxu3 %v4829_v38 }
  0x68   : > { %v460_v53 = vor.u32 %v459_v45, %v456_v24  ;;  %v478_v54 = vrot.slane %v476_v47, 7  ;;  %v4340_v56 = vrot.slane %v488_v44, 11  ;;  %v499_v57 = vrot.slane %v489_v50, 7  ;;  %v511_v58 = vld [vmem:[%s6776_s16] sm:$0x8] }
  0x69   : > { %v469_v61 = vor.u32 %v468_v48, %v465_v46  ;;  %v502_v62 = vrot.slane %v490_v51, 7  ;;  %v512_v63 = vld [vmem:[%s6776_s16 + $0x4] sm:$0xf]  ;;  %v513_v0 = vld [vmem:[%s6776_s16 + $0x8] sm:$0xf]  ;;  %v519_v1 = vshrl.u32 %v511_v58, 16 }
  0x6a   : > { %v461_v2 = vrot.slane %v460_v53, 4  ;;  %v6922_v3 = vor.u32 %v478_v54, %v475_v49  ;;  %v500_v7 = vsel %vm6909_vm0, %v4340_v56, %v499_v57  ;;  %v501_v8 = vrot.slane %v499_v57, 4  ;;  %v6038_v9 = vld [vmem:[#allocation3 + $0xf4] sm:$0xf]  ;;  %v4502_v10 = vld [vmem:[#allocation3 + $0xf8] sm:$0xf0] }
  0x6b   : > { %v4360_v11 = vld [vmem:[#allocation2 + $0x10] sm:$0xf]  ;;  %v471_v12 = vrot.slane %v469_v61, 4  ;;  %508 = vst [vmem:[#allocation2 + $0x18] sm:$0xf] %v500_v7  ;;  %v4341_v13 = vrot.slane %v519_v1, 11  ;;  %v4505_v14 = vor.u32 %v6038_v9, %v4502_v10 }
  0x6c   : > { %v470_v15 = vsel %vm6916_vm1, %v461_v2, %v469_v61  ;;  %v503_v17 = vsel %vm6909_vm0, %v501_v8, %v502_v62  ;;  %vm515_vm2 = vsmask.f32 256  ;;  %vm516_vm3 = vsmask.f32 4368  ;;  %v4948_v18 = vld [vmem:[#allocation3 + $0x470] sm:$0xf] }
  0x6d   : > { %v6005_v19 = vld [vmem:[#allocation2 + $0x30] sm:$0xf0]  ;;  %v480_v20 = vsel %vm6916_vm1, %v471_v12, %v6922_v3  ;;  %485 = vst [vmem:[#allocation2 + $0x14] sm:$0xf] %v470_v15  ;;  %v524_v21 = vshrl.u32 %v512_v63, 16  ;;  %v527_v22 = vshll.u32 %v512_v63, 16  ;;  %1702 = vmatpush.bf16.msra.mxu2 %v4505_v14  ;;  %vm6942_vm4 = vmor %vm515_vm2, %vm516_vm3 }
  0x6e   : > { %v6933_v25 = vor.u32 %v6005_v19, %v4360_v11  ;;  %486 = vst [vmem:[#allocation2 + $0x38] sm:$0xf] %v480_v20  ;;  %v533_v27 = vshrl.u32 %v513_v0, 16  ;;  %v536_v29 = vshll.u32 %v513_v0, 16  ;;  %v6151_v30 = vld [vmem:[#allocation3 + $0x474] sm:$0xf0] }
  0x6f   : > { %509 = vst [vmem:[#allocation2 + $0x3c] sm:$0xf] %v503_v17  ;;  %v526_v32 = vrot.slane %v524_v21, 7  ;;  %v4949_v33 = vor.u32 %v6151_v30, %v4948_v18  ;;  %v6022_v34 = vld [vmem:[#allocation3 + $0x74] sm:$0xf]  ;;  %v6937_v35 = vrot.slane %v438_v31, 4 }
  0x70   : > { %1602 = vmatmul.bf16.vlgmr.msrb.gmra.mxu0 %v6933_v25  ;;  %v6946_v37 = vrot.slane %v533_v27, 7  ;;  %v4438_v38 = vld [vmem:[#allocation3 + $0x78] sm:$0xf0]  ;;  %v6054_v39 = vld [vmem:[#allocation3 + $0x174] sm:$0xf]  ;;  %v481_v40 = vrot.slane %v6922_v3, 4 }
  0x71   : > { %v529_v41 = vor.u32 %v527_v22, %v526_v32  ;;  %v531_v24 = vrot.slane %v526_v32, 4  ;;  %1666 = vmatpush.bf16.msra.mxu0 %v4949_v33  ;;  %v4441_v23 = vor.u32 %v6022_v34, %v4438_v38  ;;  %v4566_v31 = vld [vmem:[#allocation3 + $0x178] sm:$0xf0]  ;;  %v6036_v42 = vld [vmem:[#allocation3 + $0xe4] sm:$0xf]  ;;  %v6949_v43 = vrot.slane %v502_v62, 4 }
  0x72   : > { %v4368_v44 = vld [vmem:[#allocation2 + $0x18] sm:$0xf]  ;;  %v538_v45 = vor.u32 %v536_v29, %v6946_v37  ;;  %v4569_v46 = vor.u32 %v6054_v39, %v4566_v31  ;;  %v4940_v48 = vld [vmem:[#allocation3 + $0x460] sm:$0xf]  ;;  %v6149_v51 = vld [vmem:[#allocation3 + $0x464] sm:$0xf0] }
  0x73   : > { %v4494_v47 = vld [vmem:[#allocation3 + $0xe8] sm:$0xf0]  ;;  %v530_v49 = vsel %vm6942_vm4, %v4341_v13, %v529_v41  ;;  %1684 = vmatpush.bf16.msra.mxu1 %v4441_v23  ;;  %v6020_v52 = vld [vmem:[#allocation3 + $0x64] sm:$0xf]  ;;  %v4941_v57 = vor.u32 %v6149_v51, %v4940_v48  ;;  %v6034_v2 = vld [vmem:[#allocation3 + $0xd4] sm:$0xf] }
  0x74   : > { %v4497_v50 = vor.u32 %v6036_v42, %v4494_v47  ;;  %v4430_v53 = vld [vmem:[#allocation3 + $0x68] sm:$0xf0]  ;;  %v6001_v54 = vld [vmem:[#allocation2 + $0x14] sm:$0xf]  ;;  %v539_v56 = vsel %vm6942_vm4, %v531_v24, %v538_v45  ;;  %548 = vst [vmem:[#allocation2 + $0x1c] sm:$0xf] %v530_v49  ;;  %1720 = vmatpush.bf16.msra.mxu3 %v4569_v46 }
  0x75   : > { %v4433_v58 = vor.u32 %v6020_v52, %v4430_v53  ;;  %v6052_v60 = vld [vmem:[#allocation3 + $0x164] sm:$0xf]  ;;  %v4362_v61 = vld [vmem:[#allocation2 + $0x34] sm:$0xf0]  ;;  %549 = vst [vmem:[#allocation2 + $0x40] sm:$0xf] %v539_v56  ;;  %1667 = vmatpush.bf16.msra.mxu0 %v4941_v57 }
  0x76   : > { %1703 = vmatpush.bf16.msra.mxu2 %v4497_v50  ;;  %v4558_v62 = vld [vmem:[#allocation3 + $0x168] sm:$0xf0]  ;;  %v6956_v63 = vor.u32 %v6001_v54, %v4362_v61  ;;  %v6006_v0 = vld [vmem:[#allocation2 + $0x38] sm:$0xf0]  ;;  %v4486_v7 = vld [vmem:[#allocation3 + $0xd8] sm:$0xf0] }
  0x77   : > { %v4561_v1 = vor.u32 %v6052_v60, %v4558_v62  ;;  %v6958_v8 = vor.u32 %v6006_v0, %v4368_v44  ;;  %1685 = vmatpush.bf16.msra.mxu1 %v4433_v58  ;;  %v4489_v9 = vor.u32 %v6034_v2, %v4486_v7  ;;  %v4932_v10 = vld [vmem:[#allocation3 + $0x450] sm:$0xf]  ;;  %v6147_v11 = vld [vmem:[#allocation3 + $0x454] sm:$0xf0]  ;;  %v6018_v12 = vld [vmem:[#allocation3 + $0x54] sm:$0xf] }
  0x78   : > { %1620 = vmatmul.bf16.vlgmr.msrb.gmra.mxu1 %v6956_v63  ;;  %v4933_v13 = vor.u32 %v6147_v11, %v4932_v10  ;;  %v4422_v14 = vld [vmem:[#allocation3 + $0x58] sm:$0xf0]  ;;  %v6050_v15 = vld [vmem:[#allocation3 + $0x154] sm:$0xf]  ;;  %v6032_v20 = vld [vmem:[#allocation3 + $0xc4] sm:$0xf] }
  0x79   : > { %1721 = vmatpush.bf16.msra.mxu3 %v4561_v1  ;;  %v4550_v17 = vld [vmem:[#allocation3 + $0x158] sm:$0xf0]  ;;  %1638 = vmatmul.bf16.vlgmr.msrb.gmra.mxu2 %v6958_v8  ;;  %v4425_v18 = vor.u32 %v6018_v12, %v4422_v14  ;;  %v4478_v21 = vld [vmem:[#allocation3 + $0xc8] sm:$0xf0]  ;;  %v4924_v22 = vld [vmem:[#allocation3 + $0x440] sm:$0xf] }
  0x7a   : > { %v4553_v19 = vor.u32 %v6050_v15, %v4550_v17  ;;  %1704 = vmatpush.bf16.msra.mxu2 %v4489_v9  ;;  %1668 = vmatpush.bf16.msra.mxu0 %v4933_v13  ;;  %v4481_v27 = vor.u32 %v6032_v20, %v4478_v21  ;;  %v6145_v29 = vld [vmem:[#allocation3 + $0x444] sm:$0xf0]  ;;  %v6016_v30 = vld [vmem:[#allocation3 + $0x44] sm:$0xf]  ;;  %v4414_v32 = vld [vmem:[#allocation3 + $0x48] sm:$0xf0] }
  0x7b   : > { %v6002_v33 = vld [vmem:[#allocation2 + $0x1c] sm:$0xf]  ;;  %1686 = vmatpush.bf16.msra.mxu1 %v4425_v18  ;;  %v4925_v34 = vor.u32 %v6145_v29, %v4924_v22  ;;  %v4417_v38 = vor.u32 %v6016_v30, %v4414_v32  ;;  %v6048_v39 = vld [vmem:[#allocation3 + $0x144] sm:$0xf]  ;;  %v4542_v41 = vld [vmem:[#allocation3 + $0x148] sm:$0xf0] }
  0x7c   : > { %v4370_v24 = vld [vmem:[#allocation2 + $0x3c] sm:$0xf0]  ;;  %v4545_v23 = vor.u32 %v6048_v39, %v4542_v41  ;;  %446 = vst [vmem:[#allocation2 + $0x58] sm:$0x1] %v6937_v35  ;;  %v514_v31 = vld [vmem:[%s6776_s16 + $0xc] sm:$0x1] }
  0x7d   : > { %1722 = vmatpush.bf16.msra.mxu3 %v4553_v19  ;;  %v6964_v42 = vor.u32 %v6002_v33, %v4370_v24  ;;  %487 = vst [vmem:[#allocation2 + $0x5c] sm:$0x1] %v481_v40  ;;  %v540_v44 = vrot.slane %v6946_v37, 4  ;;  %v542_v45 = vshll.u32 %v514_v31, 16  ;;  %v6030_v46 = vld [vmem:[#allocation3 + $0xb4] sm:$0xf] }
  0x7e   : > { %1705 = vmatpush.bf16.msra.mxu2 %v4481_v27  ;;  %1669 = vmatpush.bf16.msra.mxu0 %v4925_v34  ;;  %510 = vst [vmem:[#allocation2 + $0x60] sm:$0x1] %v6949_v43  ;;  %v4470_v47 = vld [vmem:[#allocation3 + $0xb8] sm:$0xf0]  ;;  %v4916_v48 = vld [vmem:[#allocation3 + $0x430] sm:$0xf] }
  0x7f   : > { %1656 = vmatmul.bf16.vlgmr.msrb.gmra.mxu3 %v6964_v42  ;;  %1687 = vmatpush.bf16.msra.mxu1 %v4417_v38  ;;  %v544_v35 = vsel %vm6942_vm4, %v540_v44, %v542_v45  ;;  %v4473_v49 = vor.u32 %v6030_v46, %v4470_v47  ;;  %v6143_v50 = vld [vmem:[#allocation3 + $0x434] sm:$0xf0]  ;;  %v6014_v3 = vld [vmem:[#allocation3 + $0x34] sm:$0xf]  ;;  %v4406_v40 = vld [vmem:[#allocation3 + $0x38] sm:$0xf0] }
  0x80   : > { %550 = vst [vmem:[#allocation2 + $0x64] sm:$0x1] %v544_v35  ;;  %v4917_v37 = vor.u32 %v6143_v50, %v4916_v48  ;;  %v4409_v51 = vor.u32 %v6014_v3, %v4406_v40  ;;  %v6046_v52 = vld [vmem:[#allocation3 + $0x134] sm:$0xf]  ;;  %v4534_v53 = vld [vmem:[#allocation3 + $0x138] sm:$0xf0] }
  0x81   : > { %1723 = vmatpush.bf16.msra.mxu3 %v4545_v23  ;;  %v4537_v54 = vor.u32 %v6046_v52, %v4534_v53  ;;  %v6028_v43 = vld [vmem:[#allocation3 + $0xa4] sm:$0xf]  ;;  %v4462_v56 = vld [vmem:[#allocation3 + $0xa8] sm:$0xf0]  ;;  %v4908_v57 = vld [vmem:[#allocation3 + $0x420] sm:$0xf] }
  0x82   : > { %1706 = vmatpush.bf16.msra.mxu2 %v4473_v49  ;;  %1670 = vmatpush.bf16.msra.mxu0 %v4917_v37  ;;  %v4465_v58 = vor.u32 %v6028_v43, %v4462_v56  ;;  %v6141_v60 = vld [vmem:[#allocation3 + $0x424] sm:$0xf0]  ;;  %v6012_v36 = vld [vmem:[#allocation3 + $0x24] sm:$0xf]  ;;  %v4398_v61 = vld [vmem:[#allocation3 + $0x28] sm:$0xf0] }
  0x83   : > { %1688 = vmatpush.bf16.msra.mxu1 %v4409_v51  ;;  %v4909_v62 = vor.u32 %v6141_v60, %v4908_v57  ;;  %v4401_v0 = vor.u32 %v6012_v36, %v4398_v61  ;;  %v6044_v1 = vld [vmem:[#allocation3 + $0x124] sm:$0xf]  ;;  %v4526_v2 = vld [vmem:[#allocation3 + $0x128] sm:$0xf0]  ;;  %v6026_v7 = vld [vmem:[#allocation3 + $0x94] sm:$0xf] }
  0x84   : > { %v569_v9 = vld [vmem:[#allocation2 + $0x58] sm:$0x11]  ;;  %v4529_v10 = vor.u32 %v6044_v1, %v4526_v2  ;;  %v4454_v11 = vld [vmem:[#allocation3 + $0x98] sm:$0xf0]  ;;  %v6139_v15 = vld [vmem:[#allocation3 + $0x414] sm:$0xf0] }
  0x85   : > { %1724 = vmatpush.bf16.msra.mxu3 %v4537_v54  ;;  %v4900_v12 = vld [vmem:[#allocation3 + $0x410] sm:$0xf]  ;;  %v761_v13 = vunpack.c.l.b16 %v569_v9  ;;  %v762_v14 = vunpack.c.h.b16 %v569_v9  ;;  %v6010_v17 = vld [vmem:[#allocation3 + $0x14] sm:$0xf]  ;;  %v4390_v18 = vld [vmem:[#allocation3 + $0x18] sm:$0xf0]  ;;  %v4457_v19 = vor.u32 %v6026_v7, %v4454_v11 }
  0x86   : > { %1707 = vmatpush.bf16.msra.mxu2 %v4465_v58  ;;  %1671 = vmatpush.bf16.msra.mxu0 %v4909_v62  ;;  %v4901_v20 = vor.u32 %v6139_v15, %v4900_v12  ;;  %v6042_v21 = vld [vmem:[#allocation3 + $0x114] sm:$0xf]  ;;  %v4518_v22 = vld [vmem:[#allocation3 + $0x118] sm:$0xf0]  ;;  %v6024_v27 = vld [vmem:[#allocation3 + $0x84] sm:$0xf]  ;;  %v4393_v33 = vor.u32 %v6010_v17, %v4390_v18 }
  0x87   : > { %v6973_v29 = vpack.c.b16 %v761_v13, %v761_v13  ;;  %v6975_v30 = vpack.c.b16 %v762_v14, %v762_v14  ;;  %v570_v32 = vld [vmem:[#allocation2 + $0x60] sm:$0x11]  ;;  %1689 = vmatpush.bf16.msra.mxu1 %v4401_v0  ;;  %v4446_v34 = vld [vmem:[#allocation3 + $0x88] sm:$0xf0]  ;;  %v4892_v38 = vld [vmem:[#allocation3 + $0x400] sm:$0xf]  ;;  %v4521_v24 = vor.u32 %v6042_v21, %v4518_v22 }
  0x88   : > { %v763_v39 = vunpack.c.l.b16 %v570_v32  ;;  %v764_v41 = vunpack.c.h.b16 %v570_v32  ;;  %v6137_v23 = vld [vmem:[#allocation3 + $0x404] sm:$0xf0]  ;;  %v6008_v31 = vld [vmem:[#allocation3 + $0x4] sm:$0xf]  ;;  %v4382_v44 = vld [vmem:[#allocation3 + $0x8] sm:$0xf0]  ;;  %v4449_v35 = vor.u32 %v6024_v27, %v4446_v34 }
  0x89   : > { %1725 = vmatpush.bf16.msra.mxu3 %v4529_v10  ;;  %1607 = vmatmul.bf16.gmra.mxu0 %v6973_v29  ;;  %v6040_v45 = vld [vmem:[#allocation3 + $0x104] sm:$0xf]  ;;  %v4510_v46 = vld [vmem:[#allocation3 + $0x108] sm:$0xf0]  ;;  %v551_v47 = vld [vmem:[%s6776_s16 + $0x4] sm:$0xf]  ;;  %v4893_v49 = vor.u32 %v6137_v23, %v4892_v38  ;;  %v4385_v37 = vor.u32 %v6008_v31, %v4382_v44 }
  0x8a   : > { %1625 = vmatmul.bf16.gmra.mxu1 %v6975_v30  ;;  %v6980_v48 = vpack.c.b16 %v763_v39, %v763_v39  ;;  %1708 = vmatpush.bf16.msra.mxu2 %v4457_v19  ;;  %v552_v50 = vld [vmem:[%s6776_s16 + $0x8] sm:$0xf]  ;;  %554 = vst [vmem:[#allocation2 + $0x20] sm:$0xf] %v551_v47  ;;  %v6102_v3 = vld [vmem:[#allocation3 + $0x2f4] sm:$0xf]  ;;  %v6983_v40 = vpack.c.b16 %v764_v41, %v764_v41 }
  0x8b   : > { %1672 = vmatpush.bf16.msra.mxu0 %v4901_v20  ;;  %1690 = vmatpush.bf16.msra.mxu1 %v4393_v33  ;;  %555 = vst [vmem:[#allocation2 + $0x44] sm:$0xf] %v552_v50  ;;  %v4758_v51 = vld [vmem:[#allocation3 + $0x2f8] sm:$0xf0]  ;;  %v6070_v52 = vld [vmem:[#allocation3 + $0x1f4] sm:$0xf]  ;;  %v4513_v53 = vor.u32 %v6040_v45, %v4510_v46 }
  0x8c   : > { %1643 = vmatmul.bf16.gmra.mxu2 %v6980_v48  ;;  %v4761_v54 = vor.u32 %v6102_v3, %v4758_v51  ;;  %v4630_v43 = vld [vmem:[#allocation3 + $0x1f8] sm:$0xf0]  ;;  %v6086_v56 = vld [vmem:[#allocation3 + $0x274] sm:$0xf]  ;;  %v6100_v62 = vld [vmem:[#allocation3 + $0x2e4] sm:$0xf] }
  0x8d   : > { %1726 = vmatpush.bf16.msra.mxu3 %v4521_v24  ;;  %v4694_v57 = vld [vmem:[#allocation3 + $0x278] sm:$0xf0]  ;;  %v4633_v58 = vor.u32 %v6070_v52, %v4630_v43  ;;  %v6118_v36 = vld [vmem:[#allocation3 + $0x374] sm:$0xf]  ;;  %v4750_v1 = vld [vmem:[#allocation3 + $0x2e8] sm:$0xf0] }
  0x8e   : > { %v4697_v60 = vor.u32 %v6086_v56, %v4694_v57  ;;  %v4822_v61 = vld [vmem:[#allocation3 + $0x378] sm:$0xf0]  ;;  %1709 = vmatpush.bf16.msra.mxu2 %v4449_v35  ;;  %v6068_v2 = vld [vmem:[#allocation3 + $0x1e4] sm:$0xf]  ;;  %v4622_v7 = vld [vmem:[#allocation3 + $0x1e8] sm:$0xf0]  ;;  %v4753_v12 = vor.u32 %v6100_v62, %v4750_v1 }
  0x8f   : > { %1673 = vmatpush.bf16.msra.mxu0 %v4893_v49  ;;  %v4825_v0 = vor.u32 %v6118_v36, %v4822_v61  ;;  %1661 = vmatmul.bf16.gmra.mxu3 %v6983_v40  ;;  %v6084_v9 = vld [vmem:[#allocation3 + $0x264] sm:$0xf]  ;;  %v4686_v10 = vld [vmem:[#allocation3 + $0x268] sm:$0xf0]  ;;  %v4625_v14 = vor.u32 %v6068_v2, %v4622_v7  ;;  %v6098_v17 = vld [vmem:[#allocation3 + $0x2d4] sm:$0xf] }
  0x90   : > { %1691 = vmatpush.bf16.msra.mxu1 %v4385_v37  ;;  %v6116_v11 = vld [vmem:[#allocation3 + $0x364] sm:$0xf]  ;;  %v4814_v13 = vld [vmem:[#allocation3 + $0x368] sm:$0xf0]  ;;  %v4689_v15 = vor.u32 %v6084_v9, %v4686_v10  ;;  %v4742_v18 = vld [vmem:[#allocation3 + $0x2d8] sm:$0xf0] }
  0x91   : > { %1727 = vmatpush.bf16.msra.mxu3 %v4513_v53  ;;  %v4376_v19 = vld [vmem:[#allocation2 + $0x20] sm:$0xf]  ;;  %v4817_v21 = vor.u32 %v6116_v11, %v4814_v13  ;;  %v4614_v27 = vld [vmem:[#allocation3 + $0x1d8] sm:$0xf0]  ;;  %v4745_v34 = vor.u32 %v6098_v17, %v4742_v18  ;;  %v6096_v24 = vld [vmem:[#allocation3 + $0x2c4] sm:$0xf] }
  0x92   : > { %1774 = vmatpush.bf16.msrb.mxu2 %v4761_v54  ;;  %v6007_v20 = vld [vmem:[#allocation2 + $0x40] sm:$0xf0]  ;;  %v6066_v22 = vld [vmem:[#allocation3 + $0x1d4] sm:$0xf]  ;;  %v4678_v33 = vld [vmem:[#allocation3 + $0x258] sm:$0xf0] }
  0x93   : > { %1738 = vmatpush.bf16.msrb.mxu0 %v4633_v58  ;;  %v6082_v32 = vld [vmem:[#allocation3 + $0x254] sm:$0xf]  ;;  %v4806_v39 = vld [vmem:[#allocation3 + $0x358] sm:$0xf0]  ;;  %v6987_v41 = vor.u32 %v6007_v20, %v4376_v19  ;;  %v4734_v23 = vld [vmem:[#allocation3 + $0x2c8] sm:$0xf0]  ;;  %v4617_v31 = vor.u32 %v6066_v22, %v4614_v27 }
  0x94   : > { %1756 = vmatpush.bf16.msrb.mxu1 %v4697_v60  ;;  %v6114_v38 = vld [vmem:[#allocation3 + $0x354] sm:$0xf]  ;;  %v4681_v44 = vor.u32 %v6082_v32, %v4678_v33  ;;  %v6064_v45 = vld [vmem:[#allocation3 + $0x1c4] sm:$0xf]  ;;  %v4606_v46 = vld [vmem:[#allocation3 + $0x1c8] sm:$0xf0]  ;;  %v4737_v3 = vor.u32 %v6096_v24, %v4734_v23 }
  0x95   : > { %1792 = vmatpush.bf16.msrb.mxu3 %v4825_v0  ;;  %v553_v47 = vld [vmem:[%s6776_s16 + $0xc] sm:$0x1]  ;;  %v4809_v35 = vor.u32 %v6114_v38, %v4806_v39  ;;  %v6080_v49 = vld [vmem:[#allocation3 + $0x244] sm:$0xf]  ;;  %v4670_v50 = vld [vmem:[#allocation3 + $0x248] sm:$0xf0]  ;;  %v4609_v52 = vor.u32 %v6064_v45, %v4606_v46 }
  0x96   : > { %1775 = vmatpush.bf16.msrb.mxu2 %v4753_v12  ;;  %556 = vst [vmem:[#allocation2 + $0x68] sm:$0x1] %v553_v47  ;;  %v6112_v37 = vld [vmem:[#allocation3 + $0x344] sm:$0xf]  ;;  %v4798_v51 = vld [vmem:[#allocation3 + $0x348] sm:$0xf0]  ;;  %v4673_v53 = vor.u32 %v6080_v49, %v4670_v50 }
  0x97   : > { %1739 = vmatpush.bf16.msrb.mxu0 %v4625_v14  ;;  %v6094_v54 = vld [vmem:[#allocation3 + $0x2b4] sm:$0xf]  ;;  %v4726_v43 = vld [vmem:[#allocation3 + $0x2b8] sm:$0xf0]  ;;  %v4801_v36 = vor.u32 %v6112_v37, %v4798_v51  ;;  %v6092_v0 = vld [vmem:[#allocation3 + $0x2a4] sm:$0xf] }
  0x98   : > { %1757 = vmatpush.bf16.msrb.mxu1 %v4689_v15  ;;  %v6062_v56 = vld [vmem:[#allocation3 + $0x1b4] sm:$0xf]  ;;  %v4598_v57 = vld [vmem:[#allocation3 + $0x1b8] sm:$0xf0]  ;;  %v4729_v61 = vor.u32 %v6094_v54, %v4726_v43  ;;  %v4718_v9 = vld [vmem:[#allocation3 + $0x2a8] sm:$0xf0] }
  0x99   : > { %1793 = vmatpush.bf16.msrb.mxu3 %v4817_v21  ;;  %1674 = vmatmul.bf16.vlgmr.msra.gmra.mxu0 %v6987_v41  ;;  %v6078_v58 = vld [vmem:[#allocation3 + $0x234] sm:$0xf]  ;;  %v4662_v60 = vld [vmem:[#allocation3 + $0x238] sm:$0xf0]  ;;  %v4601_v2 = vor.u32 %v6062_v56, %v4598_v57  ;;  %v6060_v10 = vld [vmem:[#allocation3 + $0x1a4] sm:$0xf]  ;;  %v4721_v15 = vor.u32 %v6092_v0, %v4718_v9 }
  0x9a   : > { %1776 = vmatpush.bf16.msrb.mxu2 %v4745_v34  ;;  %1692 = vmatmul.bf16.vlgmr.msra.gmra.mxu1 %v6835_v6  ;;  %v6110_v6 = vld [vmem:[#allocation3 + $0x334] sm:$0xf]  ;;  %v4790_v62 = vld [vmem:[#allocation3 + $0x338] sm:$0xf0]  ;;  %v4665_v7 = vor.u32 %v6078_v58, %v4662_v60  ;;  %v4590_v11 = vld [vmem:[#allocation3 + $0x1a8] sm:$0xf0] }
  0x9b   : > { %1740 = vmatpush.bf16.msrb.mxu0 %v4617_v31  ;;  %v6076_v12 = vld [vmem:[#allocation3 + $0x224] sm:$0xf]  ;;  %v4654_v13 = vld [vmem:[#allocation3 + $0x228] sm:$0xf0]  ;;  %v4593_v19 = vor.u32 %v6060_v10, %v4590_v11  ;;  %v6090_v21 = vld [vmem:[#allocation3 + $0x294] sm:$0xf] }
  0x9c   : > { %1758 = vmatpush.bf16.msrb.mxu1 %v4681_v44  ;;  %1710 = vmatmul.bf16.vlgmr.msra.gmra.mxu2 %v6861_v55  ;;  %v4793_v55 = vor.u32 %v6110_v6, %v4790_v62  ;;  %v6108_v17 = vld [vmem:[#allocation3 + $0x324] sm:$0xf]  ;;  %v4782_v18 = vld [vmem:[#allocation3 + $0x328] sm:$0xf0]  ;;  %v4657_v20 = vor.u32 %v6076_v12, %v4654_v13  ;;  %v4710_v22 = vld [vmem:[#allocation3 + $0x298] sm:$0xf0] }
  0x9d   : > { %1794 = vmatpush.bf16.msrb.mxu3 %v4809_v35  ;;  %v571_v1 = vld [vmem:[#allocation2 + $0x68] sm:$0x1]  ;;  %v6058_v27 = vld [vmem:[#allocation3 + $0x194] sm:$0xf]  ;;  %v4713_v23 = vor.u32 %v6090_v21, %v4710_v22  ;;  %v6088_v44 = vld [vmem:[#allocation3 + $0x284] sm:$0xf] }
  0x9e   : > { %1777 = vmatpush.bf16.msrb.mxu2 %v4737_v3  ;;  %v765_v14 = vunpack.c.l.b16 %v571_v1  ;;  %v4582_v32 = vld [vmem:[#allocation3 + $0x198] sm:$0xf0]  ;;  %v6074_v33 = vld [vmem:[#allocation3 + $0x214] sm:$0xf]  ;;  %v4702_v45 = vld [vmem:[#allocation3 + $0x288] sm:$0xf0] }
  0x9f   : > { %1741 = vmatpush.bf16.msrb.mxu0 %v4609_v52  ;;  %1728 = vmatmul.bf16.vlgmr.msra.gmra.mxu3 %v6863_v59  ;;  %v4785_v59 = vor.u32 %v6108_v17, %v4782_v18  ;;  %v4646_v34 = vld [vmem:[#allocation3 + $0x218] sm:$0xf0]  ;;  %v6106_v39 = vld [vmem:[#allocation3 + $0x314] sm:$0xf]  ;;  %v4585_v31 = vor.u32 %v6058_v27, %v4582_v32  ;;  %v6056_v47 = vld [vmem:[#allocation3 + $0x184] sm:$0xf]  ;;  %v4705_v43 = vor.u32 %v6088_v44, %v4702_v45 }
  0xa0   : > { %1759 = vmatpush.bf16.msrb.mxu1 %v4673_v53  ;;  %v6994_v38 = vpack.c.b16 %v765_v14, %v765_v14  ;;  %v4774_v24 = vld [vmem:[#allocation3 + $0x318] sm:$0xf0]  ;;  %v4649_v46 = vor.u32 %v6074_v33, %v4646_v34  ;;  %v4574_v35 = vld [vmem:[#allocation3 + $0x188] sm:$0xf0]  ;;  %v6072_v49 = vld [vmem:[#allocation3 + $0x204] sm:$0xf] }
  0xa1   : > { %1795 = vmatpush.bf16.msrb.mxu3 %v4801_v36  ;;  %v4777_v50 = vor.u32 %v6106_v39, %v4774_v24  ;;  %v4638_v3 = vld [vmem:[#allocation3 + $0x208] sm:$0xf0]  ;;  %v6104_v37 = vld [vmem:[#allocation3 + $0x304] sm:$0xf]  ;;  %v5041_v52 = vld [vmem:[#allocation5 + $0x70] sm:$0xf]  ;;  %v4577_v56 = vor.u32 %v6056_v47, %v4574_v35 }
  0xa2   : > { %1778 = vmatpush.bf16.msrb.mxu2 %v4729_v61  ;;  %v4766_v51 = vld [vmem:[#allocation3 + $0x308] sm:$0xf0]  ;;  %v6174_v53 = vld [vmem:[#allocation5 + $0x74] sm:$0xf0]  ;;  %v6134_v54 = vld [vmem:[#allocation3 + $0x3f4] sm:$0xf]  ;;  %v4641_v36 = vor.u32 %v6072_v49, %v4638_v3 }
  0xa3   : > { %1742 = vmatpush.bf16.msrb.mxu0 %v4601_v2  ;;  %v4886_v57 = vld [vmem:[#allocation3 + $0x3f8] sm:$0xf0]  ;;  %v6150_v58 = vld [vmem:[#allocation3 + $0x474] sm:$0xf]  ;;  %v5105_v61 = vld [vmem:[#allocation5 + $0xf0] sm:$0xf]  ;;  %v4769_v62 = vor.u32 %v6104_v37, %v4766_v51  ;;  %v5042_v0 = vor.u32 %v6174_v53, %v5041_v52 }
  0xa4   : > { %1760 = vmatpush.bf16.msrb.mxu1 %v4665_v7  ;;  %v4950_v60 = vld [vmem:[#allocation3 + $0x478] sm:$0xf0]  ;;  %v6190_v6 = vld [vmem:[#allocation5 + $0xf4] sm:$0xf0]  ;;  %v5033_v2 = vld [vmem:[#allocation5 + $0x60] sm:$0xf] }
  0xa5   : > { %1796 = vmatpush.bf16.msrb.mxu3 %v4793_v55  ;;  %v4953_v1 = vor.u32 %v6150_v58, %v4950_v60  ;;  %v6172_v7 = vld [vmem:[#allocation5 + $0x64] sm:$0xf0]  ;;  %v6132_v9 = vld [vmem:[#allocation3 + $0x3e4] sm:$0xf]  ;;  %v5106_v10 = vor.u32 %v6190_v6, %v5105_v61  ;;  %v4878_v11 = vld [vmem:[#allocation3 + $0x3e8] sm:$0xf0] }
  0xa6   : > { %1779 = vmatpush.bf16.msrb.mxu2 %v4721_v15  ;;  %v6148_v12 = vld [vmem:[#allocation3 + $0x464] sm:$0xf]  ;;  %v4942_v13 = vld [vmem:[#allocation3 + $0x468] sm:$0xf0]  ;;  %v5097_v55 = vld [vmem:[#allocation5 + $0xe0] sm:$0xf]  ;;  %v4881_v15 = vor.u32 %v6132_v9, %v4878_v11 }
  0xa7   : > { %1743 = vmatpush.bf16.msrb.mxu0 %v4593_v19  ;;  %v6188_v14 = vld [vmem:[#allocation5 + $0xe4] sm:$0xf0]  ;;  %v4945_v17 = vor.u32 %v6148_v12, %v4942_v13  ;;  %v5025_v18 = vld [vmem:[#allocation5 + $0x50] sm:$0xf]  ;;  %v6170_v19 = vld [vmem:[#allocation5 + $0x54] sm:$0xf0] }
  0xa8   : > { %1761 = vmatpush.bf16.msrb.mxu1 %v4657_v20  ;;  %v5098_v20 = vor.u32 %v6188_v14, %v5097_v55  ;;  %v6130_v21 = vld [vmem:[#allocation3 + $0x3d4] sm:$0xf]  ;;  %v4870_v22 = vld [vmem:[#allocation3 + $0x3d8] sm:$0xf0]  ;;  %v6186_v33 = vld [vmem:[#allocation5 + $0xd4] sm:$0xf0] }
  0xa9   : > { %1797 = vmatpush.bf16.msrb.mxu3 %v4785_v59  ;;  %1679 = vmatmul.bf16.gmra.mxu0 %v6994_v38  ;;  %v6146_v27 = vld [vmem:[#allocation3 + $0x454] sm:$0xf]  ;;  %v4934_v32 = vld [vmem:[#allocation3 + $0x458] sm:$0xf0]  ;;  %v5089_v59 = vld [vmem:[#allocation5 + $0xd0] sm:$0xf]  ;;  %v4873_v34 = vor.u32 %v6130_v21, %v4870_v22 }
  0xaa   : > { %1697 = vmatmul.bf16.gmra.mxu1 %v6873_v4  ;;  %1780 = vmatpush.bf16.msrb.mxu2 %v4713_v23  ;;  %v4889_v4 = vor.u32 %v6134_v54, %v4886_v57  ;;  %v4937_v39 = vor.u32 %v6146_v27, %v4934_v32  ;;  %v5017_v24 = vld [vmem:[#allocation5 + $0x40] sm:$0xf]  ;;  %v6168_v23 = vld [vmem:[#allocation5 + $0x44] sm:$0xf0]  ;;  %v5090_v44 = vor.u32 %v6186_v33, %v5089_v59  ;;  %v4862_v45 = vld [vmem:[#allocation3 + $0x3c8] sm:$0xf0] }
  0xab   : > { %1744 = vmatpush.bf16.msrb.mxu0 %v4585_v31  ;;  %v6128_v31 = vld [vmem:[#allocation3 + $0x3c4] sm:$0xf]  ;;  %v4926_v47 = vld [vmem:[#allocation3 + $0x448] sm:$0xf0]  ;;  %v5018_v35 = vor.u32 %v6168_v23, %v5017_v24  ;;  %v5081_v49 = vld [vmem:[#allocation5 + $0xc0] sm:$0xf] }
  0xac   : > { %1762 = vmatpush.bf16.msrb.mxu1 %v4649_v46  ;;  %1715 = vmatmul.bf16.gmra.mxu2 %v6875_v5  ;;  %v5034_v5 = vor.u32 %v6172_v7, %v5033_v2  ;;  %v6144_v46 = vld [vmem:[#allocation3 + $0x444] sm:$0xf]  ;;  %v4865_v3 = vor.u32 %v6128_v31, %v4862_v45  ;;  %v5009_v51 = vld [vmem:[#allocation5 + $0x30] sm:$0xf]  ;;  %v6166_v52 = vld [vmem:[#allocation5 + $0x34] sm:$0xf0] }
  0xad   : > { %1798 = vmatpush.bf16.msrb.mxu3 %v4777_v50  ;;  %v6184_v50 = vld [vmem:[#allocation5 + $0xc4] sm:$0xf0]  ;;  %v4929_v37 = vor.u32 %v6144_v46, %v4926_v47  ;;  %v6126_v53 = vld [vmem:[#allocation3 + $0x3b4] sm:$0xf]  ;;  %v4854_v54 = vld [vmem:[#allocation3 + $0x3b8] sm:$0xf0] }
  0xae   : > { %1781 = vmatpush.bf16.msrb.mxu2 %v4705_v43  ;;  %v6142_v43 = vld [vmem:[#allocation3 + $0x434] sm:$0xf]  ;;  %v5082_v57 = vor.u32 %v6184_v50, %v5081_v49  ;;  %v6182_v58 = vld [vmem:[#allocation5 + $0xb4] sm:$0xf0]  ;;  %v4857_v60 = vor.u32 %v6126_v53, %v4854_v54  ;;  %v5001_v61 = vld [vmem:[#allocation5 + $0x20] sm:$0xf] }
  0xaf   : > { %1745 = vmatpush.bf16.msrb.mxu0 %v4577_v56  ;;  %1733 = vmatmul.bf16.gmra.mxu3 %v6879_v16  ;;  %v5026_v16 = vor.u32 %v6170_v19, %v5025_v18  ;;  %v4918_v56 = vld [vmem:[#allocation3 + $0x438] sm:$0xf0]  ;;  %v6164_v6 = vld [vmem:[#allocation5 + $0x24] sm:$0xf0]  ;;  %v5065_v7 = vld [vmem:[#allocation5 + $0xa0] sm:$0xf] }
  0xb0   : > { %1763 = vmatpush.bf16.msrb.mxu1 %v4641_v36  ;;  %v4921_v36 = vor.u32 %v6142_v43, %v4918_v56  ;;  %v6180_v9 = vld [vmem:[#allocation5 + $0xa4] sm:$0xf0]  ;;  %v4993_v12 = vld [vmem:[#allocation5 + $0x10] sm:$0xf]  ;;  %v6162_v13 = vld [vmem:[#allocation5 + $0x14] sm:$0xf0] }
  0xb1   : > { %1799 = vmatpush.bf16.msrb.mxu3 %v4769_v62  ;;  %v6124_v62 = vld [vmem:[#allocation3 + $0x3a4] sm:$0xf]  ;;  %v6122_v55 = vld [vmem:[#allocation3 + $0x394] sm:$0xf]  ;;  %v4838_v14 = vld [vmem:[#allocation3 + $0x398] sm:$0xf0]  ;;  %v4994_v19 = vor.u32 %v6162_v13, %v4993_v12 }
  0xb2   : > { %2636 = vmatpush.bf16.msra.mxu2 %v5042_v0  ;;  %v4846_v0 = vld [vmem:[#allocation3 + $0x3a8] sm:$0xf0]  ;;  %v6178_v18 = vld [vmem:[#allocation5 + $0x94] sm:$0xf0]  ;;  %v4985_v21 = vld [vmem:[#allocation5] sm:$0xf] }
  0xb3   : > { %1810 = vmatpush.bf16.msra.mxu0 %v4889_v4  ;;  %v6140_v4 = vld [vmem:[#allocation3 + $0x424] sm:$0xf]  ;;  %v6160_v22 = vld [vmem:[#allocation5 + $0x4] sm:$0xf0]  ;;  %v5297_v31 = vld [vmem:[#allocation5 + $0x270] sm:$0xf] }
  0xb4   : > { %1828 = vmatpush.bf16.msra.mxu1 %v4953_v1  ;;  %v4910_v1 = vld [vmem:[#allocation3 + $0x428] sm:$0xf0]  ;;  %v6120_v32 = vld [vmem:[#allocation3 + $0x384] sm:$0xf]  ;;  %v6176_v24 = vld [vmem:[#allocation5 + $0x84] sm:$0xf0]  ;;  %v4986_v46 = vor.u32 %v6160_v22, %v4985_v21 }
  0xb5   : > { %2654 = vmatpush.bf16.msra.mxu3 %v5106_v10  ;;  %v4849_v10 = vor.u32 %v6124_v62, %v4846_v0  ;;  %v4913_v11 = vor.u32 %v6140_v4, %v4910_v1  ;;  %v6136_v59 = vld [vmem:[#allocation3 + $0x404] sm:$0xf]  ;;  %v5169_v45 = vld [vmem:[#allocation5 + $0x170] sm:$0xf]  ;;  %v6222_v50 = vld [vmem:[#allocation5 + $0x1f4] sm:$0xf0] }
  0xb6   : > { %2637 = vmatpush.bf16.msra.mxu2 %v5034_v5  ;;  %v5066_v5 = vor.u32 %v6180_v9, %v5065_v7  ;;  %v5233_v49 = vld [vmem:[#allocation5 + $0x1f0] sm:$0xf]  ;;  %v5289_v43 = vld [vmem:[#allocation5 + $0x260] sm:$0xf]  ;;  %v6236_v56 = vld [vmem:[#allocation5 + $0x264] sm:$0xf0] }
  0xb7   : > { %1811 = vmatpush.bf16.msra.mxu0 %v4881_v15  ;;  %v4902_v15 = vld [vmem:[#allocation3 + $0x418] sm:$0xf0]  ;;  %v5234_v54 = vor.u32 %v6222_v50, %v5233_v49  ;;  %v5281_v0 = vld [vmem:[#allocation5 + $0x250] sm:$0xf]  ;;  %v6234_v4 = vld [vmem:[#allocation5 + $0x254] sm:$0xf0] }
  0xb8   : > { %1829 = vmatpush.bf16.msra.mxu1 %v4945_v17  ;;  %v5057_v17 = vld [vmem:[#allocation5 + $0x90] sm:$0xf]  ;;  %v6202_v9 = vld [vmem:[#allocation5 + $0x154] sm:$0xf0]  ;;  %v5282_v12 = vor.u32 %v6234_v4, %v5281_v0  ;;  %v6200_v21 = vld [vmem:[#allocation5 + $0x144] sm:$0xf0] }
  0xb9   : > { %2655 = vmatpush.bf16.msra.mxu3 %v5098_v20  ;;  %1746 = vmatmul.bf16.vlgmr.msrb.gmra.mxu0 %v6869_v26  ;;  %v5010_v26 = vor.u32 %v6166_v52, %v5009_v51  ;;  %v4841_v20 = vor.u32 %v6122_v55, %v4838_v14  ;;  %v5058_v33 = vor.u32 %v6178_v18, %v5057_v17  ;;  %v5361_v51 = vld [vmem:[#allocation5 + $0x2f0] sm:$0xf]  ;;  %v6250_v55 = vld [vmem:[#allocation5 + $0x2d4] sm:$0xf0]  ;;  %v5273_v17 = vld [vmem:[#allocation5 + $0x240] sm:$0xf] }
  0xba   : > { %2638 = vmatpush.bf16.msra.mxu2 %v5026_v16  ;;  %1764 = vmatmul.bf16.vlgmr.msrb.gmra.mxu1 %v6933_v25  ;;  %v5073_v25 = vld [vmem:[#allocation5 + $0xb0] sm:$0xf]  ;;  %v4830_v16 = vld [vmem:[#allocation3 + $0x388] sm:$0xf0]  ;;  %v4957_v14 = vld [vmem:[#allocation2 + $0x4] sm:$0xf] }
  0xbb   : > { %1812 = vmatpush.bf16.msra.mxu0 %v4873_v34  ;;  %v5074_v2 = vor.u32 %v6182_v58, %v5073_v25  ;;  %v4894_v34 = vld [vmem:[#allocation3 + $0x408] sm:$0xf0]  ;;  %v4833_v47 = vor.u32 %v6120_v32, %v4830_v16  ;;  %v6204_v25 = vld [vmem:[#allocation5 + $0x164] sm:$0xf0]  ;;  %v5225_v58 = vld [vmem:[#allocation5 + $0x1e0] sm:$0xf] }
  0xbc   : > { %1830 = vmatpush.bf16.msra.mxu1 %v4937_v39  ;;  %1782 = vmatmul.bf16.vlgmr.msrb.gmra.mxu2 %v6956_v63  ;;  %v5002_v63 = vor.u32 %v6164_v6, %v5001_v61  ;;  %v5049_v39 = vld [vmem:[#allocation5 + $0x80] sm:$0xf]  ;;  %v6252_v61 = vld [vmem:[#allocation5 + $0x2e4] sm:$0xf0]  ;;  %v5345_v13 = vld [vmem:[#allocation5 + $0x2d0] sm:$0xf] }
  0xbd   : > { %2656 = vmatpush.bf16.msra.mxu3 %v5090_v44  ;;  %v6238_v44 = vld [vmem:[#allocation5 + $0x274] sm:$0xf0]  ;;  %v6232_v18 = vld [vmem:[#allocation5 + $0x244] sm:$0xf0]  ;;  %v5209_v22 = vld [vmem:[#allocation5 + $0x1c0] sm:$0xf] }
  0xbe   : > { %2639 = vmatpush.bf16.msra.mxu2 %v5018_v35  ;;  %v6206_v35 = vld [vmem:[#allocation5 + $0x174] sm:$0xf0]  ;;  %v5298_v52 = vor.u32 %v6238_v44, %v5297_v31  ;;  %v6152_v16 = vld [vmem:[#allocation2 + $0x8] sm:$0xf]  ;;  %v5201_v50 = vld [vmem:[#allocation5 + $0x1b0] sm:$0xf] }
  0xbf   : > { %1813 = vmatpush.bf16.msra.mxu0 %v4865_v3  ;;  %1800 = vmatmul.bf16.vlgmr.msrb.gmra.mxu3 %v6958_v8  ;;  %v6138_v8 = vld [vmem:[#allocation3 + $0x414] sm:$0xf]  ;;  %v5170_v53 = vor.u32 %v6206_v35, %v5169_v45  ;;  %v5265_v45 = vld [vmem:[#allocation5 + $0x230] sm:$0xf]  ;;  %v6244_v0 = vld [vmem:[#allocation5 + $0x2a4] sm:$0xf0] }
  0xc0   : > { %1831 = vmatpush.bf16.msra.mxu1 %v4929_v37  ;;  %v4905_v27 = vor.u32 %v6138_v8, %v4902_v15  ;;  %v4897_v37 = vor.u32 %v6136_v59, %v4894_v34  ;;  %v4959_v59 = vld [vmem:[#allocation2 + $0x28] sm:$0xf0]  ;;  %v5274_v34 = vor.u32 %v6232_v18, %v5273_v17  ;;  %v6242_v17 = vld [vmem:[#allocation5 + $0x294] sm:$0xf0] }
  0xc1   : > { %2657 = vmatpush.bf16.msra.mxu3 %v5082_v57  ;;  %v7006_v23 = vpop.f32.mrf.mxu0  ;;  %v5161_v57 = vld [vmem:[#allocation5 + $0x160] sm:$0xf]  ;;  %v7024_v35 = vor.u32 %v6152_v16, %v4959_v59 }
  0xc2   : > { %2640 = vmatpush.bf16.msra.mxu2 %v5010_v26  ;;  %v5162_v6 = vor.u32 %v6204_v25, %v5161_v57  ;;  %v6228_v57 = vld [vmem:[#allocation5 + $0x224] sm:$0xf0]  ;;  %v5113_v59 = vld [vmem:[#allocation5 + $0x100] sm:$0xf] }
  0xc3   : > { %1814 = vmatpush.bf16.msra.mxu0 %v4857_v60  ;;  %v6220_v60 = vld [vmem:[#allocation5 + $0x1e4] sm:$0xf0] }
  0xc4   : > { %1832 = vmatpush.bf16.msra.mxu1 %v4921_v36  ;;  %v5353_v36 = vld [vmem:[#allocation5 + $0x2e0] sm:$0xf]  ;;  %v5226_v62 = vor.u32 %v6220_v60, %v5225_v58  ;;  %v6196_v25 = vld [vmem:[#allocation5 + $0x124] sm:$0xf0] }
  0xc5   : > { %2658 = vmatpush.bf16.msra.mxu3 %v5074_v2  ;;  %v5354_v2 = vor.u32 %v6252_v61, %v5353_v36  ;;  %v5193_v58 = vld [vmem:[#allocation5 + $0x1a0] sm:$0xf]  ;;  %v6212_v60 = vld [vmem:[#allocation5 + $0x1a4] sm:$0xf0] }
  0xc6   : > { %2641 = vmatpush.bf16.msra.mxu2 %v5002_v63  ;;  %v5153_v63 = vld [vmem:[#allocation5 + $0x150] sm:$0xf] }
  0xc7   : > { %1815 = vmatpush.bf16.msra.mxu0 %v4849_v10  ;;  %v5217_v10 = vld [vmem:[#allocation5 + $0x1d0] sm:$0xf]  ;;  %v5154_v8 = vor.u32 %v6202_v9, %v5153_v63  ;;  %v6226_v9 = vld [vmem:[#allocation5 + $0x214] sm:$0xf0] }
  0xc8   : > { %1833 = vmatpush.bf16.msra.mxu1 %v4913_v11  ;;  %v6218_v11 = vld [vmem:[#allocation5 + $0x1d4] sm:$0xf0]  ;;  %v5249_v63 = vld [vmem:[#allocation5 + $0x210] sm:$0xf] }
  0xc9   : > { %2659 = vmatpush.bf16.msra.mxu3 %v5066_v5  ;;  %1751 = vmatmul.bf16.gmra.mxu0 %v6887_v28  ;;  %v6254_v28 = vld [vmem:[#allocation5 + $0x2f4] sm:$0xf0]  ;;  %v7014_v7 = vpop.f32.mrf.mxu0  ;;  %v6155_v5 = vld [vmem:[#allocation2 + $0x24] sm:$0xf0]  ;;  %v5218_v15 = vor.u32 %v6218_v11, %v5217_v10  ;;  %v5121_v10 = vld [vmem:[#allocation5 + $0x110] sm:$0xf] }
  0xca   : > { %1769 = vmatmul.bf16.gmra.mxu1 %v6973_v29  ;;  %2642 = vmatpush.bf16.msra.mxu2 %v4994_v19  ;;  %v5050_v29 = vor.u32 %v6176_v24, %v5049_v39  ;;  %v5362_v26 = vor.u32 %v6254_v28, %v5361_v51  ;;  %v5145_v19 = vld [vmem:[#allocation5 + $0x140] sm:$0xf]  ;;  %v7018_v32 = vor.u32 %v6155_v5, %v4957_v14  ;;  %v6248_v24 = vld [vmem:[#allocation5 + $0x2c4] sm:$0xf0]  ;;  %v6194_v11 = vld [vmem:[#allocation5 + $0x114] sm:$0xf0] }
  0xcb   : > { %1816 = vmatpush.bf16.msra.mxu0 %v4841_v20  ;;  %v7008_v3 = vpop.f32.mrf.mxu1  ;;  %v5346_v20 = vor.u32 %v6250_v55, %v5345_v13  ;;  %v5337_v39 = vld [vmem:[#allocation5 + $0x2c0] sm:$0xf]  ;;  %v5146_v31 = vor.u32 %v6200_v21, %v5145_v19  ;;  %v5185_v55 = vld [vmem:[#allocation5 + $0x190] sm:$0xf]  ;;  %v6210_v14 = vld [vmem:[#allocation5 + $0x194] sm:$0xf0]  ;;  %v5250_v19 = vor.u32 %v6226_v9, %v5249_v63 }
  0xcc   : > { %1834 = vmatpush.bf16.msra.mxu1 %v4905_v27  ;;  %1787 = vmatmul.bf16.gmra.mxu2 %v6975_v30  ;;  %v5290_v30 = vor.u32 %v6236_v56, %v5289_v43  ;;  %v6216_v27 = vld [vmem:[#allocation5 + $0x1c4] sm:$0xf0]  ;;  %v5257_v56 = vld [vmem:[#allocation5 + $0x220] sm:$0xf]  ;;  %v5186_v16 = vor.u32 %v6210_v14, %v5185_v55  ;;  %v6203_v63 = vld [vmem:[#allocation5 + $0x164] sm:$0xf] }
  0xcd   : > { %2660 = vmatpush.bf16.msra.mxu3 %v5058_v33  ;;  %v5210_v44 = vor.u32 %v6216_v27, %v5209_v22  ;;  %v5241_v21 = vld [vmem:[#allocation5 + $0x200] sm:$0xf]  ;;  %v6224_v22 = vld [vmem:[#allocation5 + $0x204] sm:$0xf0]  ;;  %v5163_v9 = vld [vmem:[#allocation5 + $0x168] sm:$0xf0] }
  0xce   : > { %2643 = vmatpush.bf16.msra.mxu2 %v4986_v46  ;;  %v6230_v46 = vld [vmem:[#allocation5 + $0x234] sm:$0xf0]  ;;  %v6156_v55 = vld [vmem:[#allocation2 + $0x2c] sm:$0xf0] }
  0xcf   : > { %1817 = vmatpush.bf16.msra.mxu0 %v4833_v47  ;;  %1805 = vmatmul.bf16.gmra.mxu3 %v6980_v48  ;;  %v5137_v47 = vld [vmem:[#allocation5 + $0x130] sm:$0xf] }
  0xd0   : > { %1835 = vmatpush.bf16.msra.mxu1 %v4897_v37  ;;  %v5338_v37 = vor.u32 %v6248_v24, %v5337_v39  ;;  %v5177_v39 = vld [vmem:[#allocation5 + $0x180] sm:$0xf] }
  0xd1   : > { %2661 = vmatpush.bf16.msra.mxu3 %v5050_v29  ;;  %v5266_v29 = vor.u32 %v6230_v46, %v5265_v45  ;;  %v5305_v45 = vld [vmem:[#allocation5 + $0x280] sm:$0xf]  ;;  %v6240_v46 = vld [vmem:[#allocation5 + $0x284] sm:$0xf0] }
  0xd2   : > { %2708 = vmatpush.bf16.msrb.mxu2 %v5298_v52  ;;  %v5329_v52 = vld [vmem:[#allocation5 + $0x2b0] sm:$0xf] }
  0xd3   : > { %2672 = vmatpush.bf16.msrb.mxu0 %v5170_v53  ;;  %v7012_v1 = vpop.f32.mrf.mxu2  ;;  %v7016_v48 = vpop.f32.mrf.mxu1  ;;  %v6246_v53 = vld [vmem:[#allocation5 + $0x2b4] sm:$0xf0] }
  0xd4   : > { %2690 = vmatpush.bf16.msrb.mxu1 %v5234_v54  ;;  %v5330_v36 = vor.u32 %v6246_v53, %v5329_v52  ;;  %v6270_v52 = vld [vmem:[#allocation5 + $0x374] sm:$0xf0]  ;;  %v6173_v53 = vld [vmem:[#allocation5 + $0x74] sm:$0xf] }
  0xd5   : > { %2726 = vmatpush.bf16.msrb.mxu3 %v5362_v26  ;;  %v5129_v26 = vld [vmem:[#allocation5 + $0x120] sm:$0xf] }
  0xd6   : > { %2709 = vmatpush.bf16.msrb.mxu2 %v5290_v30  ;;  %v1890_v30 = vld [vmem:[#allocation2 + $0x4c] sm:$0x11]  ;;  %v5130_v4 = vor.u32 %v6196_v25, %v5129_v26 }
  0xd7   : > { %2673 = vmatpush.bf16.msrb.mxu0 %v5162_v6  ;;  %v5258_v6 = vor.u32 %v6228_v57, %v5257_v56  ;;  %v2042_v27 = vunpack.c.h.b16 %v1890_v30  ;;  %v6205_v57 = vld [vmem:[#allocation5 + $0x174] sm:$0xf] }
  0xd8   : > { %2691 = vmatpush.bf16.msrb.mxu1 %v5226_v62  ;;  %v5321_v62 = vld [vmem:[#allocation5 + $0x2a0] sm:$0xf] }
  0xd9   : > { %2727 = vmatpush.bf16.msrb.mxu3 %v5354_v2  ;;  %1818 = vmatmul.bf16.vlgmr.msra.gmra.mxu0 %v6964_v42  ;;  %v7022_v33 = vpop.f32.mrf.mxu3  ;;  %v6198_v42 = vld [vmem:[#allocation5 + $0x134] sm:$0xf0]  ;;  %v5194_v2 = vor.u32 %v6212_v60, %v5193_v58  ;;  %v5322_v13 = vor.u32 %v6244_v0, %v5321_v62  ;;  %v6268_v0 = vld [vmem:[#allocation5 + $0x364] sm:$0xf0] }
  0xda   : > { %2710 = vmatpush.bf16.msrb.mxu2 %v5282_v12  ;;  %1836 = vmatmul.bf16.vlgmr.msra.gmra.mxu1 %v6987_v41  ;;  %v6214_v41 = vld [vmem:[#allocation5 + $0x1b4] sm:$0xf0]  ;;  %v5138_v54 = vor.u32 %v6198_v42, %v5137_v47  ;;  %v2041_v12 = vunpack.c.l.b16 %v1890_v30  ;;  %v6189_v42 = vld [vmem:[#allocation5 + $0xf4] sm:$0xf]  ;;  %v5099_v30 = vld [vmem:[#allocation5 + $0xe8] sm:$0xf0] }
  0xdb   : > { %2674 = vmatpush.bf16.msrb.mxu0 %v5154_v8  ;;  %v7026_v49 = vpop.f32.mrf.mxu2  ;;  %v5202_v43 = vor.u32 %v6214_v41, %v5201_v50  ;;  %v5107_v50 = vld [vmem:[#allocation5 + $0xf8] sm:$0xf0]  ;;  %v5425_v41 = vld [vmem:[#allocation5 + $0x370] sm:$0xf] }
  0xdc   : > { %2692 = vmatpush.bf16.msrb.mxu1 %v5218_v15  ;;  %2644 = vmatmul.bf16.vlgmr.msra.gmra.mxu2 %v7018_v32  ;;  %v5313_v15 = vld [vmem:[#allocation5 + $0x290] sm:$0xf]  ;;  %v7038_v24 = vpack.c.b16 %v2041_v12, %v2041_v12  ;;  %v5110_v26 = vor.u32 %v6189_v42, %v5107_v50  ;;  %v5426_v58 = vor.u32 %v6270_v52, %v5425_v41  ;;  %v4973_v50 = vld [vmem:[#allocation2 + $0x14] sm:$0xf]  ;;  %v6157_v41 = vld [vmem:[#allocation2 + $0x34] sm:$0xf0] }
  0xdd   : > { %2728 = vmatpush.bf16.msrb.mxu3 %v5346_v20  ;;  %v7029_v51 = vpop.f32.mrf.mxu0  ;;  %v7031_v28 = vpop.f32.mrf.mxu1  ;;  %v5122_v20 = vor.u32 %v6194_v11, %v5121_v10  ;;  %v7051_v10 = vld [vmem:[%s7519_s5] sm:$0x77]  ;;  %v4965_v11 = vld [vmem:[#allocation2 + $0xc] sm:$0xf]  ;;  %v6183_v52 = vld [vmem:[#allocation5 + $0xc4] sm:$0xf] }
  0xde   : > { %2711 = vmatpush.bf16.msrb.mxu2 %v5274_v34  ;;  %v6192_v34 = vld [vmem:[#allocation5 + $0x104] sm:$0xf0] }
  0xdf   : > { %2675 = vmatpush.bf16.msrb.mxu0 %v5146_v31  ;;  %2662 = vmatmul.bf16.vlgmr.msra.gmra.mxu3 %v7024_v35  ;;  %v5314_v31 = vor.u32 %v6242_v17, %v5313_v15  ;;  %v6185_v15 = vld [vmem:[#allocation5 + $0xd4] sm:$0xf]  ;;  %v5091_v17 = vld [vmem:[#allocation5 + $0xd8] sm:$0xf0] }
  0xe0   : > { %2693 = vmatpush.bf16.msrb.mxu1 %v5210_v44  ;;  %v6208_v44 = vld [vmem:[#allocation5 + $0x184] sm:$0xf0] }
  0xe1   : > { %2729 = vmatpush.bf16.msrb.mxu3 %v5338_v37  ;;  %v7034_v61 = vpop.f32.mrf.mxu3  ;;  %v5242_v37 = vor.u32 %v6224_v22, %v5241_v21  ;;  %v5178_v56 = vor.u32 %v6208_v44, %v5177_v39  ;;  %v5166_v21 = vor.u32 %v6203_v63, %v5163_v9  ;;  %v5409_v22 = vld [vmem:[#allocation5 + $0x350] sm:$0xf]  ;;  %v6201_v39 = vld [vmem:[#allocation5 + $0x154] sm:$0xf]  ;;  %v718_v44 = vperm.slane %v7051_v10, 0 }
  0xe2   : > { %2712 = vmatpush.bf16.msrb.mxu2 %v5266_v29  ;;  %v5114_v29 = vor.u32 %v6192_v34, %v5113_v59  ;;  %v5027_v59 = vld [vmem:[#allocation5 + $0x58] sm:$0xf0]  ;;  %v5094_v34 = vor.u32 %v6185_v15, %v5091_v17  ;;  %v5393_v63 = vld [vmem:[#allocation5 + $0x330] sm:$0xf] }
  0xe3   : > { %2676 = vmatpush.bf16.msrb.mxu0 %v5138_v54  ;;  %v5043_v54 = vld [vmem:[#allocation5 + $0x78] sm:$0xf0] }
  0xe4   : > { %2694 = vmatpush.bf16.msrb.mxu1 %v5202_v43  ;;  %v7044_v43 = vpack.c.b16 %v2042_v27, %v2042_v27  ;;  %v5046_v60 = vor.u32 %v6173_v53, %v5043_v54  ;;  %v6266_v27 = vld [vmem:[#allocation5 + $0x354] sm:$0xf0]  ;;  %v5083_v53 = vld [vmem:[#allocation5 + $0xc8] sm:$0xf0]  ;;  %v5401_v54 = vld [vmem:[#allocation5 + $0x340] sm:$0xf] }
  0xe5   : > { %2730 = vmatpush.bf16.msrb.mxu3 %v5330_v36  ;;  %v7036_v5 = vpop.f32.mrf.mxu2  ;;  %v1538_v8 = vpop.f32.mrf.mxu0  ;;  %v6187_v36 = vld [vmem:[#allocation5 + $0xe4] sm:$0xf] }
  0xe6   : > { %2713 = vmatpush.bf16.msrb.mxu2 %v5258_v6  ;;  %v1556_v18 = vpop.f32.mrf.mxu1  ;;  %v5417_v6 = vld [vmem:[#allocation5 + $0x360] sm:$0xf]  ;;  %v5102_v12 = vor.u32 %v6187_v36, %v5099_v30  ;;  %v5086_v36 = vor.u32 %v6183_v52, %v5083_v53  ;;  %v6199_v30 = vld [vmem:[#allocation5 + $0x144] sm:$0xf]  ;;  %v7081_v52 = vld [vmem:[#allocation2 + $0x5c] sm:$0x11] }
  0xe7   : > { %2677 = vmatpush.bf16.msrb.mxu0 %v5130_v4  ;;  %v6171_v4 = vld [vmem:[#allocation5 + $0x64] sm:$0xf]  ;;  %v5418_v14 = vor.u32 %v6268_v0, %v5417_v6  ;;  %v5147_v6 = vld [vmem:[#allocation5 + $0x148] sm:$0xf0] }
  0xe8   : > { %2695 = vmatpush.bf16.msrb.mxu1 %v5194_v2  ;;  %v5035_v2 = vld [vmem:[#allocation5 + $0x68] sm:$0xf0] }
  0xe9   : > { %2731 = vmatpush.bf16.msrb.mxu3 %v5322_v13  ;;  %1823 = vmatmul.bf16.gmra.mxu0 %v6983_v40  ;;  %v7042_v47 = vpop.f32.mrf.mxu3  ;;  %v5171_v40 = vld [vmem:[#allocation5 + $0x178] sm:$0xf0]  ;;  %v5038_v8 = vor.u32 %v6171_v4, %v5035_v2  ;;  %v6181_v4 = vld [vmem:[#allocation5 + $0xb4] sm:$0xf] }
  0xea   : > { %1841 = vmatmul.bf16.gmra.mxu1 %v6994_v38  ;;  %2714 = vmatpush.bf16.msrb.mxu2 %v5250_v19  ;;  %v5306_v38 = vor.u32 %v6240_v46, %v5305_v45  ;;  %v5174_v62 = vor.u32 %v6205_v57, %v5171_v40  ;;  %v6153_v19 = vld [vmem:[#allocation2 + $0x10] sm:$0xf]  ;;  %v7058_v46 = vor.u32 %v6156_v55, %v4965_v11  ;;  %v6264_v57 = vld [vmem:[#allocation5 + $0x344] sm:$0xf0]  ;;  %v5075_v2 = vld [vmem:[#allocation5 + $0xb8] sm:$0xf0] }
  0xeb   : > { %2678 = vmatpush.bf16.msrb.mxu0 %v5122_v20  ;;  %v4967_v20 = vld [vmem:[#allocation2 + $0x30] sm:$0xf0]  ;;  %v6167_v40 = vld [vmem:[#allocation5 + $0x44] sm:$0xf]  ;;  %v6262_v11 = vld [vmem:[#allocation5 + $0x334] sm:$0xf0] }
  0xec   : > { %2696 = vmatpush.bf16.msrb.mxu1 %v5186_v16  ;;  %2649 = vmatmul.bf16.gmra.mxu2 %v7038_v24  ;;  %v6169_v16 = vld [vmem:[#allocation5 + $0x54] sm:$0xf]  ;;  %v7060_v42 = vor.u32 %v6153_v19, %v4967_v20  ;;  %v1891_v19 = vld [vmem:[#allocation2 + $0x54] sm:$0x11]  ;;  %v5078_v20 = vor.u32 %v6181_v4, %v5075_v2 }
  0xed   : > { %2732 = vmatpush.bf16.msrb.mxu3 %v5314_v31  ;;  %v1574_v25 = vpop.f32.mrf.mxu2  ;;  %v7053_v18 = vpop.f32.mrf.mxu0  ;;  %v5155_v31 = vld [vmem:[#allocation5 + $0x158] sm:$0xf0] }
  0xee   : > { %2715 = vmatpush.bf16.msrb.mxu2 %v5242_v37  ;;  %v5410_v37 = vor.u32 %v6266_v27, %v5409_v22  ;;  %v6154_v25 = vld [vmem:[#allocation2 + $0x18] sm:$0xf]  ;;  %v5139_v22 = vld [vmem:[#allocation5 + $0x138] sm:$0xf0]  ;;  %v5394_v27 = vor.u32 %v6262_v11, %v5393_v63 }
  0xef   : > { %2679 = vmatpush.bf16.msrb.mxu0 %v5114_v29  ;;  %2667 = vmatmul.bf16.gmra.mxu3 %v7044_v43  ;;  %v5030_v29 = vor.u32 %v6169_v16, %v5027_v59  ;;  %v6179_v59 = vld [vmem:[#allocation5 + $0xa4] sm:$0xf] }
  0xf0   : > { %2697 = vmatpush.bf16.msrb.mxu1 %v5178_v56  ;;  %v5158_v56 = vor.u32 %v6201_v39, %v5155_v31  ;;  %v5385_v39 = vld [vmem:[#allocation5 + $0x320] sm:$0xf]  ;;  %v6260_v31 = vld [vmem:[#allocation5 + $0x324] sm:$0xf0] }
  0xf1   : > { %2733 = vmatpush.bf16.msrb.mxu3 %v5306_v38  ;;  %v1592_v13 = vpop.f32.mrf.mxu3  ;;  %v5019_v38 = vld [vmem:[#allocation5 + $0x48] sm:$0xf0] }
  0xf2   : > { %2780 = vmatpush.bf16.msra.mxu2 %v5110_v26  ;;  %v7062_v26 = vor.u32 %v6157_v41, %v4973_v50  ;;  %v5022_v0 = vor.u32 %v6167_v40, %v5019_v38  ;;  %v5011_v13 = vld [vmem:[#allocation5 + $0x38] sm:$0xf0]  ;;  %v5003_v50 = vld [vmem:[#allocation5 + $0x28] sm:$0xf0]  ;;  %v5386_v40 = vor.u32 %v6260_v31, %v5385_v39 }
  0xf3   : > { %2744 = vmatpush.bf16.msra.mxu0 %v5426_v58  ;;  %v4975_v58 = vld [vmem:[#allocation2 + $0x38] sm:$0xf0] }
  0xf4   : > { %2762 = vmatpush.bf16.msra.mxu1 %v5046_v60  ;;  %v7064_v60 = vperm.slane %v718_v44, 0  ;;  %v7068_v9 = vor.u32 %v6154_v25, %v4975_v58  ;;  %v6163_v44 = vld [vmem:[#allocation5 + $0x24] sm:$0xf]  ;;  %v6177_v25 = vld [vmem:[#allocation5 + $0x94] sm:$0xf] }
  0xf5   : > { %2798 = vmatpush.bf16.msra.mxu3 %v5174_v62  ;;  %v7056_v45 = vpop.f32.mrf.mxu1  ;;  %v5402_v62 = vor.u32 %v6264_v57, %v5401_v54  ;;  %v6195_v54 = vld [vmem:[#allocation5 + $0x124] sm:$0xf]  ;;  %v5006_v38 = vor.u32 %v6163_v44, %v5003_v50  ;;  %v5059_v58 = vld [vmem:[#allocation5 + $0x98] sm:$0xf0]  ;;  %v4987_v44 = vld [vmem:[#allocation5 + $0x8] sm:$0xf0] }
  0xf6   : > { %2781 = vmatpush.bf16.msra.mxu2 %v5102_v12  ;;  %v6165_v12 = vld [vmem:[#allocation5 + $0x34] sm:$0xf]  ;;  %v1532_v15 = vadd.f32 %v7006_v23, %v7064_v60  ;;  %v1534_v2 = vadd.f32 %v7014_v7, %v7064_v60  ;;  %v2046_v7 = vunpack.c.h.b16 %v7081_v52  ;;  %v6191_v50 = vld [vmem:[#allocation5 + $0x104] sm:$0xf] }
  0xf7   : > { %2745 = vmatpush.bf16.msra.mxu0 %v5418_v14  ;;  %v7073_v14 = vpop.f32.mrf.mxu0  ;;  %v5014_v16 = vor.u32 %v6165_v12, %v5011_v13  ;;  %v6193_v13 = vld [vmem:[#allocation5 + $0x114] sm:$0xf] }
  0xf8   : > { %2763 = vmatpush.bf16.msra.mxu1 %v5038_v8  ;;  %v5150_v8 = vor.u32 %v6199_v30, %v5147_v6  ;;  %v1550_v41 = vadd.f32 %v7008_v3, %v1532_v15  ;;  %v6258_v30 = vld [vmem:[#allocation5 + $0x314] sm:$0xf0]  ;;  %v2045_v3 = vunpack.c.l.b16 %v7081_v52  ;;  %v5363_v52 = vld [vmem:[#allocation5 + $0x2f8] sm:$0xf0] }
  0xf9   : > { %2799 = vmatpush.bf16.msra.mxu3 %v5166_v21  ;;  %2680 = vmatmul.bf16.vlgmr.msrb.gmra.mxu0 %v7058_v46  ;;  %v6197_v21 = vld [vmem:[#allocation5 + $0x134] sm:$0xf] }
  0xfa   : > { %2782 = vmatpush.bf16.msra.mxu2 %v5094_v34  ;;  %2698 = vmatmul.bf16.vlgmr.msrb.gmra.mxu1 %v7060_v42  ;;  %v5067_v34 = vld [vmem:[#allocation5 + $0xa8] sm:$0xf0]  ;;  %v5142_v23 = vor.u32 %v6197_v21, %v5139_v22  ;;  %v1568_v4 = vadd.f32 %v7012_v1, %v1550_v41  ;;  %v6175_v21 = vld [vmem:[#allocation5 + $0x84] sm:$0xf]  ;;  %v7100_v39 = vpack.c.b16 %v2045_v3, %v2045_v3  ;;  %v6269_v3 = vld [vmem:[#allocation5 + $0x374] sm:$0xf] }
  0xfb   : > { %2746 = vmatpush.bf16.msra.mxu0 %v5410_v37  ;;  %v2043_v37 = vunpack.c.l.b16 %v1891_v19  ;;  %v5070_v53 = vor.u32 %v6179_v59, %v5067_v34  ;;  %v5051_v22 = vld [vmem:[#allocation5 + $0x88] sm:$0xf0]  ;;  %v6256_v59 = vld [vmem:[#allocation5 + $0x304] sm:$0xf0]  ;;  %v6159_v34 = vld [vmem:[#allocation5 + $0x4] sm:$0xf] }
  0xfc   : > { %2764 = vmatpush.bf16.msra.mxu1 %v5030_v29  ;;  %2716 = vmatmul.bf16.vlgmr.msrb.gmra.mxu2 %v7062_v26  ;;  %v7071_v55 = vpop.f32.mrf.mxu2  ;;  %v2044_v29 = vunpack.c.h.b16 %v1891_v19  ;;  %v1586_v41 = vadd.f32 %v7022_v33, %v1568_v4 }
  0xfd   : > { %2800 = vmatpush.bf16.msra.mxu3 %v5158_v56  ;;  %v7077_v17 = vpop.f32.mrf.mxu1  ;;  %v5131_v56 = vld [vmem:[#allocation5 + $0x128] sm:$0xf0]  ;;  %v7091_v11 = vpack.c.b16 %v2043_v37, %v2043_v37  ;;  %v1552_v37 = vadd.f32 %v7016_v48, %v1534_v2 }
  0xfe   : > { %2783 = vmatpush.bf16.msra.mxu2 %v5086_v36  ;;  %v5377_v36 = vld [vmem:[#allocation5 + $0x310] sm:$0xf]  ;;  %v5134_v6 = vor.u32 %v6195_v54, %v5131_v56  ;;  %v7093_v12 = vpack.c.b16 %v2044_v29, %v2044_v29  ;;  %v6253_v29 = vld [vmem:[#allocation5 + $0x2f4] sm:$0xf]  ;;  %v5054_v56 = vor.u32 %v6175_v21, %v5051_v22  ;;  %v1604_v48 = vadd.f32 %v7053_v18, %v1586_v41  ;;  %v5227_v22 = vld [vmem:[#allocation5 + $0x1e8] sm:$0xf0] }
  0xff   : > { %2747 = vmatpush.bf16.msra.mxu0 %v5402_v62  ;;  %2734 = vmatmul.bf16.vlgmr.msrb.gmra.mxu3 %v7068_v9  ;;  %v6161_v62 = vld [vmem:[#allocation5 + $0x14] sm:$0xf]  ;;  %v5378_v1 = vor.u32 %v6258_v30, %v5377_v36  ;;  %v1570_v33 = vadd.f32 %v7026_v49, %v1552_v37  ;;  %v7110_v36 = vpack.c.b16 %v2046_v7, %v2046_v7  ;;  %v5355_v49 = vld [vmem:[#allocation5 + $0x2e8] sm:$0xf0]  ;;  %v6235_v7 = vld [vmem:[#allocation5 + $0x264] sm:$0xf] }
 0x100   : > { %2765 = vmatpush.bf16.msra.mxu1 %v5022_v0  ;;  %v4995_v0 = vld [vmem:[#allocation5 + $0x18] sm:$0xf0]  ;;  %v4990_v30 = vor.u32 %v6159_v34, %v4987_v44  ;;  %v5366_v4 = vor.u32 %v6253_v29, %v5363_v52  ;;  %v6249_v37 = vld [vmem:[#allocation5 + $0x2d4] sm:$0xf] }
 0x101   : > { %2801 = vmatpush.bf16.msra.mxu3 %v5150_v8  ;;  %v5123_v8 = vld [vmem:[#allocation5 + $0x118] sm:$0xf0]  ;;  %v1588_v34 = vadd.f32 %v7034_v61, %v1570_v33  ;;  %v6158_v61 = vld [vmem:[#allocation2 + $0x3c] sm:$0xf0] }
 0x102   : > { %2784 = vmatpush.bf16.msra.mxu2 %v5078_v20  ;;  %v7083_v57 = vpop.f32.mrf.mxu3  ;;  %v5062_v20 = vor.u32 %v6177_v25, %v5059_v58  ;;  %v5126_v31 = vor.u32 %v6193_v13, %v5123_v8  ;;  %v6237_v25 = vld [vmem:[#allocation5 + $0x274] sm:$0xf]  ;;  %v5299_v58 = vld [vmem:[#allocation5 + $0x278] sm:$0xf0]  ;;  %v6251_v8 = vld [vmem:[#allocation5 + $0x2e4] sm:$0xf] }
 0x103   : > { %2748 = vmatpush.bf16.msra.mxu0 %v5394_v27  ;;  %v4998_v27 = vor.u32 %v6161_v62, %v4995_v0  ;;  %v1537_v62 = vadd.f32 %v7029_v51, %v7064_v60  ;;  %v5302_v13 = vor.u32 %v6237_v25, %v5299_v58  ;;  %v1622_v51 = vadd.f32 %v7056_v45, %v1604_v48  ;;  %v5347_v29 = vld [vmem:[#allocation5 + $0x2d8] sm:$0xf0]  ;;  %v6265_v48 = vld [vmem:[#allocation5 + $0x354] sm:$0xf] }
 0x104   : > { %2766 = vmatpush.bf16.msra.mxu1 %v5014_v16  ;;  %v7089_v63 = vpop.f32.mrf.mxu2  ;;  %v5369_v16 = vld [vmem:[#allocation5 + $0x300] sm:$0xf]  ;;  %v5358_v44 = vor.u32 %v6251_v8, %v5355_v49  ;;  %v5283_v25 = vld [vmem:[#allocation5 + $0x258] sm:$0xf0]  ;;  %v5350_v33 = vor.u32 %v6249_v37, %v5347_v29  ;;  %v5339_v8 = vld [vmem:[#allocation5 + $0x2c8] sm:$0xf0] }
 0x105   : > { %2802 = vmatpush.bf16.msra.mxu3 %v5142_v23  ;;  %v5115_v23 = vld [vmem:[#allocation5 + $0x108] sm:$0xf0]  ;;  %v6215_v49 = vld [vmem:[#allocation5 + $0x1c4] sm:$0xf]  ;;  %v5203_v29 = vld [vmem:[#allocation5 + $0x1b8] sm:$0xf0] }
 0x106   : > { %2785 = vmatpush.bf16.msra.mxu2 %v5070_v53  ;;  %v7095_v15 = vpop.f32.mrf.mxu0  ;;  %v6221_v53 = vld [vmem:[#allocation5 + $0x1f4] sm:$0xf]  ;;  %v5118_v0 = vor.u32 %v6191_v50, %v5115_v23  ;;  %v1640_v50 = vadd.f32 %v7071_v55, %v1622_v51  ;;  %v1852_v23 = vperm.slane %v7051_v10, 1 }
 0x107   : > { %v7097_v19 = vpop.f32.mrf.mxu1  ;;  %2749 = vmatpush.bf16.msra.mxu0 %v5386_v40  ;;  %v5370_v40 = vor.u32 %v6256_v59, %v5369_v16  ;;  %v6267_v16 = vld [vmem:[#allocation5 + $0x364] sm:$0xf]  ;;  %v5419_v59 = vld [vmem:[#allocation5 + $0x368] sm:$0xf0]  ;;  %v6233_v55 = vld [vmem:[#allocation5 + $0x254] sm:$0xf] }
 0x108   : > { %2767 = vmatpush.bf16.msra.mxu1 %v5006_v38  ;;  %v5235_v38 = vld [vmem:[#allocation5 + $0x1f8] sm:$0xf0] }
 0x109   : > { %2803 = vmatpush.bf16.msra.mxu3 %v5134_v6  ;;  %2685 = vmatmul.bf16.gmra.mxu0 %v7091_v11  ;;  %v5427_v6 = vld [vmem:[#allocation5 + $0x378] sm:$0xf0]  ;;  %v5238_v2 = vor.u32 %v6221_v53, %v5235_v38  ;;  %v4981_v53 = vld [vmem:[#allocation2 + $0x1c] sm:$0xf] }
 0x10a   : > { %2703 = vmatmul.bf16.gmra.mxu1 %v7093_v12  ;;  %v7106_v54 = vpop.f32.mrf.mxu3  ;;  %2786 = vmatpush.bf16.msra.mxu2 %v5062_v20  ;;  %v6219_v20 = vld [vmem:[#allocation5 + $0x1e4] sm:$0xf]  ;;  %v5430_v21 = vor.u32 %v6269_v3, %v5427_v6  ;;  %v5219_v38 = vld [vmem:[#allocation5 + $0x1d8] sm:$0xf0]  ;;  %v1658_v3 = vadd.f32 %v7083_v57, %v1640_v50  ;;  %v7129_v6 = vperm.slane %v1852_v23, 1 }
 0x10b   : > { %2750 = vmatpush.bf16.msra.mxu0 %v5378_v1  ;;  %v5230_v45 = vor.u32 %v6219_v20, %v5227_v22  ;;  %v6231_v22 = vld [vmem:[#allocation5 + $0x244] sm:$0xf]  ;;  %v6245_v23 = vld [vmem:[#allocation5 + $0x2b4] sm:$0xf] }
 0x10c   : > { %2768 = vmatpush.bf16.msra.mxu1 %v4998_v27  ;;  %2721 = vmatmul.bf16.gmra.mxu2 %v7100_v39  ;;  %v5291_v27 = vld [vmem:[#allocation5 + $0x268] sm:$0xf0] }
 0x10d   : > { %2804 = vmatpush.bf16.msra.mxu3 %v5126_v31  ;;  %v1555_v31 = vadd.f32 %v7031_v28, %v1537_v62  ;;  %v5294_v41 = vor.u32 %v6235_v7, %v5291_v27  ;;  %v5422_v28 = vor.u32 %v6267_v16, %v5419_v59  ;;  %v1864_v62 = vperm.slane %v7051_v10, 2  ;;  %v5275_v7 = vld [vmem:[#allocation5 + $0x248] sm:$0xf0] }
 0x10e   : > { %v1610_v18 = vpop.f32.mrf.mxu0  ;;  %2787 = vmatpush.bf16.msra.mxu2 %v5054_v56  ;;  %v6217_v56 = vld [vmem:[#allocation5 + $0x1d4] sm:$0xf] }
 0x10f   : > { %v1628_v1 = vpop.f32.mrf.mxu1  ;;  %2751 = vmatpush.bf16.msra.mxu0 %v5370_v40  ;;  %2739 = vmatmul.bf16.gmra.mxu3 %v7110_v36  ;;  %v7117_v60 = vpop.f32.mrf.mxu2  ;;  %v1606_v40 = vadd.f32 %v7073_v14, %v1588_v34  ;;  %v1573_v58 = vadd.f32 %v7036_v5, %v1555_v31  ;;  %v5222_v5 = vor.u32 %v6217_v56, %v5219_v38  ;;  %v7141_v59 = vperm.slane %v1864_v62, 2  ;;  %v6263_v34 = vld [vmem:[#allocation5 + $0x344] sm:$0xf]  ;;  %v5403_v31 = vld [vmem:[#allocation5 + $0x348] sm:$0xf0] }
 0x110   : > { %2769 = vmatpush.bf16.msra.mxu1 %v4990_v30  ;;  %v5411_v30 = vld [vmem:[#allocation5 + $0x358] sm:$0xf0] }
 0x111   : > { %2805 = vmatpush.bf16.msra.mxu3 %v5118_v0  ;;  %v7132_v0 = vor.u32 %v6158_v61, %v4981_v53  ;;  %v1624_v57 = vadd.f32 %v7077_v17, %v1606_v40  ;;  %v5414_v1 = vor.u32 %v6265_v48, %v5411_v30  ;;  %v1591_v27 = vadd.f32 %v7042_v47, %v1573_v58  ;;  %v6229_v53 = vld [vmem:[#allocation5 + $0x234] sm:$0xf]  ;;  %v5267_v61 = vld [vmem:[#allocation5 + $0x238] sm:$0xf0]  ;;  %v1893_v40 = vld [vmem:[#allocation2 + $0x64] sm:$0x1] }
 0x112   : > { %2852 = vmatpush.bf16.msrb.mxu2 %v5366_v4  ;;  %v7123_v52 = vpop.f32.mrf.mxu3  ;;  %v5278_v47 = vor.u32 %v6231_v22, %v5275_v7  ;;  %v5270_v48 = vor.u32 %v6229_v53, %v5267_v61  ;;  %v6243_v30 = vld [vmem:[#allocation5 + $0x2a4] sm:$0xf]  ;;  %v6241_v7 = vld [vmem:[#allocation5 + $0x294] sm:$0xf]  ;;  %v5307_v61 = vld [vmem:[#allocation5 + $0x288] sm:$0xf0] }
 0x113   : > { %2816 = vmatpush.bf16.msrb.mxu0 %v5238_v2  ;;  %v5286_v2 = vor.u32 %v6233_v55, %v5283_v25  ;;  %v1642_v51 = vadd.f32 %v7089_v63, %v1624_v57  ;;  %v1609_v63 = vadd.f32 %v7095_v15, %v1591_v27  ;;  %v6261_v55 = vld [vmem:[#allocation5 + $0x334] sm:$0xf]  ;;  %v5395_v25 = vld [vmem:[#allocation5 + $0x338] sm:$0xf0] }
 0x114   : > { %2834 = vmatpush.bf16.msrb.mxu1 %v5302_v13  ;;  %v6247_v13 = vld [vmem:[#allocation5 + $0x2c4] sm:$0xf] }
 0x115   : > { %2870 = vmatpush.bf16.msrb.mxu3 %v5430_v21  ;;  %v5211_v21 = vld [vmem:[#allocation5 + $0x1c8] sm:$0xf0]  ;;  %v5342_v17 = vor.u32 %v6247_v13, %v5339_v8  ;;  %v5398_v8 = vor.u32 %v6261_v55, %v5395_v25 }
 0x116   : > { %2853 = vmatpush.bf16.msrb.mxu2 %v5358_v44  ;;  %v1675_v14 = vpop.f32.mrf.mxu0  ;;  %v5214_v50 = vor.u32 %v6215_v49, %v5211_v21  ;;  %v5259_v13 = vld [vmem:[#allocation5 + $0x228] sm:$0xf0] }
 0x117   : > { %2817 = vmatpush.bf16.msrb.mxu0 %v5230_v45  ;;  %v7134_v4 = vpop.f32.mrf.mxu1  ;;  %v1646_v20 = vpop.f32.mrf.mxu2  ;;  %v1676_v18 = vadd.f32 %v1675_v14, %v1658_v3  ;;  %v5331_v45 = vld [vmem:[#allocation5 + $0x2b8] sm:$0xf0]  ;;  %v6211_v3 = vld [vmem:[#allocation5 + $0x1a4] sm:$0xf]  ;;  %v5243_v55 = vld [vmem:[#allocation5 + $0x208] sm:$0xf0] }
 0x118   : > { %2835 = vmatpush.bf16.msrb.mxu1 %v5294_v41  ;;  %v6213_v41 = vld [vmem:[#allocation5 + $0x1b4] sm:$0xf]  ;;  %v5334_v38 = vor.u32 %v6245_v23, %v5331_v45  ;;  %v2047_v20 = vunpack.c.l.b16 %v1893_v40  ;;  %v5379_v45 = vld [vmem:[#allocation5 + $0x318] sm:$0xf0] }
 0x119   : > { %2871 = vmatpush.bf16.msrb.mxu3 %v5422_v28  ;;  %v1846_v16 = vmax.f32 %v1676_v18, 0.0  ;;  %2752 = vmatmul.bf16.vlgmr.msra.gmra.mxu0 %v7132_v0  ;;  %v1660_v28 = vadd.f32 %v7106_v54, %v1642_v51  ;;  %v1627_v54 = vadd.f32 %v7097_v19, %v1609_v63  ;;  %v6259_v18 = vld [vmem:[#allocation5 + $0x324] sm:$0xf]  ;;  %v5315_v51 = vld [vmem:[#allocation5 + $0x298] sm:$0xf0] }
 0x11a   : > { %2854 = vmatpush.bf16.msrb.mxu2 %v5350_v33  ;;  %2770 = vmatmul.bf16.vlgmr.msra.gmra.mxu1 %v7018_v32  ;;  %v1664_v44 = vpop.f32.mrf.mxu3  ;;  %v5406_v32 = vor.u32 %v6263_v34, %v5403_v31  ;;  %v5206_v33 = vor.u32 %v6213_v41, %v5203_v29  ;;  %v6225_v34 = vld [vmem:[#allocation5 + $0x214] sm:$0xf]  ;;  %v5251_v31 = vld [vmem:[#allocation5 + $0x218] sm:$0xf0]  ;;  %v6239_v41 = vld [vmem:[#allocation5 + $0x284] sm:$0xf]  ;;  %v5318_v29 = vor.u32 %v6241_v7, %v5315_v51 }
 0x11b   : > { %2818 = vmatpush.bf16.msrb.mxu0 %v5222_v5  ;;  %v1858_v37 = vmul.f32 %v7129_v6, %v1846_v16  ;;  %v5195_v5 = vld [vmem:[#allocation5 + $0x1a8] sm:$0xf0]  ;;  %v1645_v49 = vadd.f32 %v7117_v60, %v1627_v54  ;;  %v6209_v16 = vld [vmem:[#allocation5 + $0x194] sm:$0xf]  ;;  %v5254_v40 = vor.u32 %v6225_v34, %v5251_v31  ;;  %v5636_v7 = vld [vmem:[#allocation7 + $0x160] sm:$0xf] }
 0x11c   : > { %2836 = vmatpush.bf16.msrb.mxu1 %v5286_v2  ;;  %2788 = vmatmul.bf16.vlgmr.msra.gmra.mxu2 %v7024_v35  ;;  %v5323_v35 = vld [vmem:[#allocation5 + $0x2a8] sm:$0xf0]  ;;  %v6227_v2 = vld [vmem:[#allocation5 + $0x224] sm:$0xf]  ;;  %v6257_v23 = vld [vmem:[#allocation5 + $0x314] sm:$0xf] }
 0x11d   : > { %2872 = vmatpush.bf16.msrb.mxu3 %v5414_v1  ;;  %v1870_v56 = vadd.f32 %v7141_v59, %v1858_v37  ;;  %v5326_v19 = vor.u32 %v6243_v30, %v5323_v35  ;;  %v5387_v1 = vld [vmem:[#allocation5 + $0x328] sm:$0xf0]  ;;  %v5262_v22 = vor.u32 %v6227_v2, %v5259_v13  ;;  %v1663_v44 = vadd.f32 %v7123_v52, %v1645_v49  ;;  %v6323_v35 = vld [vmem:[#allocation7 + $0x174] sm:$0xf0]  ;;  %v5580_v13 = vld [vmem:[#allocation7 + $0xf0] sm:$0xf] }
 0x11e   : > { %2855 = vmatpush.bf16.msrb.mxu2 %v5342_v17  ;;  %v1677_v15 = vpop.f32.mrf.mxu0  ;;  %v5187_v17 = vld [vmem:[#allocation5 + $0x198] sm:$0xf0]  ;;  %v5390_v60 = vor.u32 %v6259_v18, %v5387_v1  ;;  %v5382_v25 = vor.u32 %v6257_v23, %v5379_v45  ;;  %v6291_v2 = vld [vmem:[#allocation7 + $0x74] sm:$0xf0]  ;;  %v5508_v51 = vld [vmem:[#allocation7 + $0x60] sm:$0xf] }
 0x11f   : > { %v7150_v58 = vpop.f32.mrf.mxu1  ;;  %2819 = vmatpush.bf16.msrb.mxu0 %v5214_v50  ;;  %1876 = vst [vmem:[%s7154_s20] sm:$0xff] %v1870_v56  ;;  %2806 = vmatmul.bf16.vlgmr.msra.gmra.mxu3 %v7058_v46  ;;  %v7158_v62 = vpop.f32.mrf.mxu2  ;;  %v1678_v14 = vadd.f32 %v1677_v15, %v1660_v28  ;;  %v5198_v46 = vor.u32 %v6211_v3, %v5195_v5  ;;  %v5179_v28 = vld [vmem:[#allocation5 + $0x188] sm:$0xf0]  ;;  %v6255_v15 = vld [vmem:[#allocation5 + $0x304] sm:$0xf]  ;;  %v5516_v3 = vld [vmem:[#allocation7 + $0x70] sm:$0xf] }
 0x120   : > { %2837 = vmatpush.bf16.msrb.mxu1 %v5278_v47  ;;  %v7166_v47 = vpack.c.b16 %v2047_v20, %v2047_v20  ;;  %v5190_v53 = vor.u32 %v6209_v16, %v5187_v17  ;;  %v5708_v20 = vld [vmem:[#allocation7 + $0x1f0] sm:$0xf]  ;;  %v5572_v34 = vld [vmem:[#allocation7 + $0xe0] sm:$0xf]  ;;  %v6305_v31 = vld [vmem:[#allocation7 + $0xe4] sm:$0xf0] }
 0x121   : > { %2873 = vmatpush.bf16.msrb.mxu3 %v5406_v32  ;;  %v1848_v57 = vmax.f32 %v1678_v14, 0.0  ;;  %v6207_v32 = vld [vmem:[#allocation5 + $0x184] sm:$0xf]  ;;  %v5310_v14 = vor.u32 %v6239_v41, %v5307_v61  ;;  %v5573_v45 = vor.u32 %v6305_v31, %v5572_v34  ;;  %v5628_v41 = vld [vmem:[#allocation7 + $0x150] sm:$0xf] }
 0x122   : > { %2856 = vmatpush.bf16.msrb.mxu2 %v5334_v38  ;;  %v7161_v21 = vpop.f32.mrf.mxu3  ;;  %v6223_v38 = vld [vmem:[#allocation5 + $0x204] sm:$0xf]  ;;  %v5182_v5 = vor.u32 %v6207_v32, %v5179_v28  ;;  %v5500_v61 = vld [vmem:[#allocation7 + $0x50] sm:$0xf]  ;;  %v6303_v28 = vld [vmem:[#allocation7 + $0xd4] sm:$0xf0] }
 0x123   : > { %2820 = vmatpush.bf16.msrb.mxu0 %v5206_v33  ;;  %v1860_v27 = vmul.f32 %v7129_v6, %v1848_v57  ;;  %v5371_v33 = vld [vmem:[#allocation5 + $0x308] sm:$0xf0]  ;;  %v5246_v57 = vor.u32 %v6223_v38, %v5243_v55  ;;  %v5564_v32 = vld [vmem:[#allocation7 + $0xd0] sm:$0xf]  ;;  %v6335_v38 = vld [vmem:[#allocation7 + $0x1d4] sm:$0xf0] }
 0x124   : > { %2838 = vmatpush.bf16.msrb.mxu1 %v5270_v48  ;;  %v5644_v48 = vld [vmem:[#allocation7 + $0x170] sm:$0xf] }
 0x125   : > { %2874 = vmatpush.bf16.msrb.mxu3 %v5398_v8  ;;  %v1872_v50 = vadd.f32 %v7141_v59, %v1860_v27  ;;  %v6307_v8 = vld [vmem:[#allocation7 + $0xf4] sm:$0xf0]  ;;  %v5645_v18 = vor.u32 %v6323_v35, %v5644_v48  ;;  %v6321_v27 = vld [vmem:[#allocation7 + $0x164] sm:$0xf0]  ;;  %v5620_v48 = vld [vmem:[#allocation7 + $0x140] sm:$0xf] }
 0x126   : > { %2857 = vmatpush.bf16.msrb.mxu2 %v5326_v19  ;;  %v1680_v63 = vpop.f32.mrf.mxu0  ;;  %v6339_v19 = vld [vmem:[#allocation7 + $0x1f4] sm:$0xf0]  ;;  %v5492_v35 = vld [vmem:[#allocation7 + $0x40] sm:$0xf] }
 0x127   : > { %v7168_v37 = vpop.f32.mrf.mxu1  ;;  %2821 = vmatpush.bf16.msrb.mxu0 %v5198_v46  ;;  %1878 = vst [vmem:[%s7154_s20 + $0x10] sm:$0xff] %v1872_v50  ;;  %v7171_v52 = vpop.f32.mrf.mxu2  ;;  %v1681_v56 = vadd.f32 %v1680_v63, %v1663_v44  ;;  %v5517_v46 = vor.u32 %v6291_v2, %v5516_v3  ;;  %v6337_v44 = vld [vmem:[#allocation7 + $0x1e4] sm:$0xf0]  ;;  %v5637_v50 = vor.u32 %v6321_v27, %v5636_v7  ;;  %v6319_v63 = vld [vmem:[#allocation7 + $0x154] sm:$0xf0] }
 0x128   : > { %2839 = vmatpush.bf16.msrb.mxu1 %v5262_v22  ;;  %v5581_v22 = vor.u32 %v6307_v8, %v5580_v13  ;;  %v5556_v2 = vld [vmem:[#allocation7 + $0xc0] sm:$0xf]  ;;  %v6301_v13 = vld [vmem:[#allocation7 + $0xc4] sm:$0xf0]  ;;  %v719_v8 = vperm.slane %v7051_v10, 4 }
 0x129   : > { %2875 = vmatpush.bf16.msrb.mxu3 %v5390_v60  ;;  %v1850_v30 = vmax.f32 %v1681_v56, 0.0  ;;  %2757 = vmatmul.bf16.gmra.mxu0 %v7166_v47  ;;  %v6289_v60 = vld [vmem:[#allocation7 + $0x64] sm:$0xf0]  ;;  %v5629_v56 = vor.u32 %v6319_v63, %v5628_v41  ;;  %v6283_v7 = vld [vmem:[#allocation7 + $0x34] sm:$0xf0] }
 0x12a   : > { %2775 = vmatmul.bf16.gmra.mxu1 %v7038_v24  ;;  %v7175_v54 = vpop.f32.mrf.mxu3  ;;  %2858 = vmatpush.bf16.msrb.mxu2 %v5318_v29  ;;  %v5374_v24 = vor.u32 %v6255_v15, %v5371_v33  ;;  %v5509_v23 = vor.u32 %v6289_v60, %v5508_v51  ;;  %v5565_v33 = vor.u32 %v6303_v28, %v5564_v32  ;;  %v5548_v27 = vld [vmem:[#allocation7 + $0xb0] sm:$0xf]  ;;  %v6299_v51 = vld [vmem:[#allocation7 + $0xb4] sm:$0xf0]  ;;  %v6297_v41 = vld [vmem:[#allocation7 + $0xa4] sm:$0xf0] }
 0x12b   : > { %2822 = vmatpush.bf16.msrb.mxu0 %v5190_v53  ;;  %v1862_v49 = vmul.f32 %v7129_v6, %v1850_v30  ;;  %v5709_v6 = vor.u32 %v6339_v19, %v5708_v20  ;;  %v6317_v30 = vld [vmem:[#allocation7 + $0x144] sm:$0xf0]  ;;  %v5549_v31 = vor.u32 %v6299_v51, %v5548_v27  ;;  %v6306_v51 = vld [vmem:[#allocation7 + $0xf4] sm:$0xf] }
 0x12c   : > { %2840 = vmatpush.bf16.msrb.mxu1 %v5254_v40  ;;  %2793 = vmatmul.bf16.gmra.mxu2 %v7044_v43  ;;  %v5692_v40 = vld [vmem:[#allocation7 + $0x1d0] sm:$0xf]  ;;  %v6333_v20 = vld [vmem:[#allocation7 + $0x1c4] sm:$0xf0] }
 0x12d   : > { %2876 = vmatpush.bf16.msrb.mxu3 %v5382_v25  ;;  %v1874_v1 = vadd.f32 %v7141_v59, %v1862_v49  ;;  %v5700_v59 = vld [vmem:[#allocation7 + $0x1e0] sm:$0xf]  ;;  %v5621_v49 = vor.u32 %v6317_v30, %v5620_v48  ;;  %v6329_v32 = vld [vmem:[#allocation7 + $0x1a4] sm:$0xf0]  ;;  %v5532_v30 = vld [vmem:[#allocation7 + $0x90] sm:$0xf] }
 0x12e   : > { %v1682_v16 = vpop.f32.mrf.mxu0  ;;  %2859 = vmatpush.bf16.msrb.mxu2 %v5310_v14  ;;  %v5701_v53 = vor.u32 %v6337_v44, %v5700_v59  ;;  %v5693_v14 = vor.u32 %v6335_v38, %v5692_v40  ;;  %v5604_v59 = vld [vmem:[#allocation7 + $0x120] sm:$0xf]  ;;  %v6313_v44 = vld [vmem:[#allocation7 + $0x124] sm:$0xf0]  ;;  %v5596_v40 = vld [vmem:[#allocation7 + $0x110] sm:$0xf] }
 0x12f   : > { %v1700_v17 = vpop.f32.mrf.mxu1  ;;  %2823 = vmatpush.bf16.msrb.mxu0 %v5182_v5  ;;  %1880 = vst [vmem:[%s7154_s20 + $0x20] sm:$0x3] %v1874_v1  ;;  %2811 = vmatmul.bf16.gmra.mxu3 %v7091_v11  ;;  %v7182_v43 = vpop.f32.mrf.mxu2  ;;  %v6287_v11 = vld [vmem:[#allocation7 + $0x54] sm:$0xf0]  ;;  %v6285_v5 = vld [vmem:[#allocation7 + $0x44] sm:$0xf0] }
 0x130   : > { %2841 = vmatpush.bf16.msrb.mxu1 %v5246_v57  ;;  %v5501_v15 = vor.u32 %v6287_v11, %v5500_v61  ;;  %v5684_v57 = vld [vmem:[#allocation7 + $0x1c0] sm:$0xf]  ;;  %v5612_v1 = vld [vmem:[#allocation7 + $0x130] sm:$0xf]  ;;  %v6331_v17 = vld [vmem:[#allocation7 + $0x1b4] sm:$0xf0]  ;;  %v5605_v61 = vor.u32 %v6313_v44, %v5604_v59 }
 0x131   : > { %2877 = vmatpush.bf16.msrb.mxu3 %v5374_v24  ;;  %v5493_v24 = vor.u32 %v6285_v5, %v5492_v35  ;;  %v5685_v10 = vor.u32 %v6333_v20, %v5684_v57  ;;  %v5676_v16 = vld [vmem:[#allocation7 + $0x1b0] sm:$0xf]  ;;  %v5668_v11 = vld [vmem:[#allocation7 + $0x1a0] sm:$0xf]  ;;  %v6311_v38 = vld [vmem:[#allocation7 + $0x114] sm:$0xf0] }
 0x132   : > { %3503 = vmatpush.bf16.msra.mxu2 %v5645_v18  ;;  %v7184_v29 = vpop.f32.mrf.mxu3  ;;  %v5557_v18 = vor.u32 %v6301_v13, %v5556_v2  ;;  %v5677_v63 = vor.u32 %v6331_v17, %v5676_v16  ;;  %v5669_v48 = vor.u32 %v6329_v32, %v5668_v11  ;;  %v6295_v35 = vld [vmem:[#allocation7 + $0x94] sm:$0xf0]  ;;  %v5597_v13 = vor.u32 %v6311_v38, %v5596_v40  ;;  %v6309_v57 = vld [vmem:[#allocation7 + $0x104] sm:$0xf0]  ;;  %v6290_v44 = vld [vmem:[#allocation7 + $0x74] sm:$0xf] }
 0x133   : > { %3467 = vmatpush.bf16.msra.mxu0 %v5517_v46  ;;  %v6315_v46 = vld [vmem:[#allocation7 + $0x134] sm:$0xf0]  ;;  %v5574_v11 = vld [vmem:[#allocation7 + $0xe8] sm:$0xf0]  ;;  %v5764_v32 = vld [vmem:[#allocation7 + $0x260] sm:$0xf] }
 0x134   : > { %3485 = vmatpush.bf16.msra.mxu1 %v5581_v22  ;;  %v5484_v22 = vld [vmem:[#allocation7 + $0x30] sm:$0xf]  ;;  %v6355_v59 = vld [vmem:[#allocation7 + $0x274] sm:$0xf0]  ;;  %v6353_v40 = vld [vmem:[#allocation7 + $0x264] sm:$0xf0] }
 0x135   : > { %3521 = vmatpush.bf16.msra.mxu3 %v5709_v6  ;;  %v5485_v34 = vor.u32 %v6283_v7, %v5484_v22  ;;  %v5652_v22 = vld [vmem:[#allocation7 + $0x180] sm:$0xf]  ;;  %v6325_v7 = vld [vmem:[#allocation7 + $0x184] sm:$0xf0]  ;;  %v6288_v38 = vld [vmem:[#allocation7 + $0x64] sm:$0xf] }
 0x136   : > { %3504 = vmatpush.bf16.msra.mxu2 %v5637_v50  ;;  %v7186_v55 = vpop.f32.mrf.mxu0  ;;  %v5476_v50 = vld [vmem:[#allocation7 + $0x20] sm:$0xf] }
 0x137   : > { %3468 = vmatpush.bf16.msra.mxu0 %v5509_v23  ;;  %v7188_v25 = vpop.f32.mrf.mxu1  ;;  %v1718_v3 = vpop.f32.mrf.mxu2  ;;  %v6281_v23 = vld [vmem:[#allocation7 + $0x24] sm:$0xf0] }
 0x138   : > { %3486 = vmatpush.bf16.msra.mxu1 %v5573_v45  ;;  %v5540_v45 = vld [vmem:[#allocation7 + $0xa0] sm:$0xf]  ;;  %v5660_v3 = vld [vmem:[#allocation7 + $0x190] sm:$0xf] }
 0x139   : > { %3522 = vmatpush.bf16.msra.mxu3 %v5701_v53  ;;  %2824 = vmatmul.bf16.vlgmr.msrb.gmra.mxu0 %v7060_v42  ;;  %v7194_v42 = vperm.slane %v719_v8, 0 }
 0x13a   : > { %3505 = vmatpush.bf16.msra.mxu2 %v5629_v56  ;;  %2842 = vmatmul.bf16.vlgmr.msrb.gmra.mxu1 %v7062_v26  ;;  %v1736_v19 = vpop.f32.mrf.mxu3  ;;  %v5613_v26 = vor.u32 %v6315_v46, %v5612_v1  ;;  %v5477_v56 = vor.u32 %v6281_v23, %v5476_v50  ;;  %v5524_v1 = vld [vmem:[#allocation7 + $0x80] sm:$0xf]  ;;  %v6293_v46 = vld [vmem:[#allocation7 + $0x84] sm:$0xf0]  ;;  %v5518_v50 = vld [vmem:[#allocation7 + $0x78] sm:$0xf0] }
 0x13b   : > { %3469 = vmatpush.bf16.msra.mxu0 %v5501_v15  ;;  %v1694_v53 = vadd.f32 %v7134_v4, %v7194_v42  ;;  %v5468_v15 = vld [vmem:[#allocation7 + $0x10] sm:$0xf]  ;;  %v5533_v19 = vor.u32 %v6295_v35, %v5532_v30  ;;  %v1696_v16 = vadd.f32 %v7150_v58, %v7194_v42  ;;  %v5646_v23 = vld [vmem:[#allocation7 + $0x178] sm:$0xf0]  ;;  %v5653_v58 = vor.u32 %v6325_v7, %v5652_v22 }
 0x13c   : > { %3487 = vmatpush.bf16.msra.mxu1 %v5565_v33  ;;  %2860 = vmatmul.bf16.vlgmr.msrb.gmra.mxu2 %v7068_v9  ;;  %v6279_v33 = vld [vmem:[#allocation7 + $0x14] sm:$0xf0]  ;;  %v1699_v35 = vadd.f32 %v7168_v37, %v7194_v42  ;;  %v5756_v37 = vld [vmem:[#allocation7 + $0x250] sm:$0xf] }
 0x13d   : > { %3523 = vmatpush.bf16.msra.mxu3 %v5693_v14  ;;  %v1712_v4 = vadd.f32 %v7158_v62, %v1694_v53  ;;  %v6327_v14 = vld [vmem:[#allocation7 + $0x194] sm:$0xf0]  ;;  %v5469_v8 = vor.u32 %v6279_v33, %v5468_v15  ;;  %v5521_v53 = vor.u32 %v6290_v44, %v5518_v50  ;;  %v5510_v15 = vld [vmem:[#allocation7 + $0x68] sm:$0xf0]  ;;  %v6320_v33 = vld [vmem:[#allocation7 + $0x164] sm:$0xf] }
 0x13e   : > { %3506 = vmatpush.bf16.msra.mxu2 %v5621_v49  ;;  %v7196_v6 = vpop.f32.mrf.mxu0  ;;  %v5588_v49 = vld [vmem:[#allocation7 + $0x100] sm:$0xf]  ;;  %v5661_v62 = vor.u32 %v6327_v14, %v5660_v3 }
 0x13f   : > { %v7198_v60 = vpop.f32.mrf.mxu1  ;;  %3470 = vmatpush.bf16.msra.mxu0 %v5493_v24  ;;  %2878 = vmatmul.bf16.vlgmr.msrb.gmra.mxu3 %v7132_v0  ;;  %v7201_v9 = vpop.f32.mrf.mxu2  ;;  %v5541_v0 = vor.u32 %v6297_v41, %v5540_v45  ;;  %v5460_v24 = vld [vmem:[#allocation7] sm:$0xf]  ;;  %v1730_v27 = vadd.f32 %v7161_v21, %v1712_v4  ;;  %v1714_v45 = vadd.f32 %v7171_v52, %v1696_v16  ;;  %v5440_v4 = vld [vmem:[#allocation2 + $0x8] sm:$0xf] }
 0x140   : > { %3488 = vmatpush.bf16.msra.mxu1 %v5557_v18  ;;  %v6277_v18 = vld [vmem:[#allocation7 + $0x4] sm:$0xf0] }
 0x141   : > { %3524 = vmatpush.bf16.msra.mxu3 %v5685_v10  ;;  %v5582_v10 = vld [vmem:[#allocation7 + $0xf8] sm:$0xf0]  ;;  %v1748_v21 = vadd.f32 %v7186_v55, %v1730_v27  ;;  %v1732_v30 = vadd.f32 %v7175_v54, %v1714_v45  ;;  %v5442_v54 = vld [vmem:[#allocation2 + $0x2c] sm:$0xf0]  ;;  %v6318_v27 = vld [vmem:[#allocation7 + $0x154] sm:$0xf] }
 0x142   : > { %3507 = vmatpush.bf16.msra.mxu2 %v5613_v26  ;;  %v7205_v28 = vpop.f32.mrf.mxu3  ;;  %v5772_v26 = vld [vmem:[#allocation7 + $0x270] sm:$0xf]  ;;  %v5585_v41 = vor.u32 %v6306_v51, %v5582_v10  ;;  %v5630_v51 = vld [vmem:[#allocation7 + $0x158] sm:$0xf0] }
 0x143   : > { %3471 = vmatpush.bf16.msra.mxu0 %v5485_v34  ;;  %v5589_v34 = vor.u32 %v6309_v57, %v5588_v49  ;;  %v1766_v52 = vadd.f32 %v7188_v25, %v1748_v21  ;;  %v5513_v25 = vor.u32 %v6288_v38, %v5510_v15  ;;  %v5566_v49 = vld [vmem:[#allocation7 + $0xd8] sm:$0xf0]  ;;  %v1750_v42 = vadd.f32 %v7196_v6, %v1732_v30  ;;  %v6300_v21 = vld [vmem:[#allocation7 + $0xc4] sm:$0xf]  ;;  %v5622_v15 = vld [vmem:[#allocation7 + $0x148] sm:$0xf0] }
 0x144   : > { %3489 = vmatpush.bf16.msra.mxu1 %v5549_v31  ;;  %v5461_v31 = vor.u32 %v6277_v18, %v5460_v24  ;;  %v6351_v18 = vld [vmem:[#allocation7 + $0x254] sm:$0xf0]  ;;  %v6316_v38 = vld [vmem:[#allocation7 + $0x144] sm:$0xf]  ;;  %v5550_v30 = vld [vmem:[#allocation7 + $0xb8] sm:$0xf0] }
 0x145   : > { %3525 = vmatpush.bf16.msra.mxu3 %v5677_v63  ;;  %v5773_v63 = vor.u32 %v6355_v59, %v5772_v26  ;;  %v1784_v14 = vadd.f32 %v7201_v9, %v1766_v52  ;;  %v1717_v9 = vadd.f32 %v7182_v43, %v1699_v35  ;;  %v5757_v44 = vor.u32 %v6351_v18, %v5756_v37  ;;  %v6298_v52 = vld [vmem:[#allocation7 + $0xb4] sm:$0xf]  ;;  %v5740_v35 = vld [vmem:[#allocation7 + $0x230] sm:$0xf] }
 0x146   : > { %3508 = vmatpush.bf16.msra.mxu2 %v5605_v61  ;;  %v7208_v5 = vpop.f32.mrf.mxu0  ;;  %v6304_v61 = vld [vmem:[#allocation7 + $0xe4] sm:$0xf]  ;;  %v6314_v37 = vld [vmem:[#allocation7 + $0x134] sm:$0xf] }
 0x147   : > { %v7210_v2 = vpop.f32.mrf.mxu1  ;;  %3472 = vmatpush.bf16.msra.mxu0 %v5477_v56  ;;  %v7212_v20 = vpop.f32.mrf.mxu2  ;;  %v5577_v3 = vor.u32 %v6304_v61, %v5574_v11  ;;  %v1802_v10 = vadd.f32 %v7205_v28, %v1784_v14  ;;  %v1735_v61 = vadd.f32 %v7184_v29, %v1717_v9  ;;  %v6296_v9 = vld [vmem:[#allocation7 + $0xa4] sm:$0xf] }
 0x148   : > { %3490 = vmatpush.bf16.msra.mxu1 %v5541_v0 }
 0x149   : > { %3526 = vmatpush.bf16.msra.mxu3 %v5669_v48  ;;  %2829 = vmatmul.bf16.gmra.mxu0 %v7093_v12  ;;  %v5525_v12 = vor.u32 %v6293_v46, %v5524_v1  ;;  %v5638_v48 = vld [vmem:[#allocation7 + $0x168] sm:$0xf0]  ;;  %v6286_v1 = vld [vmem:[#allocation7 + $0x54] sm:$0xf] }
 0x14a   : > { %2847 = vmatmul.bf16.gmra.mxu1 %v7100_v39  ;;  %v7219_v17 = vpop.f32.mrf.mxu3  ;;  %3509 = vmatpush.bf16.msra.mxu2 %v5597_v13  ;;  %v6322_v39 = vld [vmem:[#allocation7 + $0x174] sm:$0xf]  ;;  %v6273_v13 = vld [vmem:[#allocation2 + $0x28] sm:$0xf0]  ;;  %v5641_v24 = vor.u32 %v6320_v33, %v5638_v48 }
 0x14b   : > { %3473 = vmatpush.bf16.msra.mxu0 %v5469_v8  ;;  %v5649_v55 = vor.u32 %v6322_v39, %v5646_v23  ;;  %v6302_v8 = vld [vmem:[#allocation7 + $0xd4] sm:$0xf]  ;;  %v7240_v16 = vor.u32 %v6273_v13, %v5440_v4  ;;  %v5748_v39 = vld [vmem:[#allocation7 + $0x240] sm:$0xf]  ;;  %v1768_v23 = vadd.f32 %v7198_v60, %v1750_v42  ;;  %v6347_v4 = vld [vmem:[#allocation7 + $0x234] sm:$0xf0] }
 0x14c   : > { %3491 = vmatpush.bf16.msra.mxu1 %v5533_v19  ;;  %2865 = vmatmul.bf16.gmra.mxu2 %v7110_v36  ;;  %v6271_v19 = vld [vmem:[#allocation2 + $0xc] sm:$0xf]  ;;  %v6476_v46 = vld [vmem:[%s7519_s5] sm:$0x77]  ;;  %v5569_v7 = vor.u32 %v6302_v8, %v5566_v49  ;;  %v5625_v8 = vor.u32 %v6316_v38, %v5622_v15 }
 0x14d   : > { %3527 = vmatpush.bf16.msra.mxu3 %v5661_v62  ;;  %v5502_v62 = vld [vmem:[#allocation7 + $0x58] sm:$0xf0]  ;;  %v1853_v22 = vperm.slane %v6476_v46, 5  ;;  %v1865_v26 = vperm.slane %v6476_v46, 6  ;;  %v7242_v6 = vor.u32 %v6271_v19, %v5442_v54  ;;  %v2931_v54 = vld [vmem:[#allocation2 + $0x50] sm:$0x11] }
 0x14e   : > { %v1754_v56 = vpop.f32.mrf.mxu0  ;;  %3510 = vmatpush.bf16.msra.mxu2 %v5589_v34  ;;  %v5448_v34 = vld [vmem:[#allocation2 + $0x10] sm:$0xf]  ;;  %v5505_v50 = vor.u32 %v6286_v1, %v5502_v62  ;;  %v5741_v1 = vor.u32 %v6347_v4, %v5740_v35  ;;  %v5542_v46 = vld [vmem:[#allocation7 + $0xa8] sm:$0xf0] }
 0x14f   : > { %v1772_v0 = vpop.f32.mrf.mxu1  ;;  %3474 = vmatpush.bf16.msra.mxu0 %v5461_v31  ;;  %2883 = vmatmul.bf16.gmra.mxu3 %v7166_v47  ;;  %v7226_v36 = vpop.f32.mrf.mxu2  ;;  %v5765_v47 = vor.u32 %v6353_v40, %v5764_v32  ;;  %v6274_v31 = vld [vmem:[#allocation2 + $0x30] sm:$0xf0]  ;;  %v7246_v11 = vperm.slane %v1853_v22, 1  ;;  %v7254_v14 = vperm.slane %v1865_v26, 2  ;;  %v5732_v22 = vld [vmem:[#allocation7 + $0x220] sm:$0xf] }
 0x150   : > { %3492 = vmatpush.bf16.msra.mxu1 %v5525_v12  ;;  %v5558_v12 = vld [vmem:[#allocation7 + $0xc8] sm:$0xf0]  ;;  %v7248_v32 = vor.u32 %v6274_v31, %v5448_v34  ;;  %v6272_v56 = vld [vmem:[#allocation2 + $0x14] sm:$0xf]  ;;  %v6280_v26 = vld [vmem:[#allocation7 + $0x24] sm:$0xf]  ;;  %v3042_v31 = vunpack.c.l.b16 %v2931_v54 }
 0x151   : > { %3528 = vmatpush.bf16.msra.mxu3 %v5653_v58  ;;  %v5633_v58 = vor.u32 %v6318_v27, %v5630_v51  ;;  %v5450_v0 = vld [vmem:[#allocation2 + $0x34] sm:$0xf0]  ;;  %v5561_v60 = vor.u32 %v6300_v21, %v5558_v12  ;;  %v5545_v21 = vor.u32 %v6296_v9, %v5542_v46  ;;  %v6312_v12 = vld [vmem:[#allocation7 + $0x124] sm:$0xf]  ;;  %v6374_v9 = vld [vmem:[#allocation8 + $0x74] sm:$0xf0] }
 0x152   : > { %3575 = vmatpush.bf16.msrb.mxu2 %v5585_v41  ;;  %v7232_v57 = vpop.f32.mrf.mxu3  ;;  %v6349_v41 = vld [vmem:[#allocation7 + $0x244] sm:$0xf0]  ;;  %v7256_v13 = vor.u32 %v6272_v56, %v5450_v0  ;;  %v5478_v34 = vld [vmem:[#allocation7 + $0x28] sm:$0xf0]  ;;  %v6278_v0 = vld [vmem:[#allocation7 + $0x14] sm:$0xf]  ;;  %v7275_v38 = vpack.c.b16 %v3042_v31, %v3042_v31 }
 0x153   : > { %3539 = vmatpush.bf16.msrb.mxu0 %v5773_v63  ;;  %v6284_v63 = vld [vmem:[#allocation7 + $0x44] sm:$0xf]  ;;  %v5749_v29 = vor.u32 %v6349_v41, %v5748_v39  ;;  %v5606_v39 = vld [vmem:[#allocation7 + $0x128] sm:$0xf0]  ;;  %v5534_v41 = vld [vmem:[#allocation7 + $0x98] sm:$0xf0] }
 0x154   : > { %3557 = vmatpush.bf16.msrb.mxu1 %v5521_v53  ;;  %v5494_v53 = vld [vmem:[#allocation7 + $0x48] sm:$0xf0]  ;;  %v5609_v56 = vor.u32 %v6312_v12, %v5606_v39  ;;  %v6292_v4 = vld [vmem:[#allocation7 + $0x84] sm:$0xf]  ;;  %v6338_v46 = vld [vmem:[#allocation7 + $0x1f4] sm:$0xf] }
 0x155   : > { %3593 = vmatpush.bf16.msrb.mxu3 %v5649_v55  ;;  %v1786_v55 = vadd.f32 %v7212_v20, %v1768_v23  ;;  %v5497_v48 = vor.u32 %v6284_v63, %v5494_v53  ;;  %v5724_v53 = vld [vmem:[#allocation7 + $0x210] sm:$0xf] }
 0x156   : > { %3576 = vmatpush.bf16.msrb.mxu2 %v5577_v3  ;;  %v1819_v43 = vpop.f32.mrf.mxu0  ;;  %v1753_v3 = vadd.f32 %v7208_v5, %v1735_v61  ;;  %v5614_v5 = vld [vmem:[#allocation7 + $0x138] sm:$0xf0]  ;;  %v6343_v61 = vld [vmem:[#allocation7 + $0x214] sm:$0xf0] }
 0x157   : > { %3540 = vmatpush.bf16.msrb.mxu0 %v5765_v47  ;;  %v1837_v59 = vpop.f32.mrf.mxu1  ;;  %v1790_v28 = vpop.f32.mrf.mxu2  ;;  %v1820_v45 = vadd.f32 %v1819_v43, %v1802_v10  ;;  %v6282_v47 = vld [vmem:[#allocation7 + $0x34] sm:$0xf]  ;;  %v1804_v49 = vadd.f32 %v7219_v17, %v1786_v55  ;;  %v6345_v10 = vld [vmem:[#allocation7 + $0x224] sm:$0xf0]  ;;  %v7266_v43 = vld [vmem:[#allocation2 + $0x58] sm:$0x11]  ;;  %v5725_v35 = vor.u32 %v6343_v61, %v5724_v53 }
 0x158   : > { %3558 = vmatpush.bf16.msrb.mxu1 %v5513_v25  ;;  %v5486_v25 = vld [vmem:[#allocation7 + $0x38] sm:$0xf0]  ;;  %v5733_v28 = vor.u32 %v6345_v10, %v5732_v22  ;;  %v6354_v10 = vld [vmem:[#allocation7 + $0x274] sm:$0xf]  ;;  %v5702_v61 = vld [vmem:[#allocation7 + $0x1e8] sm:$0xf0] }
 0x159   : > { %3594 = vmatpush.bf16.msrb.mxu3 %v5641_v24  ;;  %v1838_v40 = vadd.f32 %v1837_v59, %v1820_v45  ;;  %3475 = vmatmul.bf16.vlgmr.msra.gmra.mxu0 %v7240_v16  ;;  %v5553_v24 = vor.u32 %v6298_v52, %v5550_v30  ;;  %v5489_v62 = vor.u32 %v6282_v47, %v5486_v25  ;;  %v5470_v55 = vld [vmem:[#allocation7 + $0x18] sm:$0xf0]  ;;  %v6310_v52 = vld [vmem:[#allocation7 + $0x114] sm:$0xf] }
 0x15a   : > { %3577 = vmatpush.bf16.msrb.mxu2 %v5569_v7  ;;  %3493 = vmatmul.bf16.vlgmr.msra.gmra.mxu1 %v7242_v6  ;;  %v1808_v33 = vpop.f32.mrf.mxu3  ;;  %v1771_v7 = vadd.f32 %v7210_v2, %v1753_v3  ;;  %v5617_v59 = vor.u32 %v6314_v37, %v5614_v5  ;;  %v3043_v2 = vunpack.c.h.b16 %v2931_v54  ;;  %v5481_v45 = vor.u32 %v6280_v26, %v5478_v34  ;;  %v5526_v3 = vld [vmem:[#allocation7 + $0x88] sm:$0xf0]  ;;  %v6276_v54 = vld [vmem:[#allocation7 + $0x4] sm:$0xf]  ;;  %v5774_v26 = vld [vmem:[#allocation7 + $0x278] sm:$0xf0] }
 0x15b   : > { %3541 = vmatpush.bf16.msrb.mxu0 %v5757_v44  ;;  %v1847_v20 = vmax.f32 %v1838_v40, 0.0  ;;  %v5598_v33 = vld [vmem:[#allocation7 + $0x118] sm:$0xf0]  ;;  %v5777_v39 = vor.u32 %v6354_v10, %v5774_v26  ;;  %v5750_v10 = vld [vmem:[#allocation7 + $0x248] sm:$0xf0] }
 0x15c   : > { %3559 = vmatpush.bf16.msrb.mxu1 %v5505_v50  ;;  %3511 = vmatmul.bf16.vlgmr.msra.gmra.mxu2 %v7248_v32  ;;  %v1789_v44 = vadd.f32 %v7226_v36, %v1771_v7  ;;  %v3044_v36 = vunpack.c.l.b16 %v7266_v43  ;;  %v7277_v15 = vpack.c.b16 %v3043_v2, %v3043_v2  ;;  %v5601_v5 = vor.u32 %v6310_v52, %v5598_v33  ;;  %v7310_v26 = vld [vmem:[%s7519_s5 + $0x8] sm:$0x77] }
 0x15d   : > { %3595 = vmatpush.bf16.msrb.mxu3 %v5633_v58  ;;  %v1859_v19 = vmul.f32 %v7246_v11, %v1847_v20  ;;  %v6294_v58 = vld [vmem:[#allocation7 + $0x94] sm:$0xf]  ;;  %v5716_v20 = vld [vmem:[#allocation7 + $0x200] sm:$0xf]  ;;  %v5529_v7 = vor.u32 %v6292_v4, %v5526_v3 }
 0x15e   : > { %3578 = vmatpush.bf16.msrb.mxu2 %v5561_v60  ;;  %v1821_v42 = vpop.f32.mrf.mxu0  ;;  %v1807_v40 = vadd.f32 %v7232_v57, %v1789_v44  ;;  %v5537_v30 = vor.u32 %v6294_v58, %v5534_v41  ;;  %v7283_v37 = vpack.c.b16 %v3044_v36, %v3044_v36  ;;  %v6390_v44 = vld [vmem:[#allocation8 + $0xf4] sm:$0xf0]  ;;  %v6336_v58 = vld [vmem:[#allocation7 + $0x1e4] sm:$0xf]  ;;  %v6334_v3 = vld [vmem:[#allocation7 + $0x1d4] sm:$0xf] }
 0x15f   : > { %v1839_v18 = vpop.f32.mrf.mxu1  ;;  %3542 = vmatpush.bf16.msrb.mxu0 %v5749_v29  ;;  %v1871_v17 = vadd.f32 %v7254_v14, %v1859_v19  ;;  %3529 = vmatmul.bf16.vlgmr.msra.gmra.mxu3 %v7256_v13  ;;  %v7264_v27 = vpop.f32.mrf.mxu2  ;;  %v1822_v51 = vadd.f32 %v1821_v42, %v1804_v49  ;;  %v5473_v49 = vor.u32 %v6278_v0, %v5470_v55  ;;  %v6341_v19 = vld [vmem:[#allocation7 + $0x204] sm:$0xf0]  ;;  %v6308_v42 = vld [vmem:[#allocation7 + $0x104] sm:$0xf] }
 0x160   : > { %3560 = vmatpush.bf16.msrb.mxu1 %v5497_v48  ;;  %v6352_v36 = vld [vmem:[#allocation7 + $0x264] sm:$0xf]  ;;  %v5705_v52 = vor.u32 %v6336_v58, %v5702_v61  ;;  %v5742_v58 = vld [vmem:[#allocation7 + $0x238] sm:$0xf0]  ;;  %v5887_v61 = vld [vmem:[#allocation8 + $0xb0] sm:$0xf] }
 0x161   : > { %3596 = vmatpush.bf16.msrb.mxu3 %v5625_v8  ;;  %1877 = vst [vmem:[%s7154_s20 + $0x8] sm:$0xff] %v1871_v17  ;;  %v1840_v50 = vadd.f32 %v1839_v18, %v1822_v51  ;;  %v3045_v8 = vunpack.c.h.b16 %v7266_v43  ;;  %v5590_v18 = vld [vmem:[#allocation7 + $0x108] sm:$0xf0]  ;;  %v5717_v17 = vor.u32 %v6341_v19, %v5716_v20  ;;  %v5710_v51 = vld [vmem:[#allocation7 + $0x1f8] sm:$0xf0] }
 0x162   : > { %3579 = vmatpush.bf16.msrb.mxu2 %v5553_v24  ;;  %v7270_v23 = vpop.f32.mrf.mxu3  ;;  %v5462_v24 = vld [vmem:[#allocation7 + $0x8] sm:$0xf0]  ;;  %v5713_v12 = vor.u32 %v6338_v46, %v5710_v51  ;;  %v5694_v20 = vld [vmem:[#allocation7 + $0x1d8] sm:$0xf0]  ;;  %v6386_v19 = vld [vmem:[#allocation8 + $0xd4] sm:$0xf0] }
 0x163   : > { %3543 = vmatpush.bf16.msrb.mxu0 %v5741_v1  ;;  %v1849_v63 = vmax.f32 %v1840_v50, 0.0  ;;  %v5855_v1 = vld [vmem:[#allocation8 + $0x70] sm:$0xf]  ;;  %v7290_v31 = vpack.c.b16 %v3045_v8, %v3045_v8  ;;  %v5465_v43 = vor.u32 %v6276_v54, %v5462_v24  ;;  %v5593_v50 = vor.u32 %v6308_v42, %v5590_v18  ;;  %v6348_v51 = vld [vmem:[#allocation7 + $0x244] sm:$0xf] }
 0x164   : > { %3561 = vmatpush.bf16.msrb.mxu1 %v5489_v62  ;;  %v5856_v2 = vor.u32 %v6374_v9, %v5855_v1  ;;  %v5697_v42 = vor.u32 %v6334_v3, %v5694_v20  ;;  %v5831_v1 = vld [vmem:[#allocation8 + $0x40] sm:$0xf]  ;;  %v6332_v9 = vld [vmem:[#allocation7 + $0x1c4] sm:$0xf] }
 0x165   : > { %3597 = vmatpush.bf16.msrb.mxu3 %v5617_v59  ;;  %v1861_v60 = vmul.f32 %v7246_v11, %v1849_v63  ;;  %v5919_v59 = vld [vmem:[#allocation8 + $0xf0] sm:$0xf] }
 0x166   : > { %3580 = vmatpush.bf16.msrb.mxu2 %v5545_v21  ;;  %v1824_v29 = vpop.f32.mrf.mxu0  ;;  %v5920_v53 = vor.u32 %v6390_v44, %v5919_v59  ;;  %v6384_v59 = vld [vmem:[#allocation8 + $0xc4] sm:$0xf0] }
 0x167   : > { %v1842_v48 = vpop.f32.mrf.mxu1  ;;  %3544 = vmatpush.bf16.msrb.mxu0 %v5733_v28  ;;  %v1873_v57 = vadd.f32 %v7254_v14, %v1861_v60  ;;  %v7280_v47 = vpop.f32.mrf.mxu2  ;;  %v1825_v25 = vadd.f32 %v1824_v29, %v1807_v40  ;;  %v5847_v28 = vld [vmem:[#allocation8 + $0x60] sm:$0xf]  ;;  %v6388_v40 = vld [vmem:[#allocation8 + $0xe4] sm:$0xf0]  ;;  %v5839_v29 = vld [vmem:[#allocation8 + $0x50] sm:$0xf] }
 0x168   : > { %3562 = vmatpush.bf16.msrb.mxu1 %v5481_v45  ;;  %v6372_v45 = vld [vmem:[#allocation8 + $0x64] sm:$0xf0] }
 0x169   : > { %3598 = vmatpush.bf16.msrb.mxu3 %v5609_v56  ;;  %1879 = vst [vmem:[%s7154_s20 + $0x18] sm:$0xff] %v1873_v57  ;;  %v1843_v62 = vadd.f32 %v1842_v48, %v1825_v25  ;;  %3480 = vmatmul.bf16.gmra.mxu0 %v7275_v38  ;;  %v5766_v56 = vld [vmem:[#allocation7 + $0x268] sm:$0xf0]  ;;  %v5848_v60 = vor.u32 %v6372_v45, %v5847_v28  ;;  %v6370_v48 = vld [vmem:[#allocation8 + $0x54] sm:$0xf0] }
 0x16a   : > { %3498 = vmatmul.bf16.gmra.mxu1 %v7277_v15  ;;  %v7288_v22 = vpop.f32.mrf.mxu3  ;;  %3581 = vmatpush.bf16.msrb.mxu2 %v5537_v30  ;;  %v5769_v33 = vor.u32 %v6352_v36, %v5766_v56  ;;  %v6350_v57 = vld [vmem:[#allocation7 + $0x254] sm:$0xf]  ;;  %v5758_v25 = vld [vmem:[#allocation7 + $0x258] sm:$0xf0]  ;;  %v5840_v8 = vor.u32 %v6370_v48, %v5839_v29  ;;  %v6382_v36 = vld [vmem:[#allocation8 + $0xb4] sm:$0xf0] }
 0x16b   : > { %3545 = vmatpush.bf16.msrb.mxu0 %v5725_v35  ;;  %v1851_v34 = vmax.f32 %v1843_v62, 0.0  ;;  %v6275_v35 = vld [vmem:[#allocation2 + $0x38] sm:$0xf0]  ;;  %v5761_v18 = vor.u32 %v6350_v57, %v5758_v25  ;;  %v6368_v62 = vld [vmem:[#allocation8 + $0x44] sm:$0xf0] }
 0x16c   : > { %3563 = vmatpush.bf16.msrb.mxu1 %v5473_v49  ;;  %3516 = vmatmul.bf16.gmra.mxu2 %v7283_v37  ;;  %v5903_v49 = vld [vmem:[#allocation8 + $0xd0] sm:$0xf]  ;;  %v5678_v28 = vld [vmem:[#allocation7 + $0x1b8] sm:$0xf0]  ;;  %v6346_v45 = vld [vmem:[#allocation7 + $0x234] sm:$0xf] }
 0x16d   : > { %3599 = vmatpush.bf16.msrb.mxu3 %v5601_v5  ;;  %v1863_v21 = vmul.f32 %v7246_v11, %v1851_v34  ;;  %v5911_v11 = vld [vmem:[#allocation8 + $0xe0] sm:$0xf]  ;;  %v5832_v34 = vor.u32 %v6368_v62, %v5831_v1  ;;  %v5670_v29 = vld [vmem:[#allocation7 + $0x1a8] sm:$0xf0]  ;;  %v6344_v48 = vld [vmem:[#allocation7 + $0x224] sm:$0xf] }
 0x16e   : > { %v1826_v41 = vpop.f32.mrf.mxu0  ;;  %3582 = vmatpush.bf16.msrb.mxu2 %v5529_v7  ;;  %v5912_v4 = vor.u32 %v6388_v40, %v5911_v11  ;;  %v5904_v7 = vor.u32 %v6386_v19, %v5903_v49  ;;  %v5745_v40 = vor.u32 %v6346_v45, %v5742_v58  ;;  %v5879_v57 = vld [vmem:[#allocation8 + $0xa0] sm:$0xf]  ;;  %v6380_v25 = vld [vmem:[#allocation8 + $0xa4] sm:$0xf0]  ;;  %v5807_v19 = vld [vmem:[#allocation8 + $0x10] sm:$0xf] }
 0x16f   : > { %v1844_v63 = vpop.f32.mrf.mxu1  ;;  %3546 = vmatpush.bf16.msrb.mxu0 %v5717_v17  ;;  %v1875_v0 = vadd.f32 %v7254_v14, %v1863_v21  ;;  %3534 = vmatmul.bf16.gmra.mxu3 %v7290_v31  ;;  %v7296_v55 = vpop.f32.mrf.mxu2  ;;  %v5456_v14 = vld [vmem:[#allocation2 + $0x18] sm:$0xf]  ;;  %v5823_v21 = vld [vmem:[#allocation8 + $0x30] sm:$0xf]  ;;  %v2009_v41 = vperm.slane %v7310_v26, 0  ;;  %v5880_v62 = vor.u32 %v6380_v25, %v5879_v57 }
 0x170   : > { %3564 = vmatpush.bf16.msrb.mxu1 %v5465_v43  ;;  %v7301_v54 = vor.u32 %v6275_v35, %v5456_v14  ;;  %v5686_v17 = vld [vmem:[#allocation7 + $0x1c8] sm:$0xf0]  ;;  %v5895_v43 = vld [vmem:[#allocation8 + $0xc0] sm:$0xf]  ;;  %v2933_v63 = vld [vmem:[#allocation2 + $0x60] sm:$0x1]  ;;  %v5888_v35 = vor.u32 %v6382_v36, %v5887_v61 }
 0x171   : > { %3600 = vmatpush.bf16.msrb.mxu3 %v5593_v50  ;;  %1881 = vst [vmem:[%s7154_s20 + $0x28] sm:$0x3] %v1875_v0  ;;  %v5689_v50 = vor.u32 %v6332_v9, %v5686_v17  ;;  %v5734_v14 = vld [vmem:[#allocation7 + $0x228] sm:$0xf0]  ;;  %v3046_v3 = vunpack.c.l.b16 %v2933_v63  ;;  %v5662_v1 = vld [vmem:[#allocation7 + $0x198] sm:$0xf0] }
 0x172   : > { %4014 = vmatpush.bf16.msra.mxu2 %v5856_v2  ;;  %v7299_v30 = vpop.f32.mrf.mxu3  ;;  %v5753_v2 = vor.u32 %v6348_v51, %v5750_v10  ;;  %v6342_v9 = vld [vmem:[#allocation7 + $0x214] sm:$0xf]  ;;  %v5871_v51 = vld [vmem:[#allocation8 + $0x90] sm:$0xf]  ;;  %v6378_v10 = vld [vmem:[#allocation8 + $0x94] sm:$0xf0] }
 0x173   : > { %3611 = vmatpush.bf16.msra.mxu0 %v5713_v12  ;;  %v6366_v12 = vld [vmem:[#allocation8 + $0x34] sm:$0xf0]  ;;  %v7329_v17 = vpack.c.b16 %v3046_v3, %v3046_v3  ;;  %v5872_v45 = vor.u32 %v6378_v10, %v5871_v51  ;;  %v5718_v58 = vld [vmem:[#allocation7 + $0x208] sm:$0xf0]  ;;  %v5921_v61 = vld [vmem:[#allocation8 + $0xf8] sm:$0xf0] }
 0x174   : > { %3629 = vmatpush.bf16.msra.mxu1 %v5777_v39  ;;  %v6330_v39 = vld [vmem:[#allocation7 + $0x1b4] sm:$0xf]  ;;  %v5983_v36 = vld [vmem:[#allocation8 + $0x170] sm:$0xf] }
 0x175   : > { %4032 = vmatpush.bf16.msra.mxu3 %v5920_v53  ;;  %v5824_v53 = vor.u32 %v6366_v12, %v5823_v21  ;;  %v5681_v11 = vor.u32 %v6330_v39, %v5678_v28  ;;  %v6324_v39 = vld [vmem:[#allocation7 + $0x184] sm:$0xf] }
 0x176   : > { %4015 = vmatpush.bf16.msra.mxu2 %v5848_v60  ;;  %v7303_v24 = vpop.f32.mrf.mxu0  ;;  %v5815_v60 = vld [vmem:[#allocation8 + $0x20] sm:$0xf]  ;;  %v6340_v28 = vld [vmem:[#allocation7 + $0x204] sm:$0xf] }
 0x177   : > { %3612 = vmatpush.bf16.msra.mxu0 %v5705_v52  ;;  %v7305_v5 = vpop.f32.mrf.mxu1  ;;  %v2652_v46 = vpop.f32.mrf.mxu2  ;;  %v6364_v52 = vld [vmem:[#allocation8 + $0x24] sm:$0xf0] }
 0x178   : > { %3630 = vmatpush.bf16.msra.mxu1 %v5769_v33  ;;  %v6328_v33 = vld [vmem:[#allocation7 + $0x1a4] sm:$0xf]  ;;  %v5816_v20 = vor.u32 %v6364_v52, %v5815_v60  ;;  %v5726_v46 = vld [vmem:[#allocation7 + $0x218] sm:$0xf0]  ;;  %v6406_v52 = vld [vmem:[#allocation8 + $0x174] sm:$0xf0] }
 0x179   : > { %4033 = vmatpush.bf16.msra.mxu3 %v5912_v4  ;;  %3547 = vmatmul.bf16.vlgmr.msrb.gmra.mxu0 %v7301_v54  ;;  %v7323_v4 = vperm.slane %v2009_v41, 0  ;;  %v5673_v49 = vor.u32 %v6328_v33, %v5670_v29  ;;  %v5729_v12 = vor.u32 %v6342_v9, %v5726_v46  ;;  %v5863_v41 = vld [vmem:[#allocation8 + $0x80] sm:$0xf]  ;;  %v6373_v33 = vld [vmem:[#allocation8 + $0x74] sm:$0xf]  ;;  %v5984_v57 = vor.u32 %v6406_v52, %v5983_v36 }
 0x17a   : > { %4016 = vmatpush.bf16.msra.mxu2 %v5840_v8  ;;  %3565 = vmatmul.bf16.vlgmr.msrb.gmra.mxu1 %v7240_v16  ;;  %v2670_v44 = vpop.f32.mrf.mxu3  ;;  %v5896_v16 = vor.u32 %v6384_v59, %v5895_v43  ;;  %v5857_v29 = vld [vmem:[#allocation8 + $0x78] sm:$0xf0]  ;;  %v5849_v9 = vld [vmem:[#allocation8 + $0x68] sm:$0xf0]  ;;  %v6403_v46 = vld [vmem:[#allocation8 + $0x164] sm:$0xf] }
 0x17b   : > { %3613 = vmatpush.bf16.msra.mxu0 %v5697_v42  ;;  %v6362_v42 = vld [vmem:[#allocation8 + $0x14] sm:$0xf0]  ;;  %v5860_v25 = vor.u32 %v6373_v33, %v5857_v29  ;;  %v2906_v36 = vperm.slane %v7310_v26, 2  ;;  %v5897_v29 = vld [vmem:[#allocation8 + $0xc8] sm:$0xf0] }
 0x17c   : > { %3631 = vmatpush.bf16.msra.mxu1 %v5761_v18  ;;  %3583 = vmatmul.bf16.vlgmr.msrb.gmra.mxu2 %v7242_v6  ;;  %v6326_v18 = vld [vmem:[#allocation7 + $0x194] sm:$0xf]  ;;  %v5808_v59 = vor.u32 %v6362_v42, %v5807_v19  ;;  %v5975_v19 = vld [vmem:[#allocation8 + $0x160] sm:$0xf] }
 0x17d   : > { %4034 = vmatpush.bf16.msra.mxu3 %v5904_v7  ;;  %v2646_v7 = vadd.f32 %v7264_v27, %v7323_v4  ;;  %v5665_v44 = vor.u32 %v6326_v18, %v5662_v1  ;;  %v5654_v27 = vld [vmem:[#allocation7 + $0x188] sm:$0xf0]  ;;  %v6404_v1 = vld [vmem:[#allocation8 + $0x164] sm:$0xf0] }
 0x17e   : > { %4017 = vmatpush.bf16.msra.mxu2 %v5832_v34  ;;  %v7316_v56 = vpop.f32.mrf.mxu0  ;;  %v5657_v60 = vor.u32 %v6324_v39, %v5654_v27  ;;  %v5967_v27 = vld [vmem:[#allocation8 + $0x150] sm:$0xf] }
 0x17f   : > { %v7318_v0 = vpop.f32.mrf.mxu1  ;;  %3614 = vmatpush.bf16.msra.mxu0 %v5689_v50  ;;  %3601 = vmatmul.bf16.vlgmr.msrb.gmra.mxu3 %v7248_v32  ;;  %v7321_v6 = vpop.f32.mrf.mxu2  ;;  %v5737_v32 = vor.u32 %v6344_v48, %v5734_v14  ;;  %v5799_v50 = vld [vmem:[#allocation8] sm:$0xf]  ;;  %v2664_v63 = vadd.f32 %v7270_v23, %v2646_v7  ;;  %v5721_v23 = vor.u32 %v6340_v28, %v5718_v58  ;;  %v6405_v14 = vld [vmem:[#allocation8 + $0x174] sm:$0xf]  ;;  %v5977_v7 = vld [vmem:[#allocation8 + $0x168] sm:$0xf0] }
 0x180   : > { %3632 = vmatpush.bf16.msra.mxu1 %v5753_v2  ;;  %v6360_v2 = vld [vmem:[#allocation8 + $0x4] sm:$0xf0]  ;;  %v5980_v39 = vor.u32 %v6403_v46, %v5977_v7  ;;  %v6402_v28 = vld [vmem:[#allocation8 + $0x154] sm:$0xf0]  ;;  %v5841_v58 = vld [vmem:[#allocation8 + $0x58] sm:$0xf0] }
 0x181   : > { %4035 = vmatpush.bf16.msra.mxu3 %v5896_v16  ;;  %v6376_v16 = vld [vmem:[#allocation8 + $0x84] sm:$0xf0]  ;;  %v2682_v48 = vadd.f32 %v7303_v24, %v2664_v63  ;;  %v5969_v63 = vld [vmem:[#allocation8 + $0x158] sm:$0xf0]  ;;  %v5968_v33 = vor.u32 %v6402_v28, %v5967_v27  ;;  %v5951_v7 = vld [vmem:[#allocation8 + $0x130] sm:$0xf] }
 0x182   : > { %4018 = vmatpush.bf16.msra.mxu2 %v5824_v53  ;;  %v7325_v8 = vpop.f32.mrf.mxu3  ;;  %v6389_v53 = vld [vmem:[#allocation8 + $0xf4] sm:$0xf]  ;;  %v5864_v3 = vor.u32 %v6376_v16, %v5863_v41  ;;  %v5889_v46 = vld [vmem:[#allocation8 + $0xb8] sm:$0xf0] }
 0x183   : > { %3615 = vmatpush.bf16.msra.mxu0 %v5681_v11  ;;  %v6401_v16 = vld [vmem:[#allocation8 + $0x154] sm:$0xf] }
 0x184   : > { %3633 = vmatpush.bf16.msra.mxu1 %v5745_v40  ;;  %v5800_v40 = vor.u32 %v6360_v2, %v5799_v50  ;;  %v5976_v50 = vor.u32 %v6404_v1, %v5975_v19  ;;  %v6385_v2 = vld [vmem:[#allocation8 + $0xd4] sm:$0xf]  ;;  %v5961_v1 = vld [vmem:[#allocation8 + $0x148] sm:$0xf0] }
 0x185   : > { %4036 = vmatpush.bf16.msra.mxu3 %v5888_v35  ;;  %v5985_v35 = vld [vmem:[#allocation8 + $0x178] sm:$0xf0] }
 0x186   : > { %4019 = vmatpush.bf16.msra.mxu2 %v5816_v20  ;;  %v7331_v34 = vpop.f32.mrf.mxu0  ;;  %v5924_v20 = vor.u32 %v6389_v53, %v5921_v61  ;;  %v5988_v24 = vor.u32 %v6405_v14, %v5985_v35  ;;  %v5972_v35 = vor.u32 %v6401_v16, %v5969_v63 }
 0x187   : > { %v7333_v43 = vpop.f32.mrf.mxu1  ;;  %3616 = vmatpush.bf16.msra.mxu0 %v5673_v49  ;;  %v7335_v21 = vpop.f32.mrf.mxu2  ;;  %v6387_v49 = vld [vmem:[#allocation8 + $0xe4] sm:$0xf] }
 0x188   : > { %3634 = vmatpush.bf16.msra.mxu1 %v5737_v32  ;;  %v5913_v32 = vld [vmem:[#allocation8 + $0xe8] sm:$0xf0] }
 0x189   : > { %4037 = vmatpush.bf16.msra.mxu3 %v5880_v62  ;;  %3552 = vmatmul.bf16.gmra.mxu0 %v7329_v17  ;;  %v6371_v62 = vld [vmem:[#allocation8 + $0x64] sm:$0xf]  ;;  %v5916_v10 = vor.u32 %v6387_v49, %v5913_v32  ;;  %v5789_v32 = vld [vmem:[#allocation2 + $0x30] sm:$0xf0] }
 0x18a   : > { %3570 = vmatmul.bf16.gmra.mxu1 %v7275_v38  ;;  %v7340_v11 = vpop.f32.mrf.mxu3  ;;  %4020 = vmatpush.bf16.msra.mxu2 %v5808_v59  ;;  %v2648_v38 = vadd.f32 %v7280_v47, %v7323_v4  ;;  %v2700_v47 = vadd.f32 %v7305_v5, %v2682_v48  ;;  %v5852_v5 = vor.u32 %v6371_v62, %v5849_v9  ;;  %v5959_v48 = vld [vmem:[#allocation8 + $0x140] sm:$0xf]  ;;  %v6356_v49 = vld [vmem:[#allocation2 + $0x10] sm:$0xf] }
 0x18b   : > { %3617 = vmatpush.bf16.msra.mxu0 %v5665_v44  ;;  %v2894_v44 = vperm.slane %v7310_v26, 1 }
 0x18c   : > { %3635 = vmatpush.bf16.msra.mxu1 %v5729_v12  ;;  %3588 = vmatmul.bf16.gmra.mxu2 %v7277_v15  ;;  %v2666_v51 = vadd.f32 %v7288_v22, %v2648_v38  ;;  %v2718_v59 = vadd.f32 %v7321_v6, %v2700_v47  ;;  %v2651_v6 = vadd.f32 %v7296_v55, %v7323_v4  ;;  %v6383_v4 = vld [vmem:[#allocation8 + $0xc4] sm:$0xf]  ;;  %v6400_v38 = vld [vmem:[#allocation8 + $0x144] sm:$0xf0]  ;;  %v6381_v47 = vld [vmem:[#allocation8 + $0xb4] sm:$0xf] }
 0x18d   : > { %4038 = vmatpush.bf16.msra.mxu3 %v5872_v45  ;;  %v6369_v45 = vld [vmem:[#allocation8 + $0x54] sm:$0xf]  ;;  %v7359_v61 = vperm.slane %v2894_v44, 1 }
 0x18e   : > { %v2688_v42 = vpop.f32.mrf.mxu0  ;;  %4021 = vmatpush.bf16.msra.mxu2 %v5800_v40  ;;  %v2684_v22 = vadd.f32 %v7316_v56, %v2666_v51  ;;  %v2736_v53 = vadd.f32 %v7325_v8, %v2718_v59  ;;  %v5787_v40 = vld [vmem:[#allocation2 + $0xc] sm:$0xf]  ;;  %v5844_v55 = vor.u32 %v6369_v45, %v5841_v58  ;;  %v5825_v59 = vld [vmem:[#allocation8 + $0x38] sm:$0xf0]  ;;  %v5881_v58 = vld [vmem:[#allocation8 + $0xa8] sm:$0xf0] }
 0x18f   : > { %v2706_v18 = vpop.f32.mrf.mxu1  ;;  %3618 = vmatpush.bf16.msra.mxu0 %v5657_v60  ;;  %3606 = vmatmul.bf16.gmra.mxu3 %v7283_v37  ;;  %v7348_v15 = vpop.f32.mrf.mxu2  ;;  %v5905_v37 = vld [vmem:[#allocation8 + $0xd8] sm:$0xf0]  ;;  %v6357_v60 = vld [vmem:[#allocation2 + $0x2c] sm:$0xf0] }
 0x190   : > { %3636 = vmatpush.bf16.msra.mxu1 %v5721_v23  ;;  %v5908_v41 = vor.u32 %v6385_v2, %v5905_v37  ;;  %v2702_v23 = vadd.f32 %v7318_v0, %v2684_v22  ;;  %v7369_v18 = vperm.slane %v2906_v36, 2  ;;  %v5900_v0 = vor.u32 %v6383_v4, %v5897_v29  ;;  %v6397_v37 = vld [vmem:[#allocation8 + $0x134] sm:$0xf]  ;;  %v5817_v36 = vld [vmem:[#allocation8 + $0x28] sm:$0xf0] }
 0x191   : > { %4039 = vmatpush.bf16.msra.mxu3 %v5864_v3  ;;  %v6367_v3 = vld [vmem:[#allocation8 + $0x44] sm:$0xf]  ;;  %v5892_v2 = vor.u32 %v6381_v47, %v5889_v46  ;;  %v5945_v29 = vld [vmem:[#allocation8 + $0x128] sm:$0xf0] }
 0x192   : > { %4086 = vmatpush.bf16.msrb.mxu2 %v5924_v20  ;;  %v7353_v12 = vpop.f32.mrf.mxu3  ;;  %v5833_v20 = vld [vmem:[#allocation8 + $0x48] sm:$0xf0]  ;;  %v2720_v19 = vadd.f32 %v7335_v21, %v2702_v23  ;;  %v6395_v4 = vld [vmem:[#allocation8 + $0x124] sm:$0xf] }
 0x193   : > { %4050 = vmatpush.bf16.msrb.mxu0 %v5984_v57  ;;  %v2669_v57 = vadd.f32 %v7299_v30, %v2651_v6  ;;  %v5960_v30 = vor.u32 %v6400_v38, %v5959_v48  ;;  %v5836_v9 = vor.u32 %v6367_v3, %v5833_v20  ;;  %v5943_v6 = vld [vmem:[#allocation8 + $0x120] sm:$0xf]  ;;  %v5935_v38 = vld [vmem:[#allocation8 + $0x110] sm:$0xf]  ;;  %v6394_v3 = vld [vmem:[#allocation8 + $0x114] sm:$0xf0] }
 0x194   : > { %4068 = vmatpush.bf16.msrb.mxu1 %v5860_v25  ;;  %v7366_v25 = vor.u32 %v6357_v60, %v5787_v40  ;;  %v3688_v40 = vld [vmem:[#allocation2 + $0x54] sm:$0x11] }
 0x195   : > { %4104 = vmatpush.bf16.msrb.mxu3 %v5988_v24  ;;  %v6399_v24 = vld [vmem:[#allocation8 + $0x144] sm:$0xf]  ;;  %v2687_v21 = vadd.f32 %v7331_v34, %v2669_v57  ;;  %v5953_v34 = vld [vmem:[#allocation8 + $0x138] sm:$0xf0]  ;;  %v3759_v20 = vunpack.c.l.b16 %v3688_v40  ;;  %v6361_v57 = vld [vmem:[#allocation8 + $0x14] sm:$0xf] }
 0x196   : > { %4087 = vmatpush.bf16.msrb.mxu2 %v5916_v10  ;;  %v2753_v56 = vpop.f32.mrf.mxu0  ;;  %v7375_v10 = vor.u32 %v6356_v49, %v5789_v32  ;;  %v5964_v44 = vor.u32 %v6399_v24, %v5961_v1  ;;  %v5956_v60 = vor.u32 %v6397_v37, %v5953_v34  ;;  %v5809_v49 = vld [vmem:[#allocation8 + $0x18] sm:$0xf0]  ;;  %v5865_v47 = vld [vmem:[#allocation8 + $0x88] sm:$0xf0]  ;;  %v6391_v37 = vld [vmem:[#allocation8 + $0x104] sm:$0xf] }
 0x197   : > { %4051 = vmatpush.bf16.msrb.mxu0 %v5976_v50  ;;  %v7362_v52 = vpop.f32.mrf.mxu1  ;;  %v2724_v8 = vpop.f32.mrf.mxu2  ;;  %v2754_v14 = vadd.f32 %v2753_v56, %v2736_v53  ;;  %v2738_v50 = vadd.f32 %v7340_v11, %v2720_v19  ;;  %v2705_v11 = vadd.f32 %v7333_v43, %v2687_v21  ;;  %v6363_v53 = vld [vmem:[#allocation8 + $0x24] sm:$0xf]  ;;  %v3760_v21 = vunpack.c.h.b16 %v3688_v40  ;;  %v5929_v34 = vld [vmem:[#allocation8 + $0x108] sm:$0xf0]  ;;  %v5795_v40 = vld [vmem:[#allocation2 + $0x14] sm:$0xf] }
 0x198   : > { %4069 = vmatpush.bf16.msrb.mxu1 %v5852_v5  ;;  %v5820_v23 = vor.u32 %v6363_v53, %v5817_v36  ;;  %v6377_v8 = vld [vmem:[#allocation8 + $0x94] sm:$0xf] }
 0x199   : > { %4105 = vmatpush.bf16.msrb.mxu3 %v5980_v39  ;;  %v2888_v42 = vmax.f32 %v2754_v14, 0.0  ;;  %3619 = vmatmul.bf16.vlgmr.msra.gmra.mxu0 %v7256_v13  ;;  %v6398_v13 = vld [vmem:[#allocation8 + $0x134] sm:$0xf0]  ;;  %v6379_v39 = vld [vmem:[#allocation8 + $0xa4] sm:$0xf]  ;;  %v2723_v56 = vadd.f32 %v7348_v15, %v2705_v11  ;;  %v5948_v15 = vor.u32 %v6395_v4, %v5945_v29 }
 0x19a   : > { %4088 = vmatpush.bf16.msrb.mxu2 %v5908_v41  ;;  %3637 = vmatmul.bf16.vlgmr.msra.gmra.mxu1 %v7301_v54  ;;  %v2742_v62 = vpop.f32.mrf.mxu3  ;;  %v6365_v54 = vld [vmem:[#allocation8 + $0x34] sm:$0xf]  ;;  %v5952_v28 = vor.u32 %v6398_v13, %v5951_v7  ;;  %v6396_v41 = vld [vmem:[#allocation8 + $0x124] sm:$0xf0] }
 0x19b   : > { %4052 = vmatpush.bf16.msrb.mxu0 %v5968_v33  ;;  %v2900_v51 = vmul.f32 %v7359_v61, %v2888_v42  ;;  %v5828_v45 = vor.u32 %v6365_v54, %v5825_v59  ;;  %v5944_v43 = vor.u32 %v6396_v41, %v5943_v6  ;;  %v2741_v32 = vadd.f32 %v7353_v12, %v2723_v56  ;;  %v6393_v42 = vld [vmem:[#allocation8 + $0x114] sm:$0xf]  ;;  %v5927_v12 = vld [vmem:[#allocation8 + $0x100] sm:$0xf]  ;;  %v6392_v13 = vld [vmem:[#allocation8 + $0x104] sm:$0xf0] }
 0x19c   : > { %4070 = vmatpush.bf16.msrb.mxu1 %v5844_v55  ;;  %4022 = vmatmul.bf16.vlgmr.msra.gmra.mxu2 %v7366_v25  ;;  %v5884_v55 = vor.u32 %v6379_v39, %v5881_v58  ;;  %v2010_v54 = vperm.slane %v7310_v26, 4  ;;  %v7397_v59 = vpack.c.b16 %v3759_v20, %v3759_v20  ;;  %v7402_v58 = vpack.c.b16 %v3760_v21, %v3760_v21 }
 0x19d   : > { %4106 = vmatpush.bf16.msrb.mxu3 %v5972_v35  ;;  %v2912_v5 = vadd.f32 %v7369_v18, %v2900_v51  ;;  %v5873_v35 = vld [vmem:[#allocation8 + $0x98] sm:$0xf0]  ;;  %v5812_v51 = vor.u32 %v6361_v57, %v5809_v49  ;;  %v2895_v20 = vperm.slane %v7310_v26, 5 }
 0x19e   : > { %4089 = vmatpush.bf16.msrb.mxu2 %v5900_v0  ;;  %v2755_v27 = vpop.f32.mrf.mxu0  ;;  %v5937_v0 = vld [vmem:[#allocation8 + $0x118] sm:$0xf0]  ;;  %v5876_v62 = vor.u32 %v6377_v8, %v5873_v35  ;;  %v2014_v41 = vperm.slane %v2010_v54, 0 }
 0x19f   : > { %v7380_v22 = vpop.f32.mrf.mxu1  ;;  %4053 = vmatpush.bf16.msrb.mxu0 %v5960_v30  ;;  %5431 = vst [vmem:[%s7154_s20 + $0x30] sm:$0xff] %v2912_v5  ;;  %4040 = vmatmul.bf16.vlgmr.msra.gmra.mxu3 %v7375_v10  ;;  %v7385_v16 = vpop.f32.mrf.mxu2  ;;  %v2756_v63 = vadd.f32 %v2755_v27, %v2738_v50  ;;  %v5936_v30 = vor.u32 %v6394_v3, %v5935_v38  ;;  %v6359_v50 = vld [vmem:[#allocation8 + $0x4] sm:$0xf]  ;;  %v5801_v5 = vld [vmem:[#allocation8 + $0x8] sm:$0xf0] }
 0x1a0   : > { %4071 = vmatpush.bf16.msrb.mxu1 %v5836_v9  ;;  %v6375_v9 = vld [vmem:[#allocation8 + $0x84] sm:$0xf]  ;;  %v5804_v6 = vor.u32 %v6359_v50, %v5801_v5 }
 0x1a1   : > { %4107 = vmatpush.bf16.msrb.mxu3 %v5964_v44  ;;  %v2890_v33 = vmax.f32 %v2756_v63, 0.0  ;;  %v5940_v44 = vor.u32 %v6393_v42, %v5937_v0  ;;  %v5868_v27 = vor.u32 %v6375_v9, %v5865_v47  ;;  %v2899_v42 = vperm.slane %v2895_v20, 1 }
 0x1a2   : > { %4090 = vmatpush.bf16.msrb.mxu2 %v5892_v2  ;;  %v7388_v48 = vpop.f32.mrf.mxu3 }
 0x1a3   : > { %4054 = vmatpush.bf16.msrb.mxu0 %v5952_v28  ;;  %v2902_v14 = vmul.f32 %v7359_v61, %v2890_v33  ;;  %v5928_v28 = vor.u32 %v6392_v13, %v5927_v12 }
 0x1a4   : > { %4072 = vmatpush.bf16.msrb.mxu1 %v5828_v45 }
 0x1a5   : > { %4108 = vmatpush.bf16.msrb.mxu3 %v5956_v60  ;;  %v2914_v19 = vadd.f32 %v7369_v18, %v2902_v14  ;;  %v6358_v60 = vld [vmem:[#allocation2 + $0x34] sm:$0xf0] }
 0x1a6   : > { %4091 = vmatpush.bf16.msrb.mxu2 %v5884_v55  ;;  %v2758_v24 = vpop.f32.mrf.mxu0  ;;  %v5796_v33 = vor.u32 %v6358_v60, %v5795_v40 }
 0x1a7   : > { %v7393_v1 = vpop.f32.mrf.mxu1  ;;  %4055 = vmatpush.bf16.msrb.mxu0 %v5944_v43  ;;  %5433 = vst [vmem:[%s7154_s20 + $0x40] sm:$0xff] %v2914_v19  ;;  %v2791_v46 = vpop.f32.mrf.mxu2  ;;  %v2759_v7 = vadd.f32 %v2758_v24, %v2741_v32  ;;  %v2774_v43 = vadd.f32 %v7380_v22, %v2014_v41 }
 0x1a8   : > { %4073 = vmatpush.bf16.msrb.mxu1 %v5820_v23 }
 0x1a9   : > { %4109 = vmatpush.bf16.msrb.mxu3 %v5948_v15  ;;  %v2892_v2 = vmax.f32 %v2759_v7, 0.0  ;;  %3624 = vmatmul.bf16.gmra.mxu0 %v7290_v31  ;;  %v5932_v31 = vor.u32 %v6391_v37, %v5929_v34 }
 0x1aa   : > { %3642 = vmatmul.bf16.gmra.mxu1 %v7329_v17  ;;  %v2809_v39 = vpop.f32.mrf.mxu3  ;;  %4092 = vmatpush.bf16.msrb.mxu2 %v5876_v62 }
 0x1ab   : > { %4056 = vmatpush.bf16.msrb.mxu0 %v5936_v30  ;;  %v2904_v45 = vmul.f32 %v7359_v61, %v2892_v2  ;;  %v2772_v61 = vadd.f32 %v7362_v52, %v2014_v41  ;;  %v2792_v52 = vadd.f32 %v2791_v46, %v2774_v43 }
 0x1ac   : > { %4074 = vmatpush.bf16.msrb.mxu1 %v5812_v51  ;;  %4027 = vmatmul.bf16.gmra.mxu2 %v7397_v59 }
 0x1ad   : > { %4110 = vmatpush.bf16.msrb.mxu3 %v5940_v44  ;;  %v2916_v17 = vadd.f32 %v7369_v18, %v2904_v45  ;;  %v2790_v56 = vadd.f32 %v7385_v16, %v2772_v61  ;;  %v3689_v16 = vld [vmem:[#allocation2 + $0x5c] sm:$0x1]  ;;  %v2810_v15 = vadd.f32 %v2809_v39, %v2792_v52 }
 0x1ae   : > { %v2760_v11 = vpop.f32.mrf.mxu0  ;;  %4093 = vmatpush.bf16.msrb.mxu2 %v5868_v27  ;;  %v3761_v22 = vunpack.c.l.b16 %v3689_v16 }
 0x1af   : > { %v2778_v63 = vpop.f32.mrf.mxu1  ;;  %4057 = vmatpush.bf16.msrb.mxu0 %v5928_v28  ;;  %5435 = vst [vmem:[%s7154_s20 + $0x50] sm:$0x3] %v2916_v17  ;;  %4045 = vmatmul.bf16.gmra.mxu3 %v7402_v58  ;;  %v2794_v53 = vpop.f32.mrf.mxu2  ;;  %v2808_v29 = vadd.f32 %v7388_v48, %v2790_v56  ;;  %v2777_v48 = vadd.f32 %v7393_v1, %v2014_v41  ;;  %v7425_v11 = vld [vmem:[%s7519_s5 + $0x10] sm:$0x77] }
 0x1b0   : > { %4075 = vmatpush.bf16.msrb.mxu1 %v5804_v6  ;;  %v3767_v62 = vpack.c.b16 %v3761_v22, %v3761_v22 }
 0x1b1   : > { %4111 = vmatpush.bf16.msrb.mxu3 %v5932_v31 }
 0x1b2   : > { %v2812_v36 = vpop.f32.mrf.mxu3 }
 0x1b6   : > { %v2825_v55 = vpop.f32.mrf.mxu0 }
 0x1b7   : > { %v2843_v18 = vpop.f32.mrf.mxu1  ;;  %v2796_v4 = vpop.f32.mrf.mxu2  ;;  %v2826_v8 = vadd.f32 %v2825_v55, %v2808_v29 }
 0x1b9   : > { %4058 = vmatmul.bf16.vlgmr.msrb.gmra.mxu0 %v5796_v33  ;;  %v2844_v14 = vadd.f32 %v2843_v18, %v2826_v8 }
 0x1ba   : > { %4076 = vmatmul.bf16.vlgmr.msrb.gmra.mxu1 %v7366_v25  ;;  %v2814_v23 = vpop.f32.mrf.mxu3  ;;  %v2907_v25 = vperm.slane %v7310_v26, 6 }
 0x1bc   : > { %4094 = vmatmul.bf16.vlgmr.msrb.gmra.mxu2 %v7375_v10  ;;  %v2795_v10 = vadd.f32 %v2794_v53, %v2777_v48  ;;  %v2911_v24 = vperm.slane %v2907_v25, 2 }
 0x1be   : > { %v2827_v35 = vpop.f32.mrf.mxu0  ;;  %v2813_v21 = vadd.f32 %v2812_v36, %v2795_v10  ;;  %v3017_v36 = vperm.slane %v7425_v11, 0 }
 0x1bf   : > { %v2845_v38 = vpop.f32.mrf.mxu1  ;;  %4112 = vmatmul.bf16.vlgmr.msrb.gmra.mxu3 %v5796_v33  ;;  %v2861_v3 = vpop.f32.mrf.mxu2  ;;  %v2828_v32 = vadd.f32 %v2827_v35, %v2810_v15 }
 0x1c0   : > { %v2862_v57 = vadd.f32 %v2861_v3, %v2844_v14  ;;  %v3021_v60 = vperm.slane %v3017_v36, 0  ;;  %v3665_v3 = vperm.slane %v7425_v11, 2 }
 0x1c1   : > { %v2846_v30 = vadd.f32 %v2845_v38, %v2828_v32  ;;  %v3653_v38 = vperm.slane %v7425_v11, 1 }
 0x1c2   : > { %v2879_v49 = vpop.f32.mrf.mxu3 }
 0x1c3   : > { %v2880_v19 = vadd.f32 %v2879_v49, %v2862_v57  ;;  %v3657_v22 = vperm.slane %v3653_v38, 1 }
 0x1c5   : > { %v2889_v0 = vmax.f32 %v2880_v19, 0.0 }
 0x1c6   : > { %v2830_v9 = vpop.f32.mrf.mxu0 }
 0x1c7   : > { %v2848_v47 = vpop.f32.mrf.mxu1  ;;  %v2901_v46 = vmul.f32 %v2899_v42, %v2889_v0  ;;  %v2863_v7 = vpop.f32.mrf.mxu2  ;;  %v2831_v12 = vadd.f32 %v2830_v9, %v2813_v21 }
 0x1c8   : > { %v2864_v1 = vadd.f32 %v2863_v7, %v2846_v30 }
 0x1c9   : > { %v2913_v51 = vadd.f32 %v2911_v24, %v2901_v46  ;;  %4063 = vmatmul.bf16.gmra.mxu0 %v3767_v62  ;;  %v2849_v44 = vadd.f32 %v2848_v47, %v2831_v12 }
 0x1ca   : > { %4081 = vmatmul.bf16.gmra.mxu1 %v7397_v59  ;;  %v2881_v26 = vpop.f32.mrf.mxu3 }
 0x1cb   : > { %5432 = vst [vmem:[%s7154_s20 + $0x38] sm:$0xff] %v2913_v51  ;;  %v2882_v13 = vadd.f32 %v2881_v26, %v2864_v1 }
 0x1cc   : > { %4099 = vmatmul.bf16.gmra.mxu2 %v7402_v58 }
 0x1cd   : > { %v2891_v54 = vmax.f32 %v2882_v13, 0.0  ;;  %v3018_v13 = vperm.slane %v7425_v11, 4 }
 0x1ce   : > { %v2832_v50 = vpop.f32.mrf.mxu0 }
 0x1cf   : > { %v2850_v5 = vpop.f32.mrf.mxu1  ;;  %v2903_v2 = vmul.f32 %v2899_v42, %v2891_v54  ;;  %4117 = vmatmul.bf16.gmra.mxu3 %v3767_v62  ;;  %v2866_v37 = vpop.f32.mrf.mxu2 }
 0x1d0   : > { %v2867_v34 = vadd.f32 %v2866_v37, %v2849_v44  ;;  %v3022_v37 = vperm.slane %v3018_v13, 0 }
 0x1d1   : > { %v2915_v39 = vadd.f32 %v2911_v24, %v2903_v2 }
 0x1d2   : > { %v2884_v27 = vpop.f32.mrf.mxu3 }
 0x1d3   : > { %5434 = vst [vmem:[%s7154_s20 + $0x48] sm:$0xff] %v2915_v39  ;;  %v2885_v59 = vadd.f32 %v2884_v27, %v2867_v34 }
 0x1d5   : > { %v2893_v28 = vmax.f32 %v2885_v59, 0.0 }
 0x1d6   : > { %v3476_v45 = vpop.f32.mrf.mxu0 }
 0x1d7   : > { %v3494_v6 = vpop.f32.mrf.mxu1  ;;  %v2905_v41 = vmul.f32 %v2899_v42, %v2893_v28  ;;  %v2868_v31 = vpop.f32.mrf.mxu2  ;;  %v3477_v18 = vadd.f32 %v3476_v45, %v3021_v60  ;;  %v3669_v42 = vperm.slane %v3665_v3, 2 }
 0x1d9   : > { %v2917_v17 = vadd.f32 %v2911_v24, %v2905_v41  ;;  %v3495_v29 = vadd.f32 %v3494_v6, %v3477_v18 }
 0x1da   : > { %v2886_v58 = vpop.f32.mrf.mxu3 }
 0x1db   : > { %5436 = vst [vmem:[%s7154_s20 + $0x58] sm:$0x3] %v2917_v17 }
 0x1de   : > { %v3478_v63 = vpop.f32.mrf.mxu0 }
 0x1df   : > { %v3496_v53 = vpop.f32.mrf.mxu1  ;;  %v3512_v61 = vpop.f32.mrf.mxu2  ;;  %v3479_v35 = vadd.f32 %v3478_v63, %v3021_v60  ;;  %v3654_v63 = vperm.slane %v7425_v11, 5 }
 0x1e0   : > { %v3513_v52 = vadd.f32 %v3512_v61, %v3495_v29 }
 0x1e1   : > { %v3497_v48 = vadd.f32 %v3496_v53, %v3479_v35  ;;  %v3658_v18 = vperm.slane %v3654_v63, 1 }
 0x1e2   : > { %v3530_v40 = vpop.f32.mrf.mxu3 }
 0x1e3   : > { %v3531_v16 = vadd.f32 %v3530_v40, %v3513_v52 }
 0x1e6   : > { %v3481_v56 = vpop.f32.mrf.mxu0 }
 0x1e7   : > { %v3499_v33 = vpop.f32.mrf.mxu1  ;;  %v3514_v55 = vpop.f32.mrf.mxu2  ;;  %v3482_v32 = vadd.f32 %v3481_v56, %v3021_v60  ;;  %v3666_v56 = vperm.slane %v7425_v11, 6 }
 0x1e8   : > { %v3515_v49 = vadd.f32 %v3514_v55, %v3497_v48 }
 0x1e9   : > { %v3500_v62 = vadd.f32 %v3499_v33, %v3482_v32 }
 0x1ea   : > { %v3532_v4 = vpop.f32.mrf.mxu3 }
 0x1eb   : > { %v3533_v24 = vadd.f32 %v3532_v4, %v3515_v49 }
 0x1ee   : > { %v3483_v43 = vpop.f32.mrf.mxu0 }
 0x1ef   : > { %v3501_v23 = vpop.f32.mrf.mxu1  ;;  %v3517_v8 = vpop.f32.mrf.mxu2  ;;  %v3670_v43 = vperm.slane %v3666_v56, 2 }
 0x1f0   : > { %v3518_v21 = vadd.f32 %v3517_v8, %v3500_v62 }
 0x1f2   : > { %v3535_v14 = vpop.f32.mrf.mxu3 }
 0x1f3   : > { %v3536_v12 = vadd.f32 %v3535_v14, %v3518_v21 }
 0x1f6   : > { %v3548_v20 = vpop.f32.mrf.mxu0 }
 0x1f7   : > { %v3566_v15 = vpop.f32.mrf.mxu1  ;;  %v3519_v57 = vpop.f32.mrf.mxu2  ;;  %v3549_v25 = vadd.f32 %v3548_v20, %v3531_v16 }
 0x1f8   : > { %v3567_v59 = vadd.f32 %v3566_v15, %v3022_v37 }
 0x1f9   : > { %v3647_v19 = vmax.f32 %v3549_v25, 0.0 }
 0x1fa   : > { %v3537_v10 = vpop.f32.mrf.mxu3 }
 0x1fb   : > { %v3659_v0 = vmul.f32 %v3657_v22, %v3647_v19 }
 0x1fd   : > { %v3671_v30 = vadd.f32 %v3669_v42, %v3659_v0 }
 0x1fe   : > { %v3550_v9 = vpop.f32.mrf.mxu0 }
 0x1ff   : > { %v3568_v47 = vpop.f32.mrf.mxu1  ;;  %5778 = vst [vmem:[%s7154_s20 + $0x60] sm:$0xff] %v3671_v30  ;;  %v3584_v46 = vpop.f32.mrf.mxu2  ;;  %v3551_v7 = vadd.f32 %v3550_v9, %v3533_v24 }
 0x200   : > { %v3585_v31 = vadd.f32 %v3584_v46, %v3567_v59  ;;  %v3569_v36 = vadd.f32 %v3568_v47, %v3022_v37 }
 0x201   : > { %v3649_v1 = vmax.f32 %v3551_v7, 0.0 }
 0x202   : > { %v3602_v51 = vpop.f32.mrf.mxu3 }
 0x203   : > { %v3661_v26 = vmul.f32 %v3657_v22, %v3649_v1  ;;  %v3603_v58 = vadd.f32 %v3602_v51, %v3585_v31 }
 0x205   : > { %v3673_v54 = vadd.f32 %v3669_v42, %v3661_v26 }
 0x206   : > { %v3553_v44 = vpop.f32.mrf.mxu0 }
 0x207   : > { %v3571_v50 = vpop.f32.mrf.mxu1  ;;  %5780 = vst [vmem:[%s7154_s20 + $0x70] sm:$0xff] %v3673_v54  ;;  %v3586_v5 = vpop.f32.mrf.mxu2  ;;  %v3554_v2 = vadd.f32 %v3553_v44, %v3536_v12 }
 0x208   : > { %v3587_v33 = vadd.f32 %v3586_v5, %v3569_v36  ;;  %v3572_v8 = vadd.f32 %v3571_v50, %v3022_v37 }
 0x209   : > { %v3651_v34 = vmax.f32 %v3554_v2, 0.0 }
 0x20a   : > { %v3604_v39 = vpop.f32.mrf.mxu3 }
 0x20b   : > { %v3663_v27 = vmul.f32 %v3657_v22, %v3651_v34  ;;  %v3605_v23 = vadd.f32 %v3604_v39, %v3587_v33  ;;  %v5784_v22 = vld [vmem:[%s7519_s5 + $0x18] sm:$0x77] }
 0x20c   : > { %v3741_v0 = vperm.slane %v5784_v22, 0  ;;  %v4128_v12 = vperm.slane %v5784_v22, 1  ;;  %v3742_v13 = vperm.slane %v5784_v22, 4  ;;  %v4140_v44 = vperm.slane %v5784_v22, 2 }
 0x20d   : > { %v3675_v28 = vadd.f32 %v3669_v42, %v3663_v27  ;;  %v4141_v56 = vperm.slane %v5784_v22, 6 }
 0x20e   : > { %v3555_v45 = vpop.f32.mrf.mxu0  ;;  %v3745_v9 = vperm.slane %v3741_v0, 0  ;;  %v4132_v34 = vperm.slane %v4128_v12, 1  ;;  %v3746_v39 = vperm.slane %v3742_v13, 0  ;;  %v4183_v12 = vld [vmem:[%s7154_s20 + $0x8] sm:$0xff] (%p6699_p4)  ;;  %v4185_v13 = vld [vmem:[%s7154_s20 + $0x10] sm:$0xff] (%p6699_p4) }
 0x20f   : > { %v3573_v6 = vpop.f32.mrf.mxu1  ;;  %5782 = vst [vmem:[%s7154_s20 + $0x80] sm:$0x3] %v3675_v28  ;;  %v3589_v41 = vpop.f32.mrf.mxu2  ;;  %v4144_v28 = vperm.slane %v4140_v44, 2  ;;  %v4189_v44 = vld [vmem:[%s7154_s20 + $0x20] sm:$0xff] (%p6699_p4) }
 0x210   : > { %v3590_v20 = vadd.f32 %v3589_v41, %v3572_v8  ;;  %v4145_v8 = vperm.slane %v4141_v56, 2  ;;  %4184 = vst [vmem:[%s7456_s13 + $0x8] sm:$0xff] (%p6699_p4), %v4183_v12 }
 0x211   : > { %4186 = vst [vmem:[%s7456_s13 + $0x10] sm:$0xff] (%p6699_p4), %v4185_v13 }
 0x212   : > { %v3607_v17 = vpop.f32.mrf.mxu3  ;;  %4190 = vst [vmem:[%s7456_s13 + $0x20] sm:$0xff] (%p6699_p4), %v4189_v44 }
 0x213   : > { %v3608_v57 = vadd.f32 %v3607_v17, %v3590_v20 }
 0x216   : > { %v3620_v53 = vpop.f32.mrf.mxu0 }
 0x217   : > { %v3638_v61 = vpop.f32.mrf.mxu1  ;;  %v3591_v40 = vpop.f32.mrf.mxu2  ;;  %v3621_v60 = vadd.f32 %v3620_v53, %v3603_v58 }
 0x219   : > { %v3639_v55 = vadd.f32 %v3638_v61, %v3621_v60  ;;  %v4129_v61 = vperm.slane %v5784_v22, 5 }
 0x21a   : > { %v3609_v4 = vpop.f32.mrf.mxu3 }
 0x21b   : > { %v3648_v29 = vmax.f32 %v3639_v55, 0.0  ;;  %v4133_v4 = vperm.slane %v4129_v61, 1 }
 0x21d   : > { %v3660_v52 = vmul.f32 %v3658_v18, %v3648_v29 }
 0x21e   : > { %v3622_v14 = vpop.f32.mrf.mxu0 }
 0x21f   : > { %v3640_v35 = vpop.f32.mrf.mxu1  ;;  %v3672_v38 = vadd.f32 %v3670_v43, %v3660_v52  ;;  %v4023_v16 = vpop.f32.mrf.mxu2  ;;  %v3623_v3 = vadd.f32 %v3622_v14, %v3605_v23 }
 0x220   : > { %v4024_v51 = vadd.f32 %v4023_v16, %v3745_v9 }
 0x221   : > { %5779 = vst [vmem:[%s7154_s20 + $0x68] sm:$0xff] %v3672_v38  ;;  %v3641_v15 = vadd.f32 %v3640_v35, %v3623_v3 }
 0x222   : > { %v4041_v11 = vpop.f32.mrf.mxu3 }
 0x223   : > { %v3650_v48 = vmax.f32 %v3641_v15, 0.0  ;;  %v4042_v54 = vadd.f32 %v4041_v11, %v4024_v51 }
 0x225   : > { %v3662_v25 = vmul.f32 %v3658_v18, %v3650_v48 }
 0x226   : > { %v3625_v49 = vpop.f32.mrf.mxu0 }
 0x227   : > { %v3643_v32 = vpop.f32.mrf.mxu1  ;;  %v3674_v19 = vadd.f32 %v3670_v43, %v3662_v25  ;;  %v4025_v42 = vpop.f32.mrf.mxu2  ;;  %v3626_v10 = vadd.f32 %v3625_v49, %v3608_v57 }
 0x228   : > { %v4026_v27 = vadd.f32 %v4025_v42, %v3745_v9 }
 0x229   : > { %5781 = vst [vmem:[%s7154_s20 + $0x78] sm:$0xff] %v3674_v19  ;;  %v3644_v24 = vadd.f32 %v3643_v32, %v3626_v10 }
 0x22a   : > { %v4043_v62 = vpop.f32.mrf.mxu3 }
 0x22b   : > { %v3652_v30 = vmax.f32 %v3644_v24, 0.0  ;;  %v4044_v31 = vadd.f32 %v4043_v62, %v4026_v27  ;;  %v4203_v27 = vld [vmem:[%s7154_s20 + $0x58] sm:$0xff] (%p6699_p4) }
 0x22c   : > { %4204 = vst [vmem:[%s7456_s13 + $0x88] sm:$0xff] (%p6699_p4), %v4203_v27 }
 0x22d   : > { %v3664_v47 = vmul.f32 %v3658_v18, %v3652_v30 }
 0x22e   : > { %v3627_v46 = vpop.f32.mrf.mxu0 }
 0x22f   : > { %v3645_v7 = vpop.f32.mrf.mxu1  ;;  %v3676_v21 = vadd.f32 %v3670_v43, %v3664_v47  ;;  %v4028_v1 = vpop.f32.mrf.mxu2 }
 0x230   : > { %v4029_v60 = vadd.f32 %v4028_v1, %v3745_v9 }
 0x231   : > { %5783 = vst [vmem:[%s7154_s20 + $0x88] sm:$0x3] %v3676_v21 }
 0x232   : > { %v4046_v26 = vpop.f32.mrf.mxu3 }
 0x233   : > { %v4047_v43 = vadd.f32 %v4046_v26, %v4029_v60  ;;  %v4181_v26 = vld [vmem:[%s7154_s20] sm:$0xff] (%p6699_p4) }
 0x234   : > { %4182 = vst [vmem:[%s7456_s13] sm:$0xff] (%p6699_p4), %v4181_v26 }
 0x236   : > { %v4059_v50 = vpop.f32.mrf.mxu0 }
 0x237   : > { %v4077_v5 = vpop.f32.mrf.mxu1  ;;  %v4030_v2 = vpop.f32.mrf.mxu2  ;;  %v4060_v37 = vadd.f32 %v4059_v50, %v4042_v54  ;;  %v4187_v54 = vld [vmem:[%s7154_s20 + $0x18] sm:$0xff] (%p6699_p4)  ;;  %v4191_v50 = vld [vmem:[%s7154_s20 + $0x28] sm:$0xff] (%p6699_p4) }
 0x238   : > { %v4078_v41 = vadd.f32 %v4077_v5, %v3746_v39  ;;  %4188 = vst [vmem:[%s7456_s13 + $0x18] sm:$0xff] (%p6699_p4), %v4187_v54  ;;  %v4193_v5 = vld [vmem:[%s7154_s20 + $0x30] sm:$0xff] (%p6699_p4)  ;;  %v4195_v2 = vld [vmem:[%s7154_s20 + $0x38] sm:$0xff] (%p6699_p4) }
 0x239   : > { %v4122_v59 = vmax.f32 %v4060_v37, 0.0  ;;  %4192 = vst [vmem:[%s7456_s13 + $0x28] sm:$0xff] (%p6699_p4), %v4191_v50  ;;  %v4197_v37 = vld [vmem:[%s7154_s20 + $0x40] sm:$0xff] (%p6699_p4) }
 0x23a   : > { %v4048_v45 = vpop.f32.mrf.mxu3  ;;  %4194 = vst [vmem:[%s7456_s13 + $0x60] sm:$0xff] (%p6699_p4), %v4193_v5 }
 0x23b   : > { %v4134_v6 = vmul.f32 %v4132_v34, %v4122_v59  ;;  %4196 = vst [vmem:[%s7456_s13 + $0x68] sm:$0xff] (%p6699_p4), %v4195_v2  ;;  %v4205_v59 = vld [vmem:[%s7154_s20 + $0x60] sm:$0xff] (%p6699_p4)  ;;  %v4209_v45 = vld [vmem:[%s7154_s20 + $0x70] sm:$0xff] (%p6699_p4) }
 0x23c   : > { %4198 = vst [vmem:[%s7456_s13 + $0x70] sm:$0xff] (%p6699_p4), %v4197_v37 }
 0x23d   : > { %v4146_v17 = vadd.f32 %v4144_v28, %v4134_v6  ;;  %4206 = vst [vmem:[%s7456_s13 + $0xc0] sm:$0xff] (%p6699_p4), %v4205_v59  ;;  %v4211_v6 = vld [vmem:[%s7154_s20 + $0x78] sm:$0xff] (%p6699_p4) }
 0x23e   : > { %v4061_v58 = vpop.f32.mrf.mxu0  ;;  %4210 = vst [vmem:[%s7456_s13 + $0xd0] sm:$0xff] (%p6699_p4), %v4209_v45 }
 0x23f   : > { %v4079_v63 = vpop.f32.mrf.mxu1  ;;  %5989 = vst [vmem:[%s7154_s20 + $0x90] sm:$0xff] %v4146_v17  ;;  %v4095_v53 = vpop.f32.mrf.mxu2  ;;  %v4062_v36 = vadd.f32 %v4061_v58, %v4044_v31  ;;  %v4215_v31 = vld [vmem:[%s7154_s20 + $0x88] sm:$0xff] (%p6699_p4) }
 0x240   : > { %v4096_v40 = vadd.f32 %v4095_v53, %v4078_v41  ;;  %v4080_v14 = vadd.f32 %v4079_v63, %v3746_v39  ;;  %v4213_v41 = vld [vmem:[%s7154_s20 + $0x80] sm:$0xff] (%p6699_p4)  ;;  %4212 = vst [vmem:[%s7456_s13 + $0xd8] sm:$0xff] (%p6699_p4), %v4211_v6 }
 0x241   : > { %v4124_v33 = vmax.f32 %v4062_v36, 0.0  ;;  %4214 = vst [vmem:[%s7456_s13 + $0xe0] sm:$0xff] (%p6699_p4), %v4213_v41 }
 0x242   : > { %v4113_v55 = vpop.f32.mrf.mxu3  ;;  %4216 = vst [vmem:[%s7456_s13 + $0xe8] sm:$0xff] (%p6699_p4), %v4215_v31 }
 0x243   : > { %v4114_v18 = vadd.f32 %v4113_v55, %v4096_v40  ;;  %v4136_v29 = vmul.f32 %v4132_v34, %v4124_v33 }
 0x245   : > { %v4123_v23 = vmax.f32 %v4114_v18, 0.0  ;;  %v4148_v52 = vadd.f32 %v4144_v28, %v4136_v29 }
 0x246   : > { %v4064_v35 = vpop.f32.mrf.mxu0  ;;  %v4217_v17 = vld [vmem:[%s7154_s20 + $0x90] sm:$0xff] (%p6699_p4) }
 0x247   : > { %v4082_v38 = vpop.f32.mrf.mxu1  ;;  %v4135_v16 = vmul.f32 %v4133_v4, %v4123_v23  ;;  %5991 = vst [vmem:[%s7154_s20 + $0xa0] sm:$0xff] %v4148_v52  ;;  %v4097_v3 = vpop.f32.mrf.mxu2  ;;  %v4065_v20 = vadd.f32 %v4064_v35, %v4047_v43 }
 0x248   : > { %v4098_v15 = vadd.f32 %v4097_v3, %v4080_v14  ;;  %v4083_v49 = vadd.f32 %v4082_v38, %v3746_v39  ;;  %v4201_v39 = vld [vmem:[%s7154_s20 + $0x50] sm:$0xff] (%p6699_p4)  ;;  %4218 = vst [vmem:[%s7456_s13 + $0x120] sm:$0xff] (%p6699_p4), %v4217_v17 }
 0x249   : > { %v4147_v11 = vadd.f32 %v4145_v8, %v4135_v16  ;;  %v4126_v48 = vmax.f32 %v4065_v20, 0.0  ;;  %4202 = vst [vmem:[%s7456_s13 + $0x80] sm:$0xff] (%p6699_p4), %v4201_v39 }
 0x24a   : > { %v4115_v57 = vpop.f32.mrf.mxu3 }
 0x24b   : > { %5990 = vst [vmem:[%s7154_s20 + $0x98] sm:$0xff] %v4147_v11  ;;  %v4116_v25 = vadd.f32 %v4115_v57, %v4098_v15  ;;  %v4138_v22 = vmul.f32 %v4132_v34, %v4126_v48  ;;  %v4199_v34 = vld [vmem:[%s7154_s20 + $0x48] sm:$0xff] (%p6699_p4) }
 0x24c   : > { %4200 = vst [vmem:[%s7456_s13 + $0x78] sm:$0xff] (%p6699_p4), %v4199_v34 }
 0x24d   : > { %v4125_v32 = vmax.f32 %v4116_v25, 0.0  ;;  %v4150_v19 = vadd.f32 %v4144_v28, %v4138_v22  ;;  %v4207_v28 = vld [vmem:[%s7154_s20 + $0x68] sm:$0xff] (%p6699_p4) }
 0x24e   : > { %v4066_v42 = vpop.f32.mrf.mxu0  ;;  %4208 = vst [vmem:[%s7456_s13 + $0xc8] sm:$0xff] (%p6699_p4), %v4207_v28  ;;  %v4221_v63 = vld [vmem:[%s7154_s20 + $0xa0] sm:$0xff] (%p6699_p4) }
 0x24f   : > { %v4084_v10 = vpop.f32.mrf.mxu1  ;;  %v4137_v0 = vmul.f32 %v4133_v4, %v4125_v32  ;;  %5993 = vst [vmem:[%s7154_s20 + $0xb0] sm:$0x3] %v4150_v19  ;;  %v4100_v24 = vpop.f32.mrf.mxu2 }
 0x250   : > { %v4101_v62 = vadd.f32 %v4100_v24, %v4083_v49  ;;  %4222 = vst [vmem:[%s7456_s13 + $0x130] sm:$0xff] (%p6699_p4), %v4221_v63 }
 0x251   : > { %v4149_v30 = vadd.f32 %v4145_v8, %v4137_v0 }
 0x252   : > { %v4118_v9 = vpop.f32.mrf.mxu3  ;;  %v4219_v58 = vld [vmem:[%s7154_s20 + $0x98] sm:$0xff] (%p6699_p4) }
 0x253   : > { %5992 = vst [vmem:[%s7154_s20 + $0xa8] sm:$0xff] %v4149_v30  ;;  %v4119_v47 = vadd.f32 %v4118_v9, %v4101_v62 }
 0x254   : > { %4220 = vst [vmem:[%s7456_s13 + $0x128] sm:$0xff] (%p6699_p4), %v4219_v58 }
 0x255   : > { %v4127_v46 = vmax.f32 %v4119_v47, 0.0 }
 0x256   : > { %v4225_v61 = vld [vmem:[%s7154_s20 + $0xb0] sm:$0xff] (%p6699_p4) }
 0x257   : > { %v4139_v7 = vmul.f32 %v4133_v4, %v4127_v46  ;;  %v4102_v21 = vpop.f32.mrf.mxu2  ;;  %4165 = sbr.rel (!%p6699_p4) target bundleno = 612 (0x264), region = 64  ;;  %4226 = vst [vmem:[%s7456_s13 + $0x140] sm:$0xff] (%p6699_p4), %v4225_v61 }
 0x259   : > { %v4151_v1 = vadd.f32 %v4145_v8, %v4139_v7 }
 0x25a   : > { %v4120_v51 = vpop.f32.mrf.mxu3  ;;  %v4223_v53 = vld [vmem:[%s7154_s20 + $0xa8] sm:$0xff] (%p6699_p4) }
 0x25b   : > { %5994 = vst [vmem:[%s7154_s20 + $0xb8] sm:$0x3] %v4151_v1 }
 0x25c   : > { %4224 = vst [vmem:[%s7456_s13 + $0x138] sm:$0xff] %v4223_v53 }
 0x262   : > { %v4227_v36 = vld [vmem:[%s7154_s20 + $0xb8] sm:$0xff] }
 0x263   : > { %4228 = vst [vmem:[%s7456_s13 + $0x148] sm:$0xff] %v4227_v36 }
 0x264 PF: > { %p16_p11 = scmp.ge.s32.totalorder %s6689_s25, 4   ;;  %s7538_s21 = smov %s6627_s22 }
 0x265   : > { %s7539_s22 = smov %s6697_s28  ;;  %s7540_s23 = smov %s6689_s25 }
 0x266   :  { %18 = sbr.rel (!%p16_p11) target bundleno = 4 (0x4), region = 120 }
 0x26b   :  { %4244 = vsyncpa [#allocation4], 1 }
 0x26c   :  { %4246 = vsyncpa [#allocation4 + $0x1], 1 }
 0x26d   :  { %4247 = vsyncpa [#allocation6], 1 }
 0x26e   :  { %4248 = vsyncpa [#allocation9], 1 }

</bundles_post_ra>
